<compile_context>
chip_gen: v7x
topology: tpu7x:2x2x1
jax: 0.10.0
libtpu: 0.0.40
codegen_flags: <defaults>
</compile_context>

<pallas_src>
import functools

import jax
import jax.numpy as jnp
from jax.experimental import pallas as pl
from jax.experimental.pallas import tpu as pltpu


# ----------------------------------------------------------------------------
# Pallas kernel: fused 3x3 conv (+bias +activation) over concatenated inputs
# ----------------------------------------------------------------------------
def _conv3x3_kernel(*refs, n_in, S, M, act):
    """Fused 3x3 SAME conv over the channel-concat of `n_in` inputs.

    refs = (strip_0..strip_{n-1}, w_0..w_{n-1}, bias, out)
      strip_i : (1, 1, (tile_h+3)*S, Cin_i)  bf16  haloed, flattened row strip
      w_i     : (9, Cin_i, Cout)             bf16  tap-major (k = dy*3 + dx)
      bias    : (1, Cout)                    f32
      out     : (1, 1, M, Cout)              M = tile_h * S, S = W + 2
    im2col is realized as 9 constant-offset slices of the flattened strip
    (offset = dy*S + dx); the 2 right-edge columns of each output row are
    garbage (cross-row reads) and are discarded by the wrapper.
    """
    x_refs = refs[:n_in]
    w_refs = refs[n_in:2 * n_in]
    b_ref = refs[2 * n_in]
    o_ref = refs[2 * n_in + 1]
    cout = o_ref.shape[-1]

    acc = jnp.zeros((M, cout), jnp.float32)
    for xi in range(n_in):
        x_ref = x_refs[xi]
        w_ref = w_refs[xi]
        for k in range(9):
            dy, dx = divmod(k, 3)
            lhs = x_ref[0, 0, pl.ds(dy * S + dx, M), :]      # (M, Cin_i) bf16
            acc += jnp.dot(lhs, w_ref[k],                    # MXU, f32 accum
                           preferred_element_type=jnp.float32)
    y = acc + b_ref[...]
    if act == "relu":
        y = jnp.maximum(y, 0.0)
    o_ref[0, 0] = y.astype(o_ref.dtype)


def _pick_tile_h(H, S, target_rows=2048):
    """Largest divisor of H with tile_h*S <= target (and <= max(8, H//2))."""
    best = 1
    for d in range(1, H + 1):
        if H % d == 0 and d * S <= target_rows and d <= max(8, H // 2):
            best = d
    return best


def conv3x3(xs, w, b, act="none", out_dtype=jnp.bfloat16, tile_h=None):
    """3x3 SAME conv over the channel-concatenation of `xs` (NHWC arrays).

    w: (9, sum(Cin_i), Cout) tap-major; b: (Cout,).
    conv(concat(xs)) == sum_i conv(x_i, w_i): the weight is split per input
    outside the kernel and the kernel accumulates the partial matmuls, so
    neither the concat nor an im2col expansion is materialized in HBM.
    """
    if not isinstance(xs, (list, tuple)):
        xs = [xs]
    B, H, W, _ = xs[0].shape
    S = W + 2                                   # padded row width
    cins = [int(x.shape[-1]) for x in xs]
    cout = int(w.shape[-1])
    assert w.shape[0] == 9 and int(w.shape[1]) == sum(cins), (w.shape, cins)

    if tile_h is None:
        tile_h = _pick_tile_h(H, S)
    nT = H // tile_h
    M = tile_h * S
    L = (tile_h + 3) * S                        # strip length (+1 slack row)

    # Haloed row strips: padded rows [t*tile_h, t*tile_h + tile_h + 3) (one
    # top halo row, one bottom halo row, one extra slack row so the dx=1,2
    # taps of the last output row stay in bounds), flattened to 2D.
    row_idx = (jnp.arange(nT, dtype=jnp.int32)[:, None] * tile_h
               + jnp.arange(tile_h + 3, dtype=jnp.int32)[None, :])
    strips = []
    for x in xs:
        xp = jnp.pad(x, ((0, 0), (1, 2), (1, 1), (0, 0)))
        st = xp[:, row_idx]                     # (B, nT, tile_h+3, S, C)
        strips.append(st.reshape(B, nT, L, -1).astype(jnp.bfloat16))

    w = w.astype(jnp.bfloat16)
    ws, off = [], 0
    for c in cins:
        ws.append(w[:, off:off + c, :])
        off += c
    b2 = b.reshape(1, cout).astype(jnp.float32)

    in_specs = []
    for st in strips:
        c = int(st.shape[-1])
        in_specs.append(
            pl.BlockSpec((1, 1, L, c), lambda bb, tt: (bb, tt, 0, 0)))
    for wi in ws:
        in_specs.append(pl.BlockSpec(wi.shape, lambda bb, tt: (0, 0, 0)))
    in_specs.append(pl.BlockSpec((1, cout), lambda bb, tt: (0, 0)))

    kernel = functools.partial(_conv3x3_kernel, n_in=len(xs), S=S, M=M, act=act)
    out = pl.pallas_call(
        kernel,
        out_shape=jax.ShapeDtypeStruct((B, nT, M, cout), out_dtype),
        grid=(B, nT),
        in_specs=in_specs,
        out_specs=pl.BlockSpec((1, 1, M, cout), lambda bb, tt: (bb, tt, 0, 0)),
        compiler_params=pltpu.CompilerParams(
            dimension_semantics=("parallel", "parallel"),
            vmem_limit_bytes=32 * 1024 * 1024),
    )(*strips, *ws, b2)

    # Un-flatten rows and drop the 2 garbage right-edge columns.
    out = out.reshape(B, H, S, cout)[:, :, :W, :]
    return out


# ----------------------------------------------------------------------------
# Parameters (synthetic, deterministic)
# ----------------------------------------------------------------------------
def init_params(key, feat=8, n_classes=4, hidden=16, pose_hidden=32):
    keys = jax.random.split(key, 16)
    it = iter(keys)

    def w(shape):
        return jax.random.normal(next(it), shape, jnp.float32) * 0.1

    def zeros(n):
        return jnp.zeros((n,), jnp.float32)

    p = {}
    # backbone
    p["bb_conv1_w"], p["bb_conv1_b"] = w((9, 3, feat)), zeros(feat)
    p["bb_conv2_w"], p["bb_conv2_b"] = w((9, feat, feat)), zeros(feat)
    p["bb_ff_w"], p["bb_ff_b"] = w((9, 2 * feat, feat)), zeros(feat)
    # fused flow(2) + classes(n_classes) head
    p["bb_heads_w"] = w((9, feat, 2 + n_classes))
    p["bb_heads_b"] = zeros(2 + n_classes)
    # refineFlow: input = features + pre_features + flow + flowFeat + classes
    cin_rf = feat + feat + 2 + feat + n_classes
    p["rf_h_w"], p["rf_h_b"] = w((9, cin_rf, hidden)), zeros(hidden)
    p["rf_heads_w"] = w((9, hidden, 2 + n_classes))
    p["rf_heads_b"] = zeros(2 + n_classes)
    # poseHead
    pose_in = (2 + n_classes + 1) + 9
    p["ph_fc1_w"], p["ph_fc1_b"] = w((pose_in, pose_hidden)), zeros(pose_hidden)
    p["ph_fc2_w"], p["ph_fc2_b"] = w((pose_hidden, 6)), zeros(6)
    p["ph_mask_w"], p["ph_mask_b"] = w((n_classes, 1)), zeros(1)
    # depthHead: input = features + refinedFlow + warped_depth
    cin_dh = feat + 2 + 1
    p["dh_conv1_w"], p["dh_conv1_b"] = w((9, cin_dh, hidden)), zeros(hidden)
    p["dh_conv2_w"], p["dh_conv2_b"] = w((9, hidden, 1)), zeros(1)
    return p


# ----------------------------------------------------------------------------
# dream_net submodules
# ----------------------------------------------------------------------------
def backbone(p, frame_nhwc, pre_features=None):
    h = conv3x3(frame_nhwc, p["bb_conv1_w"], p["bb_conv1_b"], act="relu")
    features = conv3x3(h, p["bb_conv2_w"], p["bb_conv2_b"], act="relu")
    if pre_features is None:
        return features
    # conv over concat(features, pre_features) without materializing the concat
    flow_feat = conv3x3([features, pre_features], p["bb_ff_w"], p["bb_ff_b"],
                        act="relu")
    heads = conv3x3(flow_feat, p["bb_heads_w"], p["bb_heads_b"], act="none")
    flow, classes = heads[..., :2], heads[..., 2:]
    return flow, classes, features, flow_feat


def refine_flow(p, features, pre_features, flow, flow_feat, classes):
    h = conv3x3([features, pre_features, flow, flow_feat, classes],
                p["rf_h_w"], p["rf_h_b"], act="relu")
    heads = conv3x3(h, p["rf_heads_w"], p["rf_heads_b"], act="none")
    refined_flow = flow + heads[..., :2]
    refined_classes = classes + heads[..., 2:]
    return refined_flow, refined_classes


def pose_head(p, K, refined_flow, refined_classes, depth1_nhwc):
    # Tiny FCs + 1x1 conv: plain JAX on purpose (a pallas_call per
    # few-hundred-element op is pure launch overhead).
    B = refined_flow.shape[0]
    cat = jnp.concatenate([refined_flow.astype(jnp.float32),
                           refined_classes.astype(jnp.float32),
                           depth1_nhwc.astype(jnp.float32)], axis=-1)
    pooled = jnp.mean(cat, axis=(1, 2))                           # (B, 2+C+1)
    feat = jnp.concatenate([pooled, K.reshape(B, 9)], axis=-1)
    h = jax.nn.relu(feat @ p["ph_fc1_w"] + p["ph_fc1_b"])
    Ts = h @ p["ph_fc2_w"] + p["ph_fc2_b"]                        # (B, 6)
    masks = jax.nn.sigmoid(
        jnp.einsum("bhwc,co->bhwo", refined_classes.astype(jnp.float32),
                   p["ph_mask_w"]) + p["ph_mask_b"])              # (B,H,W,1)
    return Ts, masks


def projector(depth1_nhwc, K, Ts, masks):
    # TODO(synk): the real projector does a rigid-body reprojection with K and
    # bilinear grid_sample; approximated as a per-pixel translation-in-z plus
    # mask gating (plain-JAX elementwise -- XLA fuses it with its consumers).
    tz = Ts[:, 2:3]                                               # (B, 1)
    return (depth1_nhwc + tz[:, None, None, :]) * masks           # (B,H,W,1)


def depth_head(p, features, refined_flow, warped_depth):
    h = conv3x3([features, refined_flow, warped_depth],
                p["dh_conv1_w"], p["dh_conv1_b"], act="relu")
    # NOTE: final ReLU kept from the previous version (depthHead definition is
    # not in the reference source); drop it if the real head is linear.
    depth = conv3x3(h, p["dh_conv2_w"], p["dh_conv2_b"], act="relu",
                    out_dtype=jnp.float32)
    return depth                                                  # (B,H,W,1)


def dream_net_forward(p, frame1, frame2, K, depth1):
    """PyTorch NCHW inputs; returns depth in NCHW (B, 1, H, W)."""
    f1 = jnp.transpose(frame1, (0, 2, 3, 1)).astype(jnp.float32)
    f2 = jnp.transpose(frame2, (0, 2, 3, 1)).astype(jnp.float32)
    d1 = jnp.transpose(depth1, (0, 2, 3, 1)).astype(jnp.float32)

    pre_features = backbone(p, f1)
    flow, classes, features, flow_feat = backbone(p, f2, pre_features)
    refined_flow, refined_classes = refine_flow(p, features, pre_features,
                                                flow, flow_feat, classes)
    Ts, masks = pose_head(p, K, refined_flow, refined_classes, d1)
    warped_depth = projector(d1, K, Ts, masks)
    depth = depth_head(p, features, refined_flow, warped_depth)
    return jnp.transpose(depth, (0, 3, 1, 2))                     # (B,1,H,W)


# ----------------------------------------------------------------------------
# Pure-JAX reference for the conv kernel (used as a self-check)
# ----------------------------------------------------------------------------
def _conv3x3_reference(xs, w, b, act):
    x = jnp.concatenate(
        [a.astype(jnp.bfloat16).astype(jnp.float32) for a in xs], axis=-1)
    cin, cout = int(w.shape[1]), int(w.shape[2])
    wf = w.astype(jnp.bfloat16).astype(jnp.float32).reshape(3, 3, cin, cout)
    y = jax.lax.conv_general_dilated(
        x, wf, window_strides=(1, 1), padding="SAME",
        dimension_numbers=("NHWC", "HWIO", "NHWC"))
    y = y + b.reshape(1, 1, 1, cout)
    if act == "relu":
        y = jnp.maximum(y, 0.0)
    return y


# ----------------------------------------------------------------------------
if __name__ == "__main__":
    key = jax.random.PRNGKey(0)
    k1, k2, k3, kp, kc1, kc2, kcw, kcb = jax.random.split(key, 8)

    B, H, W = 2, 16, 16

    # --- self-check: Pallas fused conv vs pure-JAX reference (multi-input,
    #     2 row-tiles so the halo path is exercised) ---
    xa = jax.random.normal(kc1, (B, H, W, 8), jnp.float32)
    xb = jax.random.normal(kc2, (B, H, W, 4), jnp.float32)
    wt = jax.random.normal(kcw, (9, 12, 16), jnp.float32) * 0.1
    bt = jax.random.normal(kcb, (16,), jnp.float32) * 0.1
    got = conv3x3([xa, xb], wt, bt, act="relu", out_dtype=jnp.float32)
    ref = _conv3x3_reference([xa, xb], wt, bt, "relu")
    assert jnp.allclose(got, ref, atol=1e-2, rtol=1e-2), (
        float(jnp.max(jnp.abs(got - ref))))

    # --- dream_net forward ---
    frame1 = jax.random.normal(k1, (B, 3, H, W), jnp.float32)
    frame2 = jax.random.normal(k2, (B, 3, H, W), jnp.float32)
    depth1 = jax.nn.softplus(
        jax.random.normal(k3, (B, 1, H, W), jnp.float32)) + 0.5
    fx = fy = 32.0
    Kmat = jnp.broadcast_to(
        jnp.array([[fx, 0.0, W / 2.0],
                   [0.0, fy, H / 2.0],
                   [0.0, 0.0, 1.0]], jnp.float32), (B, 3, 3))

    params = init_params(kp)
    fwd = jax.jit(dream_net_forward)
    depth = jax.block_until_ready(fwd(params, frame1, frame2, Kmat, depth1))

    assert depth.shape == (B, 1, H, W), depth.shape
    assert bool(jnp.all(jnp.isfinite(depth)))
    print("KERNEL_OK")
</pallas_src>

<mosaic_0001>
module attributes {stable_mosaic.version = 11 : i64} {
  func.func @_conv3x3_kernel(%arg0: i32, %arg1: i32, %arg2: memref<1x1x198x8xbf16, #tpu.memory_space<vmem>>, %arg3: memref<1x1x198x4xbf16, #tpu.memory_space<vmem>>, %arg4: memref<9x8x16xbf16, #tpu.memory_space<vmem>>, %arg5: memref<9x4x16xbf16, #tpu.memory_space<vmem>>, %arg6: memref<1x16xf32, #tpu.memory_space<vmem>>, %arg7: memref<1x1x144x16xf32, #tpu.memory_space<vmem>>) attributes {dimension_semantics = [#tpu.dimension_semantics<parallel>, #tpu.dimension_semantics<parallel>], iteration_bounds = array<i64: 2, 2>, scalar_prefetch = 0 : i64, scratch_operands = 0 : i64, tpu.core_type = #tpu.core_type<tc>, window_params = [{transform_indices = @transform_0, window_bounds = array<i64: 1, 1, 198, 8>}, {transform_indices = @transform_1, window_bounds = array<i64: 1, 1, 198, 4>}, {pipeline_mode = #tpu.pipeline_mode<synchronous>, transform_indices = @transform_2, window_bounds = array<i64: 9, 8, 16>}, {pipeline_mode = #tpu.pipeline_mode<synchronous>, transform_indices = @transform_3, window_bounds = array<i64: 9, 4, 16>}, {pipeline_mode = #tpu.pipeline_mode<synchronous>, transform_indices = @transform_4, window_bounds = array<i64: 1, 16>}, {transform_indices = @transform_5, window_bounds = array<i64: 1, 1, 144, 16>}]} {
    %cst = arith.constant 0.000000e+00 : f32
    %0 = vector.broadcast %cst : f32 to vector<144x16xf32>
    %c0 = arith.constant 0 : index
    %c0_0 = arith.constant 0 : index
    %c0_1 = arith.constant 0 : index
    %c0_2 = arith.constant 0 : index
    %1 = vector.load %arg2[%c0, %c0_0, %c0_1, %c0_2] : memref<1x1x198x8xbf16, #tpu.memory_space<vmem>>, vector<1x1x144x8xbf16>
    %2 = vector.shape_cast %1 : vector<1x1x144x8xbf16> to vector<144x8xbf16>
    %c0_3 = arith.constant 0 : index
    %c0_4 = arith.constant 0 : index
    %c0_5 = arith.constant 0 : index
    %3 = vector.load %arg4[%c0_3, %c0_4, %c0_5] : memref<9x8x16xbf16, #tpu.memory_space<vmem>>, vector<1x8x16xbf16>
    %4 = vector.shape_cast %3 : vector<1x8x16xbf16> to vector<8x16xbf16>
    %cst_6 = arith.constant dense<0.000000e+00> : vector<144x16xf32>
    %5 = tpu.matmul %2, %4, %cst_6 {dimension_numbers = #tpu.dot_dimension_numbers<[1], [0], [0], [1], [0, 0, 1, 1], [], []>} : vector<144x8xbf16>, vector<8x16xbf16>, vector<144x16xf32> -> vector<144x16xf32>
    %6 = arith.addf %0, %5 : vector<144x16xf32>
    %c0_7 = arith.constant 0 : index
    %c0_8 = arith.constant 0 : index
    %c1 = arith.constant 1 : index
    %c0_9 = arith.constant 0 : index
    %7 = vector.load %arg2[%c0_7, %c0_8, %c1, %c0_9] : memref<1x1x198x8xbf16, #tpu.memory_space<vmem>>, vector<1x1x144x8xbf16>
    %8 = vector.shape_cast %7 : vector<1x1x144x8xbf16> to vector<144x8xbf16>
    %c1_10 = arith.constant 1 : index
    %c0_11 = arith.constant 0 : index
    %c0_12 = arith.constant 0 : index
    %9 = vector.load %arg4[%c1_10, %c0_11, %c0_12] : memref<9x8x16xbf16, #tpu.memory_space<vmem>>, vector<1x8x16xbf16>
    %10 = vector.shape_cast %9 : vector<1x8x16xbf16> to vector<8x16xbf16>
    %cst_13 = arith.constant dense<0.000000e+00> : vector<144x16xf32>
    %11 = tpu.matmul %8, %10, %cst_13 {dimension_numbers = #tpu.dot_dimension_numbers<[1], [0], [0], [1], [0, 0, 1, 1], [], []>} : vector<144x8xbf16>, vector<8x16xbf16>, vector<144x16xf32> -> vector<144x16xf32>
    %12 = arith.addf %6, %11 : vector<144x16xf32>
    %c0_14 = arith.constant 0 : index
    %c0_15 = arith.constant 0 : index
    %c2 = arith.constant 2 : index
    %c0_16 = arith.constant 0 : index
    %13 = vector.load %arg2[%c0_14, %c0_15, %c2, %c0_16] : memref<1x1x198x8xbf16, #tpu.memory_space<vmem>>, vector<1x1x144x8xbf16>
    %14 = vector.shape_cast %13 : vector<1x1x144x8xbf16> to vector<144x8xbf16>
    %c2_17 = arith.constant 2 : index
    %c0_18 = arith.constant 0 : index
    %c0_19 = arith.constant 0 : index
    %15 = vector.load %arg4[%c2_17, %c0_18, %c0_19] : memref<9x8x16xbf16, #tpu.memory_space<vmem>>, vector<1x8x16xbf16>
    %16 = vector.shape_cast %15 : vector<1x8x16xbf16> to vector<8x16xbf16>
    %cst_20 = arith.constant dense<0.000000e+00> : vector<144x16xf32>
    %17 = tpu.matmul %14, %16, %cst_20 {dimension_numbers = #tpu.dot_dimension_numbers<[1], [0], [0], [1], [0, 0, 1, 1], [], []>} : vector<144x8xbf16>, vector<8x16xbf16>, vector<144x16xf32> -> vector<144x16xf32>
    %18 = arith.addf %12, %17 : vector<144x16xf32>
    %c0_21 = arith.constant 0 : index
    %c0_22 = arith.constant 0 : index
    %c18 = arith.constant 18 : index
    %c0_23 = arith.constant 0 : index
    %19 = vector.load %arg2[%c0_21, %c0_22, %c18, %c0_23] : memref<1x1x198x8xbf16, #tpu.memory_space<vmem>>, vector<1x1x144x8xbf16>
    %20 = vector.shape_cast %19 : vector<1x1x144x8xbf16> to vector<144x8xbf16>
    %c3 = arith.constant 3 : index
    %c0_24 = arith.constant 0 : index
    %c0_25 = arith.constant 0 : index
    %21 = vector.load %arg4[%c3, %c0_24, %c0_25] : memref<9x8x16xbf16, #tpu.memory_space<vmem>>, vector<1x8x16xbf16>
    %22 = vector.shape_cast %21 : vector<1x8x16xbf16> to vector<8x16xbf16>
    %cst_26 = arith.constant dense<0.000000e+00> : vector<144x16xf32>
    %23 = tpu.matmul %20, %22, %cst_26 {dimension_numbers = #tpu.dot_dimension_numbers<[1], [0], [0], [1], [0, 0, 1, 1], [], []>} : vector<144x8xbf16>, vector<8x16xbf16>, vector<144x16xf32> -> vector<144x16xf32>
    %24 = arith.addf %18, %23 : vector<144x16xf32>
    %c0_27 = arith.constant 0 : index
    %c0_28 = arith.constant 0 : index
    %c19 = arith.constant 19 : index
    %c0_29 = arith.constant 0 : index
    %25 = vector.load %arg2[%c0_27, %c0_28, %c19, %c0_29] : memref<1x1x198x8xbf16, #tpu.memory_space<vmem>>, vector<1x1x144x8xbf16>
    %26 = vector.shape_cast %25 : vector<1x1x144x8xbf16> to vector<144x8xbf16>
    %c4 = arith.constant 4 : index
    %c0_30 = arith.constant 0 : index
    %c0_31 = arith.constant 0 : index
    %27 = vector.load %arg4[%c4, %c0_30, %c0_31] : memref<9x8x16xbf16, #tpu.memory_space<vmem>>, vector<1x8x16xbf16>
    %28 = vector.shape_cast %27 : vector<1x8x16xbf16> to vector<8x16xbf16>
    %cst_32 = arith.constant dense<0.000000e+00> : vector<144x16xf32>
    %29 = tpu.matmul %26, %28, %cst_32 {dimension_numbers = #tpu.dot_dimension_numbers<[1], [0], [0], [1], [0, 0, 1, 1], [], []>} : vector<144x8xbf16>, vector<8x16xbf16>, vector<144x16xf32> -> vector<144x16xf32>
    %30 = arith.addf %24, %29 : vector<144x16xf32>
    %c0_33 = arith.constant 0 : index
    %c0_34 = arith.constant 0 : index
    %c20 = arith.constant 20 : index
    %c0_35 = arith.constant 0 : index
    %31 = vector.load %arg2[%c0_33, %c0_34, %c20, %c0_35] : memref<1x1x198x8xbf16, #tpu.memory_space<vmem>>, vector<1x1x144x8xbf16>
    %32 = vector.shape_cast %31 : vector<1x1x144x8xbf16> to vector<144x8xbf16>
    %c5 = arith.constant 5 : index
    %c0_36 = arith.constant 0 : index
    %c0_37 = arith.constant 0 : index
    %33 = vector.load %arg4[%c5, %c0_36, %c0_37] : memref<9x8x16xbf16, #tpu.memory_space<vmem>>, vector<1x8x16xbf16>
    %34 = vector.shape_cast %33 : vector<1x8x16xbf16> to vector<8x16xbf16>
    %cst_38 = arith.constant dense<0.000000e+00> : vector<144x16xf32>
    %35 = tpu.matmul %32, %34, %cst_38 {dimension_numbers = #tpu.dot_dimension_numbers<[1], [0], [0], [1], [0, 0, 1, 1], [], []>} : vector<144x8xbf16>, vector<8x16xbf16>, vector<144x16xf32> -> vector<144x16xf32>
    %36 = arith.addf %30, %35 : vector<144x16xf32>
    %c0_39 = arith.constant 0 : index
    %c0_40 = arith.constant 0 : index
    %c36 = arith.constant 36 : index
    %c0_41 = arith.constant 0 : index
    %37 = vector.load %arg2[%c0_39, %c0_40, %c36, %c0_41] : memref<1x1x198x8xbf16, #tpu.memory_space<vmem>>, vector<1x1x144x8xbf16>
    %38 = vector.shape_cast %37 : vector<1x1x144x8xbf16> to vector<144x8xbf16>
    %c6 = arith.constant 6 : index
    %c0_42 = arith.constant 0 : index
    %c0_43 = arith.constant 0 : index
    %39 = vector.load %arg4[%c6, %c0_42, %c0_43] : memref<9x8x16xbf16, #tpu.memory_space<vmem>>, vector<1x8x16xbf16>
    %40 = vector.shape_cast %39 : vector<1x8x16xbf16> to vector<8x16xbf16>
    %cst_44 = arith.constant dense<0.000000e+00> : vector<144x16xf32>
    %41 = tpu.matmul %38, %40, %cst_44 {dimension_numbers = #tpu.dot_dimension_numbers<[1], [0], [0], [1], [0, 0, 1, 1], [], []>} : vector<144x8xbf16>, vector<8x16xbf16>, vector<144x16xf32> -> vector<144x16xf32>
    %42 = arith.addf %36, %41 : vector<144x16xf32>
    %c0_45 = arith.constant 0 : index
    %c0_46 = arith.constant 0 : index
    %c37 = arith.constant 37 : index
    %c0_47 = arith.constant 0 : index
    %43 = vector.load %arg2[%c0_45, %c0_46, %c37, %c0_47] : memref<1x1x198x8xbf16, #tpu.memory_space<vmem>>, vector<1x1x144x8xbf16>
    %44 = vector.shape_cast %43 : vector<1x1x144x8xbf16> to vector<144x8xbf16>
    %c7 = arith.constant 7 : index
    %c0_48 = arith.constant 0 : index
    %c0_49 = arith.constant 0 : index
    %45 = vector.load %arg4[%c7, %c0_48, %c0_49] : memref<9x8x16xbf16, #tpu.memory_space<vmem>>, vector<1x8x16xbf16>
    %46 = vector.shape_cast %45 : vector<1x8x16xbf16> to vector<8x16xbf16>
    %cst_50 = arith.constant dense<0.000000e+00> : vector<144x16xf32>
    %47 = tpu.matmul %44, %46, %cst_50 {dimension_numbers = #tpu.dot_dimension_numbers<[1], [0], [0], [1], [0, 0, 1, 1], [], []>} : vector<144x8xbf16>, vector<8x16xbf16>, vector<144x16xf32> -> vector<144x16xf32>
    %48 = arith.addf %42, %47 : vector<144x16xf32>
    %c0_51 = arith.constant 0 : index
    %c0_52 = arith.constant 0 : index
    %c38 = arith.constant 38 : index
    %c0_53 = arith.constant 0 : index
    %49 = vector.load %arg2[%c0_51, %c0_52, %c38, %c0_53] : memref<1x1x198x8xbf16, #tpu.memory_space<vmem>>, vector<1x1x144x8xbf16>
    %50 = vector.shape_cast %49 : vector<1x1x144x8xbf16> to vector<144x8xbf16>
    %c8 = arith.constant 8 : index
    %c0_54 = arith.constant 0 : index
    %c0_55 = arith.constant 0 : index
    %51 = vector.load %arg4[%c8, %c0_54, %c0_55] : memref<9x8x16xbf16, #tpu.memory_space<vmem>>, vector<1x8x16xbf16>
    %52 = vector.shape_cast %51 : vector<1x8x16xbf16> to vector<8x16xbf16>
    %cst_56 = arith.constant dense<0.000000e+00> : vector<144x16xf32>
    %53 = tpu.matmul %50, %52, %cst_56 {dimension_numbers = #tpu.dot_dimension_numbers<[1], [0], [0], [1], [0, 0, 1, 1], [], []>} : vector<144x8xbf16>, vector<8x16xbf16>, vector<144x16xf32> -> vector<144x16xf32>
    %54 = arith.addf %48, %53 : vector<144x16xf32>
    %c0_57 = arith.constant 0 : index
    %c0_58 = arith.constant 0 : index
    %c0_59 = arith.constant 0 : index
    %c0_60 = arith.constant 0 : index
    %55 = vector.load %arg3[%c0_57, %c0_58, %c0_59, %c0_60] : memref<1x1x198x4xbf16, #tpu.memory_space<vmem>>, vector<1x1x144x4xbf16>
    %56 = vector.shape_cast %55 : vector<1x1x144x4xbf16> to vector<144x4xbf16>
    %c0_61 = arith.constant 0 : index
    %c0_62 = arith.constant 0 : index
    %c0_63 = arith.constant 0 : index
    %57 = vector.load %arg5[%c0_61, %c0_62, %c0_63] : memref<9x4x16xbf16, #tpu.memory_space<vmem>>, vector<1x4x16xbf16>
    %58 = vector.shape_cast %57 : vector<1x4x16xbf16> to vector<4x16xbf16>
    %cst_64 = arith.constant dense<0.000000e+00> : vector<144x16xf32>
    %59 = tpu.matmul %56, %58, %cst_64 {dimension_numbers = #tpu.dot_dimension_numbers<[1], [0], [0], [1], [0, 0, 1, 1], [], []>} : vector<144x4xbf16>, vector<4x16xbf16>, vector<144x16xf32> -> vector<144x16xf32>
    %60 = arith.addf %54, %59 : vector<144x16xf32>
    %c0_65 = arith.constant 0 : index
    %c0_66 = arith.constant 0 : index
    %c1_67 = arith.constant 1 : index
    %c0_68 = arith.constant 0 : index
    %61 = vector.load %arg3[%c0_65, %c0_66, %c1_67, %c0_68] : memref<1x1x198x4xbf16, #tpu.memory_space<vmem>>, vector<1x1x144x4xbf16>
    %62 = vector.shape_cast %61 : vector<1x1x144x4xbf16> to vector<144x4xbf16>
    %c1_69 = arith.constant 1 : index
    %c0_70 = arith.constant 0 : index
    %c0_71 = arith.constant 0 : index
    %63 = vector.load %arg5[%c1_69, %c0_70, %c0_71] : memref<9x4x16xbf16, #tpu.memory_space<vmem>>, vector<1x4x16xbf16>
    %64 = vector.shape_cast %63 : vector<1x4x16xbf16> to vector<4x16xbf16>
    %cst_72 = arith.constant dense<0.000000e+00> : vector<144x16xf32>
    %65 = tpu.matmul %62, %64, %cst_72 {dimension_numbers = #tpu.dot_dimension_numbers<[1], [0], [0], [1], [0, 0, 1, 1], [], []>} : vector<144x4xbf16>, vector<4x16xbf16>, vector<144x16xf32> -> vector<144x16xf32>
    %66 = arith.addf %60, %65 : vector<144x16xf32>
    %c0_73 = arith.constant 0 : index
    %c0_74 = arith.constant 0 : index
    %c2_75 = arith.constant 2 : index
    %c0_76 = arith.constant 0 : index
    %67 = vector.load %arg3[%c0_73, %c0_74, %c2_75, %c0_76] : memref<1x1x198x4xbf16, #tpu.memory_space<vmem>>, vector<1x1x144x4xbf16>
    %68 = vector.shape_cast %67 : vector<1x1x144x4xbf16> to vector<144x4xbf16>
    %c2_77 = arith.constant 2 : index
    %c0_78 = arith.constant 0 : index
    %c0_79 = arith.constant 0 : index
    %69 = vector.load %arg5[%c2_77, %c0_78, %c0_79] : memref<9x4x16xbf16, #tpu.memory_space<vmem>>, vector<1x4x16xbf16>
    %70 = vector.shape_cast %69 : vector<1x4x16xbf16> to vector<4x16xbf16>
    %cst_80 = arith.constant dense<0.000000e+00> : vector<144x16xf32>
    %71 = tpu.matmul %68, %70, %cst_80 {dimension_numbers = #tpu.dot_dimension_numbers<[1], [0], [0], [1], [0, 0, 1, 1], [], []>} : vector<144x4xbf16>, vector<4x16xbf16>, vector<144x16xf32> -> vector<144x16xf32>
    %72 = arith.addf %66, %71 : vector<144x16xf32>
    %c0_81 = arith.constant 0 : index
    %c0_82 = arith.constant 0 : index
    %c18_83 = arith.constant 18 : index
    %c0_84 = arith.constant 0 : index
    %73 = vector.load %arg3[%c0_81, %c0_82, %c18_83, %c0_84] : memref<1x1x198x4xbf16, #tpu.memory_space<vmem>>, vector<1x1x144x4xbf16>
    %74 = vector.shape_cast %73 : vector<1x1x144x4xbf16> to vector<144x4xbf16>
    %c3_85 = arith.constant 3 : index
    %c0_86 = arith.constant 0 : index
    %c0_87 = arith.constant 0 : index
    %75 = vector.load %arg5[%c3_85, %c0_86, %c0_87] : memref<9x4x16xbf16, #tpu.memory_space<vmem>>, vector<1x4x16xbf16>
    %76 = vector.shape_cast %75 : vector<1x4x16xbf16> to vector<4x16xbf16>
    %cst_88 = arith.constant dense<0.000000e+00> : vector<144x16xf32>
    %77 = tpu.matmul %74, %76, %cst_88 {dimension_numbers = #tpu.dot_dimension_numbers<[1], [0], [0], [1], [0, 0, 1, 1], [], []>} : vector<144x4xbf16>, vector<4x16xbf16>, vector<144x16xf32> -> vector<144x16xf32>
    %78 = arith.addf %72, %77 : vector<144x16xf32>
    %c0_89 = arith.constant 0 : index
    %c0_90 = arith.constant 0 : index
    %c19_91 = arith.constant 19 : index
    %c0_92 = arith.constant 0 : index
    %79 = vector.load %arg3[%c0_89, %c0_90, %c19_91, %c0_92] : memref<1x1x198x4xbf16, #tpu.memory_space<vmem>>, vector<1x1x144x4xbf16>
    %80 = vector.shape_cast %79 : vector<1x1x144x4xbf16> to vector<144x4xbf16>
    %c4_93 = arith.constant 4 : index
    %c0_94 = arith.constant 0 : index
    %c0_95 = arith.constant 0 : index
    %81 = vector.load %arg5[%c4_93, %c0_94, %c0_95] : memref<9x4x16xbf16, #tpu.memory_space<vmem>>, vector<1x4x16xbf16>
    %82 = vector.shape_cast %81 : vector<1x4x16xbf16> to vector<4x16xbf16>
    %cst_96 = arith.constant dense<0.000000e+00> : vector<144x16xf32>
    %83 = tpu.matmul %80, %82, %cst_96 {dimension_numbers = #tpu.dot_dimension_numbers<[1], [0], [0], [1], [0, 0, 1, 1], [], []>} : vector<144x4xbf16>, vector<4x16xbf16>, vector<144x16xf32> -> vector<144x16xf32>
    %84 = arith.addf %78, %83 : vector<144x16xf32>
    %c0_97 = arith.constant 0 : index
    %c0_98 = arith.constant 0 : index
    %c20_99 = arith.constant 20 : index
    %c0_100 = arith.constant 0 : index
    %85 = vector.load %arg3[%c0_97, %c0_98, %c20_99, %c0_100] : memref<1x1x198x4xbf16, #tpu.memory_space<vmem>>, vector<1x1x144x4xbf16>
    %86 = vector.shape_cast %85 : vector<1x1x144x4xbf16> to vector<144x4xbf16>
    %c5_101 = arith.constant 5 : index
    %c0_102 = arith.constant 0 : index
    %c0_103 = arith.constant 0 : index
    %87 = vector.load %arg5[%c5_101, %c0_102, %c0_103] : memref<9x4x16xbf16, #tpu.memory_space<vmem>>, vector<1x4x16xbf16>
    %88 = vector.shape_cast %87 : vector<1x4x16xbf16> to vector<4x16xbf16>
    %cst_104 = arith.constant dense<0.000000e+00> : vector<144x16xf32>
    %89 = tpu.matmul %86, %88, %cst_104 {dimension_numbers = #tpu.dot_dimension_numbers<[1], [0], [0], [1], [0, 0, 1, 1], [], []>} : vector<144x4xbf16>, vector<4x16xbf16>, vector<144x16xf32> -> vector<144x16xf32>
    %90 = arith.addf %84, %89 : vector<144x16xf32>
    %c0_105 = arith.constant 0 : index
    %c0_106 = arith.constant 0 : index
    %c36_107 = arith.constant 36 : index
    %c0_108 = arith.constant 0 : index
    %91 = vector.load %arg3[%c0_105, %c0_106, %c36_107, %c0_108] : memref<1x1x198x4xbf16, #tpu.memory_space<vmem>>, vector<1x1x144x4xbf16>
    %92 = vector.shape_cast %91 : vector<1x1x144x4xbf16> to vector<144x4xbf16>
    %c6_109 = arith.constant 6 : index
    %c0_110 = arith.constant 0 : index
    %c0_111 = arith.constant 0 : index
    %93 = vector.load %arg5[%c6_109, %c0_110, %c0_111] : memref<9x4x16xbf16, #tpu.memory_space<vmem>>, vector<1x4x16xbf16>
    %94 = vector.shape_cast %93 : vector<1x4x16xbf16> to vector<4x16xbf16>
    %cst_112 = arith.constant dense<0.000000e+00> : vector<144x16xf32>
    %95 = tpu.matmul %92, %94, %cst_112 {dimension_numbers = #tpu.dot_dimension_numbers<[1], [0], [0], [1], [0, 0, 1, 1], [], []>} : vector<144x4xbf16>, vector<4x16xbf16>, vector<144x16xf32> -> vector<144x16xf32>
    %96 = arith.addf %90, %95 : vector<144x16xf32>
    %c0_113 = arith.constant 0 : index
    %c0_114 = arith.constant 0 : index
    %c37_115 = arith.constant 37 : index
    %c0_116 = arith.constant 0 : index
    %97 = vector.load %arg3[%c0_113, %c0_114, %c37_115, %c0_116] : memref<1x1x198x4xbf16, #tpu.memory_space<vmem>>, vector<1x1x144x4xbf16>
    %98 = vector.shape_cast %97 : vector<1x1x144x4xbf16> to vector<144x4xbf16>
    %c7_117 = arith.constant 7 : index
    %c0_118 = arith.constant 0 : index
    %c0_119 = arith.constant 0 : index
    %99 = vector.load %arg5[%c7_117, %c0_118, %c0_119] : memref<9x4x16xbf16, #tpu.memory_space<vmem>>, vector<1x4x16xbf16>
    %100 = vector.shape_cast %99 : vector<1x4x16xbf16> to vector<4x16xbf16>
    %cst_120 = arith.constant dense<0.000000e+00> : vector<144x16xf32>
    %101 = tpu.matmul %98, %100, %cst_120 {dimension_numbers = #tpu.dot_dimension_numbers<[1], [0], [0], [1], [0, 0, 1, 1], [], []>} : vector<144x4xbf16>, vector<4x16xbf16>, vector<144x16xf32> -> vector<144x16xf32>
    %102 = arith.addf %96, %101 : vector<144x16xf32>
    %c0_121 = arith.constant 0 : index
    %c0_122 = arith.constant 0 : index
    %c38_123 = arith.constant 38 : index
    %c0_124 = arith.constant 0 : index
    %103 = vector.load %arg3[%c0_121, %c0_122, %c38_123, %c0_124] : memref<1x1x198x4xbf16, #tpu.memory_space<vmem>>, vector<1x1x144x4xbf16>
    %104 = vector.shape_cast %103 : vector<1x1x144x4xbf16> to vector<144x4xbf16>
    %c8_125 = arith.constant 8 : index
    %c0_126 = arith.constant 0 : index
    %c0_127 = arith.constant 0 : index
    %105 = vector.load %arg5[%c8_125, %c0_126, %c0_127] : memref<9x4x16xbf16, #tpu.memory_space<vmem>>, vector<1x4x16xbf16>
    %106 = vector.shape_cast %105 : vector<1x4x16xbf16> to vector<4x16xbf16>
    %cst_128 = arith.constant dense<0.000000e+00> : vector<144x16xf32>
    %107 = tpu.matmul %104, %106, %cst_128 {dimension_numbers = #tpu.dot_dimension_numbers<[1], [0], [0], [1], [0, 0, 1, 1], [], []>} : vector<144x4xbf16>, vector<4x16xbf16>, vector<144x16xf32> -> vector<144x16xf32>
    %108 = arith.addf %102, %107 : vector<144x16xf32>
    %c0_129 = arith.constant 0 : index
    %c0_130 = arith.constant 0 : index
    %109 = vector.load %arg6[%c0_129, %c0_130] : memref<1x16xf32, #tpu.memory_space<vmem>>, vector<1x16xf32>
    %110 = vector.broadcast %109 : vector<1x16xf32> to vector<144x16xf32>
    %111 = arith.addf %108, %110 : vector<144x16xf32>
    %cst_131 = arith.constant 0.000000e+00 : f32
    %112 = vector.broadcast %cst_131 : f32 to vector<144x16xf32>
    %113 = arith.maximumf %111, %112 : vector<144x16xf32>
    %c0_132 = arith.constant 0 : index
    %c0_133 = arith.constant 0 : index
    %c0_134 = arith.constant 0 : index
    %c0_135 = arith.constant 0 : index
    %114 = vector.load %arg7[%c0_132, %c0_133, %c0_134, %c0_135] : memref<1x1x144x16xf32, #tpu.memory_space<vmem>>, vector<1x1x144x16xf32>
    %115 = vector.shape_cast %114 : vector<1x1x144x16xf32> to vector<144x16xf32>
    %116 = vector.shape_cast %113 : vector<144x16xf32> to vector<1x1x144x16xf32>
    tpu.vector_store %arg7[%c0_132, %c0_133, %c0_134, %c0_135], %116 {strides = array<i32>} : memref<1x1x144x16xf32, #tpu.memory_space<vmem>>, vector<1x1x144x16xf32>,
    return
  }
  func.func @transform_0(%arg0: i32, %arg1: i32) -> (i32, i32, i32, i32) {
    %c0_i32 = arith.constant 0 : i32
    %c0_i32_0 = arith.constant 0 : i32
    %c0_i32_1 = arith.constant 0 : i32
    return %arg0, %arg1, %c0_i32, %c0_i32_0 : i32, i32, i32, i32
  }
  func.func @transform_1(%arg0: i32, %arg1: i32) -> (i32, i32, i32, i32) {
    %c0_i32 = arith.constant 0 : i32
    %c0_i32_0 = arith.constant 0 : i32
    %c0_i32_1 = arith.constant 0 : i32
    return %arg0, %arg1, %c0_i32, %c0_i32_0 : i32, i32, i32, i32
  }
  func.func @transform_2(%arg0: i32, %arg1: i32) -> (i32, i32, i32) {
    %c0_i32 = arith.constant 0 : i32
    %c0_i32_0 = arith.constant 0 : i32
    %c0_i32_1 = arith.constant 0 : i32
    %c0_i32_2 = arith.constant 0 : i32
    return %c0_i32, %c0_i32_0, %c0_i32_1 : i32, i32, i32
  }
  func.func @transform_3(%arg0: i32, %arg1: i32) -> (i32, i32, i32) {
    %c0_i32 = arith.constant 0 : i32
    %c0_i32_0 = arith.constant 0 : i32
    %c0_i32_1 = arith.constant 0 : i32
    %c0_i32_2 = arith.constant 0 : i32
    return %c0_i32, %c0_i32_0, %c0_i32_1 : i32, i32, i32
  }
  func.func @transform_4(%arg0: i32, %arg1: i32) -> (i32, i32) {
    %c0_i32 = arith.constant 0 : i32
    %c0_i32_0 = arith.constant 0 : i32
    %c0_i32_1 = arith.constant 0 : i32
    return %c0_i32, %c0_i32_0 : i32, i32
  }
  func.func @transform_5(%arg0: i32, %arg1: i32) -> (i32, i32, i32, i32) {
    %c0_i32 = arith.constant 0 : i32
    %c0_i32_0 = arith.constant 0 : i32
    %c0_i32_1 = arith.constant 0 : i32
    return %arg0, %arg1, %c0_i32, %c0_i32_0 : i32, i32, i32, i32
  }
}

</mosaic_0001>

<bundles_post_ra>
// kernel: tpu_custom_call.1
= control target key start
LH: loop header
LB: loop body
LE: loop exit
PB: predicated region body
PF: predicated region fallthrough
CT: control target
= control target key end

     0   :  { %s5759_s18 = smov 0   ;;  %s5761_s19 = smov 0   ;;  %s7518_s0 = inlined_call_operand.vmem [shape: bf16[2,2,198,8], index: 0, kind: input, shape index: {}]   ;;  %s7519_s1 = inlined_call_operand.vmem [shape: bf16[2,2,198,4], index: 1, kind: input, shape index: {}]   ;;  %s7520_s2 = inlined_call_operand.vmem [shape: bf16[9,8,16], index: 2, kind: input, shape index: {}]   ;;  %s7521_s3 = inlined_call_operand.vmem [shape: bf16[9,4,16], index: 3, kind: input, shape index: {}]   ;;  %s7522_s4 = inlined_call_operand.vmem [shape: f32[1,16], index: 4, kind: input, shape index: {}]   ;;  %s7523_s5 = inlined_call_operand.vmem [shape: f32[2,2,144,16], index: 5, kind: output, shape index: {}]  }
   0x1   :  { %s5763_s20 = smov 0   ;;  %s5765_s21 = smov 0  }
   0x2   :  { %s5767_s22 = smov 0  }
   0x3 LB: > { %s24_s23 = sadd.s32 1, %s5717_s20  ;;  %s27_s24 = sadd.s32 1, %s5721_s21  ;;  %s5725_s22 = sphi %s5767_s22, %s15_s22   ;;  %s5721_s21 = sphi %s5765_s21, %s7527_s21   ;;  %s5717_s20 = sphi %s5763_s20, %s7526_s20   ;;  %s5713_s19 = sphi %s5761_s19, %s7525_s19   ;;  %s5709_s18 = sphi %s5759_s18, %s7524_s18  }
   0x4   : > { %p25_p0 = scmp.ge.s32.totalorder %s24_s23, 2  ;;  %p4434_p1 = scmp.ge.s32.totalorder %s5725_s22, 1 }
   0x5   : > { %p223_p2 = scmp.lt.s32.totalorder %s5725_s22, 5 }
   0x6   : > { %s7529_s23 = smov (%p25_p0, %s24_s23), 0  ;;  %s7531_s24 = smov (!%p25_p0, %s27_s24), %s5721_s21 }
   0x7   : > { %p224_p3 = pnand %p4434_p1, %p223_p2  ;;  %p29_p4 = scmp.ge.s32.totalorder %s7531_s24, 2 }
   0x8   : > { %v4438_v0 = vld [vmem:[%s7520_s2 + $0x4] sm:$0xf] (!%p224_p3)  ;;  %vm471_vm0 = vcmask (!%p224_p3), 1043456   ;;  %v314_v1 = vld [vmem:[%s7520_s2] sm:$0xf] (!%p224_p3)  ;;  %v5727_v2 = vmov (!%p224_p3), 0.0  }
   0x9   : > { %s7533_s24 = smov (%p29_p4, %s7531_s24), 0  ;;  %227 = sbr.rel (%p224_p3) target bundleno = 896 (0x380), region = 40 }
   0xa   : > { %4878 = vmatprep.subr.bf16.mxu0 (!%p224_p3), %v5727_v2  ;;  %4916 = vmatprep.subr.bf16.mxu1 (!%p224_p3), %v5727_v2  ;;  %v473_v3 = vsel (!%p224_p3), %vm471_vm0, %v4438_v0, 0  ;;  %v599_v4 = vsel (!%p224_p3), %vm471_vm0, %v314_v1, 0  ;;  %p268_p5 = scmp.lt.s32.totalorder (!%p224_p3), %s5713_s19, 1  ;;  %p270_p6 = scmp.lt.s32.totalorder (!%p224_p3), %s5709_s18, 1  ;;  %vm5728_vm1 = vmmov (!%p224_p3), 0   ;;  %vm443_vm2 = vcmask (!%p224_p3), 64512  }
   0xb   : > { %4879 = vmatpush3.bf16.msra.mxu0 (!%p224_p3), %v473_v3  ;;  %4917 = vmatpush3.bf16.msra.mxu1 (!%p224_p3), %v599_v4  ;;  %v4478_v5 = vld [vmem:[%s7520_s2 + $0xc] sm:$0xf] (!%p224_p3)  ;;  %v4467_v17 = vld [vmem:[%s7520_s2 + $0x8] sm:$0xf] (!%p224_p3)  ;;  %vm366_vm3 = vsmask.f32 (!%p224_p3), 7424 }
   0xc   : > { %4918 = vmatprep.mubr.msk.bf16.mxu1 (!%p224_p3), %vm5728_vm1, %v5727_v2  ;;  %4880 = vmatprep.mubr.msk.bf16.mxu0 (!%p224_p3), %vm5728_vm1, %v5727_v2  ;;  %v1001_v11 = vsel (!%p224_p3), %vm471_vm0, %v4478_v5, 0  ;;  %v760_v25 = vsel (!%p224_p3), %vm471_vm0, %v4467_v17, 0  ;;  %vm712_vm4 = vcmask (!%p224_p3), 1046528   ;;  %vm1381_vm5 = vcmask (!%p224_p3), 1045504  }
   0xd   : > { %4954 = vmatprep.subr.bf16.mxu0 (!%p224_p3), %v5727_v2  ;;  %4992 = vmatprep.subr.bf16.mxu1 (!%p224_p3), %v5727_v2  ;;  %vm1132_vm6 = vsmask.f32 (!%p224_p3), 6400  ;;  %vm1801_vm7 = vsmask.f32 (!%p224_p3), 5376  ;;  %vm2315_vm8 = vcmask (!%p224_p3), 1041408   ;;  %vm2287_vm9 = vcmask (!%p224_p3), 31744  }
   0xe   : > { %vm2050_vm10 = vcmask (!%p224_p3), 1044480   ;;  %vm4295_vm11 = vcmask (!%p224_p3), 130048  }
  0x10   : > { %s7535_s19 = smov (!%p268_p5, %s5713_s19), 1  ;;  %s7537_s18 = smov (!%p270_p6, %s5709_s18), 1 }
  0x11   : > { %s5563_s29 = smul.u32 50, %s7535_s19 }
  0x12   : > { %s5562_s30 = smul.u32 25, %s7537_s18 }
  0x13   : > { %s5565_s11 = smul.u32 36, %s7535_s19 }
  0x14   : > { %s5819_s6 = sadd.s32 %s5563_s29, %s5562_s30 }
  0x15   : > { %s4435_s7 = sshll.u32 %s5819_s6, 2 }
  0x16   : > { %s5830_s12 = scalar_lea.vmem %s7518_s0, %s4435_s7  ;;  %s5985_s17 = scalar_lea.vmem %s7519_s1, %s4435_s7 }
  0x17   : > { %v296_v6 = vld [vmem:[%s5830_s12] sm:$0xf]  ;;  %v297_v7 = vld [vmem:[%s5830_s12 + $0x4] sm:$0xf]  ;;  %v5610_v10 = vld [vmem:[%s5830_s12 + $0x8] sm:$0xff]  }
  0x18   : > { %v706_v8 = vld [vmem:[%s5830_s12] sm:$0xe]  ;;  %v4439_v9 = vcombine.low %v296_v6, %v297_v7  ;;  %v375_v15 = vshll.u32 %v5610_v10, 16  ;;  %v5611_v16 = vld [vmem:[%s5830_s12 + $0x10] sm:$0xff]   ;;  %v379_v21 = vshrl.u32 %v5610_v10, 16  ;;  %v714_v24 = vrot.slane %v5610_v10, 1 }
  0x19   : > { %v4468_v12 = vcombine.low %v706_v8, %v297_v7  ;;  %v383_v23 = vshll.u32 %v5611_v16, 16  ;;  %v5847_v26 = vld [vmem:[%s5830_s12 + $0x18] sm:$0xff]   ;;  %v5862_v32 = vld [vmem:[%s5830_s12 + $0x20] sm:$0xff]   ;;  %v387_v33 = vshrl.u32 %v5611_v16, 16  ;;  %v5865_v34 = vld [vmem:[%s5830_s12 + $0x28] sm:$0xff]   ;;  %v716_v41 = vrot.slane %v5611_v16, 1 }
  0x1a   : > { %4919 = vmatmul.mubr.msk.bf16.vlgmr.msra.gmra.mrb[0].mxu1 %vm443_vm2, %v4439_v9  ;;  %v368_v13 = vshrl.u32 %v4439_v9, 16  ;;  %v370_v14 = vshll.u32 %v4439_v9, 16  ;;  %v377_v19 = vrot.slane %v375_v15, 1  ;;  %v391_v31 = vshll.u32 %v5847_v26, 16  ;;  %v5869_v36 = vld [vmem:[%s5830_s12 + $0x30] sm:$0xff]   ;;  %v5887_v49 = vld [vmem:[%s5830_s12 + $0x38] sm:$0xff]  }
  0x1b   : > { %4993 = vmatpush3.bf16.msra.mxu1 %v1001_v11  ;;  %4922 = vmatprep.mubr.msk.bf16.mxu1 %vm5728_vm1, %v5727_v2  ;;  %v713_v20 = vrot.slane %v4468_v12, 1  ;;  %v385_v29 = vrot.slane %v383_v23, 1  ;;  %v395_v38 = vshrl.u32 %v5847_v26, 16  ;;  %v399_v39 = vshll.u32 %v5862_v32, 16  ;;  %v885_v51 = vld [vmem:[%s5830_s12 + $0x8] sm:$0xe] }
  0x1c   : > { %v372_v18 = vrot.slane %v370_v14, 1  ;;  %5068 = vmatprep.subr.bf16.mxu1 %v5727_v2  ;;  %v381_v28 = vor.u32 %v379_v21, %v377_v19  ;;  %v393_v37 = vrot.slane %v391_v31, 1  ;;  %v403_v40 = vshrl.u32 %v5862_v32, 16  ;;  %v5890_v50 = vld [vmem:[%s5830_s12 + $0x48] ss:$0 sps:$4 sm:$0x11]  }
  0x1d   : > { %v5854_v30 = vsel %vm712_vm4, %v713_v20, %v714_v24  ;;  %v718_v42 = vrot.slane %v5847_v26, 1  ;;  %v389_v43 = vor.u32 %v387_v33, %v385_v29  ;;  %v407_v44 = vshll.u32 %v5865_v34, 16  ;;  %v886_v56 = vld [vmem:[%s5830_s12 + $0xc] sm:$0xf]  ;;  %v5906_v59 = vld [vmem:[%s5830_s12 + $0x40] sm:$0xff]   ;;  %v5929_v9 = vld [vmem:[%s5830_s12 + $0x10] sm:$0xff]  }
  0x1e   : > { %v373_v22 = vor.u32 %v372_v18, %v368_v13  ;;  %v386_v35 = vsel %vm366_vm3, %v381_v28, %v385_v29  ;;  %v720_v45 = vrot.slane %v5862_v32, 1  ;;  %v411_v46 = vshrl.u32 %v5865_v34, 16  ;;  %v5943_v14 = vld [vmem:[%s5830_s12 + $0x18] sm:$0xff]  }
  0x1f   : > { %v415_v47 = vshll.u32 %v5869_v36, 16  ;;  %v5883_v48 = vsel %vm712_vm4, %v714_v24, %v716_v41  ;;  %v5894_v52 = vsel %vm712_vm4, %v716_v41, %v718_v42  ;;  %v722_v54 = vrot.slane %v5865_v34, 1 }
  0x20   : > { %v378_v27 = vsel %vm366_vm3, %v373_v22, %v377_v19  ;;  %v5897_v53 = vsel %vm712_vm4, %v718_v42, %v720_v45  ;;  %v401_v55 = vrot.slane %v399_v39, 1  ;;  %v724_v57 = vrot.slane %v5869_v36, 1 }
  0x21   : > { %4881 = vmatmul.mubr.msk.bf16.vlgmr.msra.gmra.mrb[0].mxu0 %vm443_vm2, %v378_v27  ;;  %v394_v58 = vsel %vm366_vm3, %v389_v43, %v393_v37  ;;  %v5909_v60 = vsel %vm712_vm4, %v720_v45, %v722_v54  ;;  %v726_v61 = vrot.slane %v5887_v49, 1  ;;  %v397_v62 = vor.u32 %v395_v38, %v393_v37  ;;  %v5967_v43 = vld [vmem:[%s5830_s12 + $0x20] sm:$0xff]  }
  0x22   : > { %4955 = vmatpush3.bf16.msra.mxu0 %v760_v25  ;;  %4884 = vmatprep.mubr.msk.bf16.mxu0 %vm5728_vm1, %v5727_v2  ;;  %v5912_v63 = vrot.slane %v407_v44, 1  ;;  %v419_v0 = vshrl.u32 %v5869_v36, 16  ;;  %v5916_v1 = vsel %vm712_vm4, %v722_v54, %v724_v57  ;;  %v5918_v3 = vrot.slane %v415_v47, 1 }
  0x23   : > { %4923 = vmatmul.mubr.msk.bf16.gmra.mrb[4].mxu1 %vm443_vm2, %v5610_v10  ;;  %5030 = vmatprep.subr.bf16.mxu0 %v5727_v2  ;;  %v5921_v4 = vsel %vm712_vm4, %v724_v57, %v726_v61  ;;  %v728_v5 = vrot.slane %v5906_v59, 1  ;;  %v730_v6 = vrot.slane %v5890_v50, 1  ;;  %v423_v7 = vshll.u32 %v5887_v49, 16  ;;  %v1375_v10 = vld [vmem:[%s5830_s12 + $0x8] sm:$0xc] }
  0x24   : > { %4926 = vmatprep.mubr.msk.bf16.mxu1 %vm5728_vm1, %v5727_v2  ;;  %v5926_v8 = vcombine.low %v885_v51, %v886_v56  ;;  %v427_v11 = vshrl.u32 %v5887_v49, 16  ;;  %v4510_v15 = vcombine.low %v1375_v10, %v886_v56  ;;  %v402_v19 = vsel %vm366_vm3, %v397_v62, %v401_v55 }
  0x25   : > { %v5935_v12 = vsel %vm712_vm4, %v726_v61, %v728_v5  ;;  %v5938_v13 = vsel %vm712_vm4, %v728_v5, %v730_v6  ;;  %v1142_v20 = vshrl.u32 %v5929_v9, 16  ;;  %v1145_v21 = vshll.u32 %v5929_v9, 16  ;;  %v6000_v5 = vld [vmem:[%s5830_s12 + $0x28] sm:$0xff]  }
  0x26   : > { %v1134_v17 = vshrl.u32 %v5926_v8, 16  ;;  %v1137_v18 = vshll.u32 %v5926_v8, 16  ;;  %v431_v22 = vshll.u32 %v5906_v59, 16  ;;  %v1382_v23 = vrot.slane %v4510_v15, 2 }
  0x27   : > { %v1144_v27 = vrot.slane %v1142_v20, 1  ;;  %v1147_v28 = vrot.slane %v1145_v21, 2  ;;  %v1151_v29 = vshrl.u32 %v5943_v14, 16  ;;  %v435_v31 = vshrl.u32 %v5906_v59, 16 }
  0x28   : > { %v1136_v24 = vrot.slane %v1134_v17, 1  ;;  %v1139_v25 = vrot.slane %v1137_v18, 2  ;;  %v1154_v37 = vshll.u32 %v5943_v14, 16  ;;  %v425_v38 = vrot.slane %v423_v7, 1 }
  0x29   : > { %4885 = vmatmul.mubr.msk.bf16.gmra.mrb[4].mxu0 %vm443_vm2, %v386_v35  ;;  %v1148_v39 = vor.u32 %v1147_v28, %v1144_v27  ;;  %v1153_v42 = vrot.slane %v1151_v29, 1  ;;  %v405_v45 = vor.u32 %v403_v40, %v401_v55  ;;  %v1387_v54 = vrot.slane %v5967_v43, 2 }
  0x2a   : > { %4888 = vmatprep.mubr.msk.bf16.mxu0 %vm5728_vm1, %v5727_v2  ;;  %v1140_v35 = vor.u32 %v1139_v25, %v1136_v24  ;;  %v1156_v44 = vrot.slane %v1154_v37, 2  ;;  %v1160_v56 = vshrl.u32 %v5967_v43, 16  ;;  %v1163_v57 = vshll.u32 %v5967_v43, 16 }
  0x2b   : > { %4927 = vmatmul.mubr.msk.bf16.gmra.mrb[8].mxu1 %vm443_vm2, %v5611_v16  ;;  %v1383_v16 = vrot.slane %v5929_v9, 2  ;;  %v410_v62 = vsel %vm366_vm3, %v405_v45, %v5912_v63  ;;  %v413_v7 = vor.u32 %v411_v46, %v5912_v63  ;;  %v439_v10 = vshll.u32 %v5890_v50, 16 }
  0x2c   : > { %4930 = vmatprep.mubr.msk.bf16.mxu1 %vm5728_vm1, %v5727_v2  ;;  %v5973_v47 = vsel %vm1132_vm6, %v1140_v35, %v1148_v39  ;;  %v1157_v51 = vor.u32 %v1156_v44, %v1153_v42  ;;  %v1165_v61 = vrot.slane %v1163_v57, 2  ;;  %v1389_v15 = vrot.slane %v6000_v5, 2 }
  0x2d   : > { %v5960_v33 = vsel %vm1381_vm5, %v1382_v23, %v1383_v16  ;;  %v1172_v17 = vshll.u32 %v6000_v5, 16  ;;  %v418_v50 = vsel %vm366_vm3, %v413_v7, %v5918_v3  ;;  %v433_v23 = vrot.slane %v431_v22, 1  ;;  %v6048_v22 = vld [vmem:[%s5830_s12 + $0x38] sm:$0xff]  }
  0x2e   : > { %v5992_v40 = vsel %vm1132_vm6, %v1148_v39, %v1157_v51  ;;  %v6020_v18 = vsel %vm1381_vm5, %v1387_v54, %v1389_v15  ;;  %v1393_v37 = vrot.slane %v6048_v22, 2  ;;  %v1187_v39 = vshrl.u32 %v6048_v22, 16 }
  0x2f   : > { %v1174_v63 = vrot.slane %v1172_v17, 2  ;;  %v1190_v42 = vshll.u32 %v6048_v22, 16  ;;  %v441_v57 = vrot.slane %v439_v10, 1  ;;  %v954_v7 = vrot.slane %v5926_v8, 1  ;;  %v4509_v17 = vld [vmem:[%s7520_s2 + $0x14] sm:$0xf] }
  0x30   : > { %v1189_v45 = vrot.slane %v1187_v39, 1  ;;  %v1429_v8 = vsel %vm471_vm0, %v4509_v17, 0 }
  0x31   : > { %4889 = vmatmul.mubr.msk.bf16.gmra.mrb[8].mxu0 %vm443_vm2, %v394_v58  ;;  %v1162_v58 = vrot.slane %v1160_v56, 1 }
  0x32   : > { %4892 = vmatprep.mubr.msk.bf16.mxu0 %vm5728_vm1, %v5727_v2 }
  0x33   : > { %4931 = vmatmul.mubr.msk.bf16.gmra.mrb[12].mxu1 %vm443_vm2, %v5847_v26  ;;  %v1385_v26 = vrot.slane %v5943_v14, 2  ;;  %v1166_v6 = vor.u32 %v1165_v61, %v1162_v58 }
  0x34   : > { %4934 = vmatprep.mubr.msk.bf16.mxu1 %vm5728_vm1, %v5727_v2 }
  0x35   : > { %v5964_v41 = vsel %vm1381_vm5, %v1383_v16, %v1385_v26  ;;  %v5995_v55 = vsel %vm1381_vm5, %v1385_v26, %v1387_v54  ;;  %v1169_v16 = vshrl.u32 %v6000_v5, 16 }
  0x37   : > { %v1171_v46 = vrot.slane %v1169_v16, 1 }
  0x39   : > { %4893 = vmatmul.mubr.msk.bf16.gmra.mrb[12].mxu0 %vm443_vm2, %v402_v19  ;;  %v6025_v19 = vld [vmem:[%s5830_s12 + $0x30] sm:$0xff]   ;;  %v1175_v20 = vor.u32 %v1174_v63, %v1171_v46 }
  0x3a   : > { %4896 = vmatprep.mubr.msk.bf16.mxu0 %vm5728_vm1, %v5727_v2  ;;  %v1391_v24 = vrot.slane %v6025_v19, 2  ;;  %v1178_v25 = vshrl.u32 %v6025_v19, 16  ;;  %v1181_v27 = vshll.u32 %v6025_v19, 16 }
  0x3b   : > { %4935 = vmatmul.mubr.msk.bf16.gmra.mrb[16].mxu1 %vm443_vm2, %v5862_v32  ;;  %v6003_v32 = vsel %vm1132_vm6, %v1157_v51, %v1166_v6  ;;  %v6028_v21 = vsel %vm1132_vm6, %v1166_v6, %v1175_v20  ;;  %v1192_v51 = vrot.slane %v1190_v42, 2  ;;  %v955_v6 = vrot.slane %v5929_v9, 1  ;;  %v6098_v9 = vld [vmem:[%s5830_s12 + $0x48] sm:$0xff]   ;;  %v5628_v42 = vld [vmem:[%s5830_s12 + $0x50] ss:$0 sps:$4 sm:$0x11]  }
  0x3c   : > { %4938 = vmatprep.mubr.msk.bf16.mxu1 %vm5728_vm1, %v5727_v2  ;;  %v6044_v28 = vsel %vm1381_vm5, %v1389_v15, %v1391_v24  ;;  %v6066_v44 = vsel %vm1381_vm5, %v1391_v24, %v1393_v37  ;;  %v957_v24 = vrot.slane %v5943_v14, 1  ;;  %v959_v14 = vrot.slane %v5967_v43, 1 }
  0x41   : > { %4897 = vmatmul.mubr.msk.bf16.gmra.mrb[16].mxu0 %vm443_vm2, %v410_v62 }
  0x42   : > { %4900 = vmatprep.mubr.msk.bf16.mxu0 %vm5728_vm1, %v5727_v2 }
  0x43   : > { %4939 = vmatmul.mubr.msk.bf16.gmra.mrb[20].mxu1 %vm443_vm2, %v5865_v34  ;;  %v421_v34 = vor.u32 %v419_v0, %v5918_v3  ;;  %v1180_v0 = vrot.slane %v1178_v25, 1  ;;  %v1183_v3 = vrot.slane %v1181_v27, 2 }
  0x44   : > { %4942 = vmatprep.mubr.msk.bf16.mxu1 %vm5728_vm1, %v5727_v2 }
  0x45   : > { %v426_v26 = vsel %vm366_vm3, %v421_v34, %v425_v38  ;;  %v1184_v29 = vor.u32 %v1183_v3, %v1180_v0  ;;  %v1208_v34 = vshll.u32 %v6098_v9, 16 }
  0x47   : > { %v6051_v35 = vsel %vm1132_vm6, %v1175_v20, %v1184_v29  ;;  %v1205_v20 = vshrl.u32 %v6098_v9, 16  ;;  %v1210_v0 = vrot.slane %v1208_v34, 2  ;;  %v6309_v34 = vld [vmem:[%s5830_s12 + $0x28] sm:$0xff]  }
  0x49   : > { %4901 = vmatmul.mubr.msk.bf16.gmra.mrb[20].mxu0 %vm443_vm2, %v418_v50  ;;  %v1397_v50 = vrot.slane %v6098_v9, 2  ;;  %v1207_v27 = vrot.slane %v1205_v20, 1 }
  0x4a   : > { %4904 = vmatprep.mubr.msk.bf16.mxu0 %vm5728_vm1, %v5727_v2 }
  0x4b   : > { %4943 = vmatmul.mubr.msk.bf16.gmra.mrb[24].mxu1 %vm443_vm2, %v5869_v36  ;;  %v429_v36 = vor.u32 %v427_v11, %v425_v38  ;;  %v1193_v11 = vor.u32 %v1192_v51, %v1189_v45  ;;  %v6070_v38 = vld [vmem:[%s5830_s12 + $0x40] sm:$0xff]   ;;  %v6123_v3 = vor.u32 %v1210_v0, %v1207_v27 }
  0x4c   : > { %4946 = vmatprep.mubr.msk.bf16.mxu1 %vm5728_vm1, %v5727_v2  ;;  %v1395_v58 = vrot.slane %v6070_v38, 2  ;;  %v1196_v61 = vshrl.u32 %v6070_v38, 16  ;;  %v1199_v62 = vshll.u32 %v6070_v38, 16  ;;  %v4551_v0 = vld [vmem:[%s7520_s2 + $0x20] sm:$0xf] }
  0x4d   : > { %v434_v54 = vsel %vm366_vm3, %v429_v36, %v433_v23  ;;  %v6073_v56 = vsel %vm1132_vm6, %v1184_v29, %v1193_v11  ;;  %v958_v29 = vsel %vm712_vm4, %v955_v6, %v957_v24 }
  0x4e   : > { %v6090_v10 = vsel %vm1381_vm5, %v1393_v37, %v1395_v58  ;;  %v1201_v15 = vrot.slane %v1199_v62, 2  ;;  %v6120_v25 = vsel %vm1381_vm5, %v1395_v58, %v1397_v50  ;;  %v960_v37 = vsel %vm712_vm4, %v957_v24, %v959_v14  ;;  %v6291_v62 = vld [vmem:[%s5830_s12 + $0x20] sm:$0xff]  }
  0x51   : > { %4905 = vmatmul.mubr.msk.bf16.gmra.mrb[24].mxu0 %vm443_vm2, %v426_v26 }
  0x52   : > { %4908 = vmatprep.mubr.msk.bf16.mxu0 %vm5728_vm1, %v5727_v2 }
  0x53   : > { %4947 = vmatmul.mubr.msk.bf16.gmra.mrb[28].mxu1 %vm443_vm2, %v5887_v49  ;;  %v437_v49 = vor.u32 %v435_v31, %v433_v23  ;;  %v1198_v31 = vrot.slane %v1196_v61, 1  ;;  %v4498_v23 = vld [vmem:[%s7520_s2 + $0x10] sm:$0xf] }
  0x54   : > { %4950 = vmatprep.mubr.msk.bf16.mxu1 %vm5728_vm1, %v5727_v2  ;;  %v1250_v26 = vsel %vm471_vm0, %v4498_v23, 0 }
  0x55   : > { %v442_v16 = vsel %vm366_vm3, %v437_v49, %v441_v57  ;;  %v1202_v46 = vor.u32 %v1201_v15, %v1198_v31  ;;  %v1820_v31 = vshrl.u32 %v6291_v62, 16  ;;  %v1823_v15 = vshll.u32 %v6291_v62, 16 }
  0x57   : > { %v6101_v63 = vsel %vm1132_vm6, %v1193_v11, %v1202_v46  ;;  %v6129_v36 = vsel %vm1132_vm6, %v1202_v46, %v6123_v3  ;;  %v1825_v20 = vrot.slane %v1823_v15, 3 }
  0x59   : > { %4909 = vmatmul.mubr.msk.bf16.gmra.mrb[28].mxu0 %vm443_vm2, %v434_v54 }
  0x5a   : > { %4912 = vmatprep.mubr.msk.bf16.mxu0 %vm5728_vm1, %v5727_v2 }
  0x5b   : > { %4951 = vmatmul.mubr.msk.bf16.gmra.mrb[32].mxu1 %vm443_vm2, %v5906_v59  ;;  %v956_v59 = vsel %vm712_vm4, %v954_v7, %v955_v6 }
  0x5c   : > { %4994 = vmatprep.mubr.msk.bf16.mxu1 %vm5728_vm1, %v5727_v2 }
  0x61   : > { %4913 = vmatmul.mubr.msk.bf16.gmra.mrb[32].mxu0 %vm443_vm2, %v442_v16 }
  0x62   : > { %4956 = vmatprep.mubr.msk.bf16.mxu0 %vm5728_vm1, %v5727_v2 }
  0x63   : > { %4995 = vmatmul.mubr.msk.bf16.vlgmr.msra.gmra.mrb[36].mxu1 %vm443_vm2, %v956_v59  ;;  %v2241_v59 = vld [vmem:[%s7521_s3] sm:$0x3] }
  0x64   : > { %5069 = vmatpush3.bf16.msra.mxu1 %v1429_v8  ;;  %4998 = vmatprep.mubr.msk.bf16.mxu1 %vm5728_vm1, %v5727_v2  ;;  %v2317_v23 = vsel %vm2315_vm8, %v2241_v59, 0 }
  0x65   : > { %5144 = vmatprep.subr.bf16.mxu1 %v5727_v2 }
  0x69   : > { %4957 = vmatmul.mubr.msk.bf16.vlgmr.msra.gmra.mrb[36].mxu0 %vm443_vm2, %v5854_v30  ;;  %v961_v30 = vrot.slane %v6000_v5, 1 }
  0x6a   : > { %5031 = vmatpush3.bf16.msra.mxu0 %v1250_v26  ;;  %4960 = vmatprep.mubr.msk.bf16.mxu0 %vm5728_vm1, %v5727_v2  ;;  %v1829_v26 = vshrl.u32 %v6309_v34, 16 }
  0x6b   : > { %4999 = vmatmul.mubr.msk.bf16.gmra.mrb[40].mxu1 %vm443_vm2, %v958_v29  ;;  %5106 = vmatprep.subr.bf16.mxu0 %v5727_v2  ;;  %v962_v39 = vsel %vm712_vm4, %v959_v14, %v961_v30  ;;  %v1832_v29 = vshll.u32 %v6309_v34, 16 }
  0x6c   : > { %5002 = vmatprep.mubr.msk.bf16.mxu1 %vm5728_vm1, %v5727_v2 }
  0x71   : > { %4961 = vmatmul.mubr.msk.bf16.gmra.mrb[40].mxu0 %vm443_vm2, %v5883_v48  ;;  %v963_v48 = vrot.slane %v6025_v19, 1 }
  0x72   : > { %4964 = vmatprep.mubr.msk.bf16.mxu0 %vm5728_vm1, %v5727_v2 }
  0x73   : > { %5003 = vmatmul.mubr.msk.bf16.gmra.mrb[44].mxu1 %vm443_vm2, %v960_v37  ;;  %v964_v43 = vsel %vm712_vm4, %v961_v30, %v963_v48 }
  0x74   : > { %5006 = vmatprep.mubr.msk.bf16.mxu1 %vm5728_vm1, %v5727_v2 }
  0x79   : > { %4965 = vmatmul.mubr.msk.bf16.gmra.mrb[44].mxu0 %vm443_vm2, %v5894_v52  ;;  %v965_v52 = vrot.slane %v6048_v22, 1 }
  0x7a   : > { %4968 = vmatprep.mubr.msk.bf16.mxu0 %vm5728_vm1, %v5727_v2 }
  0x7b   : > { %5007 = vmatmul.mubr.msk.bf16.gmra.mrb[48].mxu1 %vm443_vm2, %v962_v39  ;;  %v966_v5 = vsel %vm712_vm4, %v963_v48, %v965_v52 }
  0x7c   : > { %5010 = vmatprep.mubr.msk.bf16.mxu1 %vm5728_vm1, %v5727_v2 }
  0x81   : > { %4969 = vmatmul.mubr.msk.bf16.gmra.mrb[48].mxu0 %vm443_vm2, %v5897_v53  ;;  %v967_v53 = vrot.slane %v6070_v38, 1 }
  0x82   : > { %4972 = vmatprep.mubr.msk.bf16.mxu0 %vm5728_vm1, %v5727_v2 }
  0x83   : > { %5011 = vmatmul.mubr.msk.bf16.gmra.mrb[52].mxu1 %vm443_vm2, %v964_v43  ;;  %v968_v19 = vsel %vm712_vm4, %v965_v52, %v967_v53  ;;  %v2098_v52 = vsel %vm471_vm0, %v4551_v0, 0 }
  0x84   : > { %5014 = vmatprep.mubr.msk.bf16.mxu1 %vm5728_vm1, %v5727_v2 }
  0x89   : > { %4973 = vmatmul.mubr.msk.bf16.gmra.mrb[52].mxu0 %vm443_vm2, %v5909_v60  ;;  %v969_v60 = vrot.slane %v6098_v9, 1 }
  0x8a   : > { %4976 = vmatprep.mubr.msk.bf16.mxu0 %vm5728_vm1, %v5727_v2 }
  0x8b   : > { %5015 = vmatmul.mubr.msk.bf16.gmra.mrb[56].mxu1 %vm443_vm2, %v966_v5  ;;  %v970_v22 = vsel %vm712_vm4, %v967_v53, %v969_v60 }
  0x8c   : > { %5018 = vmatprep.mubr.msk.bf16.mxu1 %vm5728_vm1, %v5727_v2 }
  0x91   : > { %4977 = vmatmul.mubr.msk.bf16.gmra.mrb[56].mxu0 %vm443_vm2, %v5916_v1  ;;  %v971_v1 = vrot.slane %v5628_v42, 1  ;;  %v6333_v42 = vld [vmem:[%s5830_s12 + $0x30] sm:$0xff]  }
  0x92   : > { %4980 = vmatprep.mubr.msk.bf16.mxu0 %vm5728_vm1, %v5727_v2 }
  0x93   : > { %5019 = vmatmul.mubr.msk.bf16.gmra.mrb[60].mxu1 %vm443_vm2, %v968_v19  ;;  %v972_v45 = vsel %vm712_vm4, %v969_v60, %v971_v1  ;;  %v1831_v60 = vrot.slane %v1829_v26, 2 }
  0x94   : > { %5022 = vmatprep.mubr.msk.bf16.mxu1 %vm5728_vm1, %v5727_v2 }
  0x99   : > { %4981 = vmatmul.mubr.msk.bf16.gmra.mrb[60].mxu0 %vm443_vm2, %v5921_v4  ;;  %v4540_v4 = vld [vmem:[%s7520_s2 + $0x1c] sm:$0xf] }
  0x9a   : > { %4984 = vmatprep.mubr.msk.bf16.mxu0 %vm5728_vm1, %v5727_v2  ;;  %v1919_v51 = vsel %vm471_vm0, %v4540_v4, 0 }
  0x9b   : > { %5023 = vmatmul.mubr.msk.bf16.gmra.mrb[64].mxu1 %vm443_vm2, %v970_v22  ;;  %v1834_v22 = vrot.slane %v1832_v29, 3 }
  0x9c   : > { %5026 = vmatprep.mubr.msk.bf16.mxu1 %vm5728_vm1, %v5727_v2 }
  0xa1   : > { %4985 = vmatmul.mubr.msk.bf16.gmra.mrb[64].mxu0 %vm443_vm2, %v5935_v12  ;;  %v4520_v12 = vld [vmem:[%s7520_s2 + $0x18] sm:$0xf] }
  0xa2   : > { %4988 = vmatprep.mubr.msk.bf16.mxu0 %vm5728_vm1, %v5727_v2 }
  0xa3   : > { %5027 = vmatmul.mubr.msk.bf16.gmra.mrb[68].mxu1 %vm443_vm2, %v972_v45  ;;  %v1626_v45 = vrot.slane %v6291_v62, 2 }
  0xa4   : > { %5070 = vmatprep.mubr.msk.bf16.mxu1 %vm5728_vm1, %v5727_v2 }
  0xa9   : > { %4989 = vmatmul.mubr.msk.bf16.gmra.mrb[68].mxu0 %vm443_vm2, %v5938_v13  ;;  %v1670_v13 = vsel %vm471_vm0, %v4520_v12, 0  ;;  %v1838_v12 = vshrl.u32 %v6333_v42, 16 }
  0xaa   : > { %5032 = vmatprep.mubr.msk.bf16.mxu0 %vm5728_vm1, %v5727_v2 }
  0xab   : > { %5071 = vmatmul.mubr.msk.bf16.vlgmr.msra.gmra.mrb[72].mxu1 %vm443_vm2, %v5960_v33  ;;  %v1554_v33 = vld [vmem:[%s5830_s12 + $0x10] sm:$0xc] }
  0xac   : > { %5145 = vmatpush3.bf16.msra.mxu1 %v1919_v51  ;;  %5074 = vmatprep.mubr.msk.bf16.mxu1 %vm5728_vm1, %v5727_v2  ;;  %v1835_v51 = vor.u32 %v1834_v22, %v1831_v60 }
  0xad   : > { %5220 = vmatprep.subr.bf16.mxu1 %v5727_v2 }
  0xb1   : > { %5033 = vmatmul.mubr.msk.bf16.vlgmr.msra.gmra.mrb[72].mxu0 %vm443_vm2, %v5973_v47  ;;  %v5630_v47 = vld [vmem:[%s5830_s12 + $0x50] ss:$0 sps:$4 sm:$0x33]  }
  0xb2   : > { %5107 = vmatpush3.bf16.msra.mxu0 %v1670_v13  ;;  %5036 = vmatprep.mubr.msk.bf16.mxu0 %vm5728_vm1, %v5727_v2  ;;  %v1841_v13 = vshll.u32 %v6333_v42, 16 }
  0xb3   : > { %5075 = vmatmul.mubr.msk.bf16.gmra.mrb[76].mxu1 %vm443_vm2, %v5964_v41  ;;  %5182 = vmatprep.subr.bf16.mxu0 %v5727_v2  ;;  %v6270_v41 = vld [vmem:[%s5830_s12 + $0x14] sm:$0xf] }
  0xb4   : > { %5078 = vmatprep.mubr.msk.bf16.mxu1 %vm5728_vm1, %v5727_v2 }
  0xb9   : > { %5037 = vmatmul.mubr.msk.bf16.gmra.mrb[76].mxu0 %vm443_vm2, %v5992_v40  ;;  %v4521_v40 = vcombine.low %v1554_v33, %v6270_v41 }
  0xba   : > { %5040 = vmatprep.mubr.msk.bf16.mxu0 %vm5728_vm1, %v5727_v2 }
  0xbb   : > { %5079 = vmatmul.mubr.msk.bf16.gmra.mrb[80].mxu1 %vm443_vm2, %v5995_v55  ;;  %v6275_v55 = vld [vmem:[%s5830_s12 + $0x18] sm:$0xff]   ;;  %v1623_v24 = vrot.slane %v4521_v40, 2 }
  0xbc   : > { %5082 = vmatprep.mubr.msk.bf16.mxu1 %vm5728_vm1, %v5727_v2  ;;  %v1814_v54 = vshll.u32 %v6275_v55, 16 }
  0xbe   : > { %v1816_v61 = vrot.slane %v1814_v54, 3 }
  0xc1   : > { %5041 = vmatmul.mubr.msk.bf16.gmra.mrb[80].mxu0 %vm443_vm2, %v6003_v32  ;;  %v1214_v32 = vshrl.u32 %v5630_v47, 16 }
  0xc2   : > { %5044 = vmatprep.mubr.msk.bf16.mxu0 %vm5728_vm1, %v5727_v2 }
  0xc3   : > { %5083 = vmatmul.mubr.msk.bf16.gmra.mrb[84].mxu1 %vm443_vm2, %v6020_v18  ;;  %v1217_v18 = vshll.u32 %v5630_v47, 16  ;;  %v1216_v11 = vrot.slane %v1214_v32, 1 }
  0xc4   : > { %5086 = vmatprep.mubr.msk.bf16.mxu1 %vm5728_vm1, %v5727_v2 }
  0xc5   : > { %v1219_v38 = vrot.slane %v1217_v18, 2 }
  0xc7   : > { %v1220_v6 = vor.u32 %v1219_v38, %v1216_v11  ;;  %v1840_v11 = vrot.slane %v1838_v12, 2  ;;  %v1843_v38 = vrot.slane %v1841_v13, 3 }
  0xc9   : > { %5045 = vmatmul.mubr.msk.bf16.gmra.mrb[84].mxu0 %vm443_vm2, %v6028_v21  ;;  %v1399_v21 = vrot.slane %v5630_v47, 2  ;;  %v1221_v17 = vsel %vm1132_vm6, %v6123_v3, %v1220_v6 }
  0xca   : > { %5048 = vmatprep.mubr.msk.bf16.mxu0 %vm5728_vm1, %v5727_v2 }
  0xcb   : > { %5087 = vmatmul.mubr.msk.bf16.gmra.mrb[88].mxu1 %vm443_vm2, %v6044_v28  ;;  %v1803_v28 = vshrl.u32 %v4521_v40, 16 }
  0xcc   : > { %5090 = vmatprep.mubr.msk.bf16.mxu1 %vm5728_vm1, %v5727_v2 }
  0xcd   : > { %v1805_v57 = vrot.slane %v1803_v28, 2 }
  0xd1   : > { %5049 = vmatmul.mubr.msk.bf16.gmra.mrb[88].mxu0 %vm443_vm2, %v6051_v35  ;;  %v1806_v35 = vshll.u32 %v4521_v40, 16 }
  0xd2   : > { %5052 = vmatprep.mubr.msk.bf16.mxu0 %vm5728_vm1, %v5727_v2 }
  0xd3   : > { %5091 = vmatmul.mubr.msk.bf16.gmra.mrb[92].mxu1 %vm443_vm2, %v6066_v44  ;;  %v1811_v44 = vshrl.u32 %v6275_v55, 16  ;;  %v1808_v49 = vrot.slane %v1806_v35, 3 }
  0xd4   : > { %5094 = vmatprep.mubr.msk.bf16.mxu1 %vm5728_vm1, %v5727_v2 }
  0xd5   : > { %v1813_v58 = vrot.slane %v1811_v44, 2  ;;  %v1809_v7 = vor.u32 %v1808_v49, %v1805_v57  ;;  %v1628_v49 = vrot.slane %v6309_v34, 2 }
  0xd9   : > { %5053 = vmatmul.mubr.msk.bf16.gmra.mrb[92].mxu0 %vm443_vm2, %v6073_v56  ;;  %v1400_v56 = vsel %vm1381_vm5, %v1397_v50, %v1399_v21  ;;  %v1822_v50 = vrot.slane %v1820_v31, 2 }
  0xda   : > { %5056 = vmatprep.mubr.msk.bf16.mxu0 %vm5728_vm1, %v5727_v2 }
  0xdb   : > { %5095 = vmatmul.mubr.msk.bf16.gmra.mrb[96].mxu1 %vm443_vm2, %v6090_v10  ;;  %v1817_v10 = vor.u32 %v1816_v61, %v1813_v58  ;;  %v1826_v3 = vor.u32 %v1825_v20, %v1822_v50  ;;  %v1844_v61 = vor.u32 %v1843_v38, %v1840_v11 }
  0xdc   : > { %5098 = vmatprep.mubr.msk.bf16.mxu1 %vm5728_vm1, %v5727_v2 }
  0xdd   : > { %v1818_v8 = vsel %vm1801_vm7, %v1809_v7, %v1817_v10  ;;  %v1827_v19 = vsel %vm1801_vm7, %v1817_v10, %v1826_v3  ;;  %v1836_v54 = vsel %vm1801_vm7, %v1826_v3, %v1835_v51 }
  0xe1   : > { %5057 = vmatmul.mubr.msk.bf16.gmra.mrb[96].mxu0 %vm443_vm2, %v6101_v63 }
  0xe2   : > { %5060 = vmatprep.mubr.msk.bf16.mxu0 %vm5728_vm1, %v5727_v2 }
  0xe3   : > { %5099 = vmatmul.mubr.msk.bf16.gmra.mrb[100].mxu1 %vm443_vm2, %v6120_v25  ;;  %v1624_v25 = vrot.slane %v6275_v55, 2 }
  0xe4   : > { %5102 = vmatprep.mubr.msk.bf16.mxu1 %vm5728_vm1, %v5727_v2 }
  0xe5   : > { %v1625_v30 = vsel %vm1381_vm5, %v1623_v24, %v1624_v25  ;;  %v1627_v32 = vsel %vm1381_vm5, %v1624_v25, %v1626_v45  ;;  %v1630_v25 = vrot.slane %v6333_v42, 2 }
  0xe9   : > { %5061 = vmatmul.mubr.msk.bf16.gmra.mrb[100].mxu0 %vm443_vm2, %v6129_v36 }
  0xea   : > { %5064 = vmatprep.mubr.msk.bf16.mxu0 %vm5728_vm1, %v5727_v2 }
  0xeb   : > { %5103 = vmatmul.mubr.msk.bf16.gmra.mrb[104].mxu1 %vm443_vm2, %v1400_v56  ;;  %v6352_v56 = vld [vmem:[%s5830_s12 + $0x38] sm:$0xff]  }
  0xec   : > { %5146 = vmatprep.mubr.msk.bf16.mxu1 %vm5728_vm1, %v5727_v2  ;;  %v1847_v6 = vshrl.u32 %v6352_v56, 16  ;;  %v1850_v7 = vshll.u32 %v6352_v56, 16 }
  0xed   : > { %v635_v16 = vpop.f32.mrb[0].mxu1 }
  0xee   : > { %v4920_v46 = vpop.f32.mrb[1].mxu1  ;;  %v1849_v50 = vrot.slane %v1847_v6, 2  ;;  %v1852_v20 = vrot.slane %v1850_v7, 3 }
  0xef   : > { %v638_v9 = vpop.f32.mrb[2].mxu1 }
  0xf0   : > { %v4921_v63 = vpop.f32.mrb[3].mxu1  ;;  %v1853_v0 = vor.u32 %v1852_v20, %v1849_v50 }
  0xf1   : > { %5065 = vmatmul.mubr.msk.bf16.gmra.mrb[104].mxu0 %vm443_vm2, %v1221_v17 }
  0xf2   : > { %5108 = vmatprep.mubr.msk.bf16.mxu0 %vm5728_vm1, %v5727_v2 }
  0xf3   : > { %5147 = vmatmul.mubr.msk.bf16.vlgmr.msra.gmra.mrb[108].mxu1 %vm443_vm2, %v1818_v8  ;;  %v1845_v8 = vsel %vm1801_vm7, %v1835_v51, %v1844_v61 }
  0xf4   : > { %v509_v27 = vpop.f32.mrb[0].mxu0  ;;  %5221 = vmatpush3.bf16.msra.mxu1 %v2317_v23  ;;  %5150 = vmatprep.mubr.msk.bf16.mxu1 %vm5728_vm1, %v5727_v2  ;;  %v6370_v23 = vld [vmem:[%s5830_s12 + $0x40] sm:$0xff]  }
  0xf5   : > { %v6324_v36 = vadd.f32 %v635_v16, %v509_v27  ;;  %v4882_v14 = vpop.f32.mrb[1].mxu0  ;;  %5296 = vmatprep.subr.bf16.mxu1 %v5727_v2  ;;  %v1629_v16 = vsel %vm1381_vm5, %v1626_v45, %v1628_v49  ;;  %v1856_v3 = vshrl.u32 %v6370_v23, 16  ;;  %v1859_v26 = vshll.u32 %v6370_v23, 16 }
  0xf6   : > { %v512_v37 = vpop.f32.mrb[2].mxu0  ;;  %v643_v39 = vpop.f32.mrb[4].mxu1  ;;  %v1634_v7 = vrot.slane %v6370_v23, 2 }
  0xf7   : > { %v6328_v48 = vadd.f32 %v638_v9, %v512_v37  ;;  %v4883_v43 = vpop.f32.mrb[3].mxu0  ;;  %v4924_v5 = vpop.f32.mrb[5].mxu1  ;;  %v1858_v60 = vrot.slane %v1856_v3, 2  ;;  %v1861_v22 = vrot.slane %v1859_v26, 3 }
  0xf8   : > { %v646_v53 = vpop.f32.mrb[6].mxu1 }
  0xf9   : > { %5109 = vmatmul.mubr.msk.bf16.vlgmr.msra.gmra.mrb[108].mxu0 %vm443_vm2, %v1625_v30  ;;  %v4925_v1 = vpop.f32.mrb[7].mxu1  ;;  %v1631_v30 = vsel %vm1381_vm5, %v1628_v49, %v1630_v25  ;;  %v1862_v12 = vor.u32 %v1861_v22, %v1858_v60 }
  0xfa   : > { %5183 = vmatpush3.bf16.msra.mxu0 %v2098_v52  ;;  %5112 = vmatprep.mubr.msk.bf16.mxu0 %vm5728_vm1, %v5727_v2  ;;  %v6388_v1 = vld [vmem:[%s5830_s12 + $0x48] sm:$0xff]  }
  0xfb   : > { %5151 = vmatmul.mubr.msk.bf16.gmra.mrb[112].mxu1 %vm443_vm2, %v1827_v19  ;;  %5258 = vmatprep.subr.bf16.mxu0 %v5727_v2  ;;  %v1854_v19 = vsel %vm1801_vm7, %v1844_v61, %v1853_v0  ;;  %v1865_v13 = vshrl.u32 %v6388_v1, 16  ;;  %v6406_v61 = vld [vmem:[%s5830_s12 + $0x50] sm:$0xff]  }
  0xfc   : > { %v517_v4 = vpop.f32.mrb[4].mxu0  ;;  %5154 = vmatprep.mubr.msk.bf16.mxu1 %vm5728_vm1, %v5727_v2 }
  0xfd   : > { %v6345_v33 = vadd.f32 %v643_v39, %v517_v4  ;;  %v4886_v47 = vpop.f32.mrb[5].mxu0  ;;  %v1632_v4 = vrot.slane %v6352_v56, 2  ;;  %v1867_v49 = vrot.slane %v1865_v13, 2 }
  0xfe   : > { %v520_v40 = vpop.f32.mrb[6].mxu0  ;;  %v651_v18 = vpop.f32.mrb[8].mxu1  ;;  %v1868_v47 = vshll.u32 %v6388_v1, 16 }
  0xff   : > { %v6348_v21 = vadd.f32 %v646_v53, %v520_v40  ;;  %v4887_v28 = vpop.f32.mrb[7].mxu0  ;;  %v4928_v35 = vpop.f32.mrb[9].mxu1 }
 0x100   : > { %v654_v44 = vpop.f32.mrb[10].mxu1  ;;  %v1633_v28 = vsel %vm1381_vm5, %v1630_v25, %v1632_v4 }
 0x101   : > { %5113 = vmatmul.mubr.msk.bf16.gmra.mrb[112].mxu0 %vm443_vm2, %v1627_v32  ;;  %v4929_v57 = vpop.f32.mrb[11].mxu1 }
 0x102   : > { %5116 = vmatprep.mubr.msk.bf16.mxu0 %vm5728_vm1, %v5727_v2  ;;  %v1863_v57 = vsel %vm1801_vm7, %v1853_v0, %v1862_v12 }
 0x103   : > { %5155 = vmatmul.mubr.msk.bf16.gmra.mrb[116].mxu1 %vm443_vm2, %v1836_v54 }
 0x104   : > { %v525_v58 = vpop.f32.mrb[8].mxu0  ;;  %5158 = vmatprep.mubr.msk.bf16.mxu1 %vm5728_vm1, %v5727_v2 }
 0x105   : > { %v6363_v10 = vadd.f32 %v651_v18, %v525_v58  ;;  %v4890_v31 = vpop.f32.mrb[9].mxu0  ;;  %v1870_v58 = vrot.slane %v1868_v47, 3 }
 0x106   : > { %v528_v15 = vpop.f32.mrb[10].mxu0  ;;  %v659_v17 = vpop.f32.mrb[12].mxu1 }
 0x107   : > { %v6366_v46 = vadd.f32 %v654_v44, %v528_v15  ;;  %v4891_v59 = vpop.f32.mrb[11].mxu0  ;;  %v4932_v9 = vpop.f32.mrb[13].mxu1  ;;  %v1871_v15 = vor.u32 %v1870_v58, %v1867_v49 }
 0x108   : > { %v662_v63 = vpop.f32.mrb[14].mxu1 }
 0x109   : > { %5117 = vmatmul.mubr.msk.bf16.gmra.mrb[116].mxu0 %vm443_vm2, %v1629_v16  ;;  %v4933_v24 = vpop.f32.mrb[15].mxu1  ;;  %v1874_v16 = vshrl.u32 %v6406_v61, 16  ;;  %v1872_v0 = vsel %vm1801_vm7, %v1862_v12, %v1871_v15 }
 0x10a   : > { %5120 = vmatprep.mubr.msk.bf16.mxu0 %vm5728_vm1, %v5727_v2 }
 0x10b   : > { %5159 = vmatmul.mubr.msk.bf16.gmra.mrb[120].mxu1 %vm443_vm2, %v1845_v8  ;;  %v1635_v8 = vsel %vm1381_vm5, %v1632_v4, %v1634_v7  ;;  %v1876_v3 = vrot.slane %v1874_v16, 2 }
 0x10c   : > { %v533_v27 = vpop.f32.mrb[12].mxu0  ;;  %5162 = vmatprep.mubr.msk.bf16.mxu1 %vm5728_vm1, %v5727_v2 }
 0x10d   : > { %v6381_v29 = vadd.f32 %v659_v17, %v533_v27  ;;  %v4894_v14 = vpop.f32.mrb[13].mxu0  ;;  %v1877_v17 = vshll.u32 %v6406_v61, 16 }
 0x10e   : > { %v536_v37 = vpop.f32.mrb[14].mxu0  ;;  %v667_v39 = vpop.f32.mrb[16].mxu1  ;;  %v6424_v14 = vld [vmem:[%s5830_s12 + $0x58] ss:$0 sps:$4 sm:$0x77]  }
 0x10f   : > { %v6384_v43 = vadd.f32 %v662_v63, %v536_v37  ;;  %v4895_v52 = vpop.f32.mrb[15].mxu0  ;;  %v4936_v5 = vpop.f32.mrb[17].mxu1  ;;  %v1879_v26 = vrot.slane %v1877_v17, 3 }
 0x110   : > { %v670_v53 = vpop.f32.mrb[18].mxu1  ;;  %v1883_v5 = vshrl.u32 %v6424_v14, 16 }
 0x111   : > { %5121 = vmatmul.mubr.msk.bf16.gmra.mrb[120].mxu0 %vm443_vm2, %v1631_v30  ;;  %v4937_v45 = vpop.f32.mrb[19].mxu1  ;;  %v1636_v30 = vrot.slane %v6388_v1, 2  ;;  %v1880_v52 = vor.u32 %v1879_v26, %v1876_v3 }
 0x112   : > { %5124 = vmatprep.mubr.msk.bf16.mxu0 %vm5728_vm1, %v5727_v2 }
 0x113   : > { %5163 = vmatmul.mubr.msk.bf16.gmra.mrb[124].mxu1 %vm443_vm2, %v1854_v19  ;;  %v1637_v45 = vsel %vm1381_vm5, %v1634_v7, %v1636_v30 }
 0x114   : > { %v541_v51 = vpop.f32.mrb[16].mxu0  ;;  %5166 = vmatprep.mubr.msk.bf16.mxu1 %vm5728_vm1, %v5727_v2 }
 0x115   : > { %v6399_v40 = vadd.f32 %v667_v39, %v541_v51  ;;  %v4898_v32 = vpop.f32.mrb[17].mxu0 }
 0x116   : > { %v544_v18 = vpop.f32.mrb[18].mxu0  ;;  %v675_v35 = vpop.f32.mrb[20].mxu1  ;;  %v1881_v32 = vsel %vm1801_vm7, %v1871_v15, %v1880_v52 }
 0x117   : > { %v6402_v44 = vadd.f32 %v670_v53, %v544_v18  ;;  %v4899_v54 = vpop.f32.mrb[19].mxu0  ;;  %v4940_v11 = vpop.f32.mrb[21].mxu1  ;;  %v1886_v53 = vshll.u32 %v6424_v14, 16  ;;  %v1885_v18 = vrot.slane %v1883_v5, 2 }
 0x118   : > { %v678_v38 = vpop.f32.mrb[22].mxu1  ;;  %v1638_v54 = vrot.slane %v6406_v61, 2 }
 0x119   : > { %5125 = vmatmul.mubr.msk.bf16.gmra.mrb[124].mxu0 %vm443_vm2, %v1633_v28  ;;  %v4941_v6 = vpop.f32.mrb[23].mxu1  ;;  %v1888_v28 = vrot.slane %v1886_v53, 3  ;;  %v5642_v53 = vld [vmem:[%s5985_s17] sm:$0xff]  }
 0x11a   : > { %5128 = vmatprep.mubr.msk.bf16.mxu0 %vm5728_vm1, %v5727_v2  ;;  %v1639_v6 = vsel %vm1381_vm5, %v1636_v30, %v1638_v54 }
 0x11b   : > { %5167 = vmatmul.mubr.msk.bf16.gmra.mrb[128].mxu1 %vm443_vm2, %v1863_v57 }
 0x11c   : > { %v549_v31 = vpop.f32.mrb[20].mxu0  ;;  %5170 = vmatprep.mubr.msk.bf16.mxu1 %vm5728_vm1, %v5727_v2 }
 0x11d   : > { %v6417_v59 = vadd.f32 %v675_v35, %v549_v31  ;;  %v4902_v9 = vpop.f32.mrb[21].mxu0  ;;  %v5641_v31 = vld [vmem:[%s5830_s12 + $0x58] ss:$0 sps:$4 sm:$0x33]  }
 0x11e   : > { %v552_v63 = vpop.f32.mrb[22].mxu0  ;;  %v683_v50 = vpop.f32.mrb[24].mxu1 }
 0x11f   : > { %v6420_v20 = vadd.f32 %v678_v38, %v552_v63  ;;  %v4903_v24 = vpop.f32.mrb[23].mxu0  ;;  %v4944_v25 = vpop.f32.mrb[25].mxu1  ;;  %v1889_v38 = vor.u32 %v1888_v28, %v1885_v18 }
 0x120   : > { %v686_v27 = vpop.f32.mrb[26].mxu1  ;;  %v2044_v24 = vld [vmem:[%s5830_s12 + $0x10] sm:$0x8] }
 0x121   : > { %5129 = vmatmul.mubr.msk.bf16.gmra.mrb[128].mxu0 %vm443_vm2, %v1635_v8  ;;  %v4945_v37 = vpop.f32.mrb[27].mxu1  ;;  %v1890_v63 = vsel %vm1801_vm7, %v1880_v52, %v1889_v38  ;;  %v4552_v30 = vcombine.low %v2044_v24, %v6270_v41 }
 0x122   : > { %5132 = vmatprep.mubr.msk.bf16.mxu0 %vm5728_vm1, %v5727_v2 }
 0x123   : > { %5171 = vmatmul.mubr.msk.bf16.gmra.mrb[132].mxu1 %vm443_vm2, %v1872_v0  ;;  %v2051_v41 = vrot.slane %v4552_v30, 3 }
 0x124   : > { %v557_v39 = vpop.f32.mrb[24].mxu0  ;;  %5174 = vmatprep.mubr.msk.bf16.mxu1 %vm5728_vm1, %v5727_v2 }
 0x125   : > { %v6435_v19 = vadd.f32 %v683_v50, %v557_v39  ;;  %v4906_v60 = vpop.f32.mrb[25].mxu0  ;;  %v1640_v50 = vrot.slane %v5641_v31, 2  ;;  %v4600_v39 = vld [vmem:[%s7521_s3 + $0x4] sm:$0x3] }
 0x126   : > { %v560_v22 = vpop.f32.mrb[26].mxu0  ;;  %v691_v4 = vpop.f32.mrb[28].mxu1 }
 0x127   : > { %v6438_v51 = vadd.f32 %v686_v27, %v560_v22  ;;  %v4907_v12 = vpop.f32.mrb[27].mxu0  ;;  %v4948_v13 = vpop.f32.mrb[29].mxu1  ;;  %v1641_v26 = vsel %vm1381_vm5, %v1638_v54, %v1640_v50 }
 0x128   : > { %v694_v47 = vpop.f32.mrb[30].mxu1  ;;  %v2052_v12 = vrot.slane %v6275_v55, 3 }
 0x129   : > { %5133 = vmatmul.mubr.msk.bf16.gmra.mrb[132].mxu0 %vm443_vm2, %v1637_v45  ;;  %v4949_v35 = vpop.f32.mrb[31].mxu1 }
 0x12a   : > { %5136 = vmatprep.mubr.msk.bf16.mxu0 %vm5728_vm1, %v5727_v2  ;;  %v2053_v55 = vsel %vm2050_vm10, %v2051_v41, %v2052_v12 }
 0x12b   : > { %5175 = vmatmul.mubr.msk.bf16.gmra.mrb[136].mxu1 %vm443_vm2, %v1881_v32 }
 0x12c   : > { %v565_v11 = vpop.f32.mrb[28].mxu0  ;;  %5178 = vmatprep.mubr.msk.bf16.mxu1 %vm5728_vm1, %v5727_v2 }
 0x12d   : > { %v6448_v57 = vadd.f32 %v691_v4, %v565_v11  ;;  %v4910_v49 = vpop.f32.mrb[29].mxu0  ;;  %v2793_v4 = vsel %vm2315_vm8, %v4600_v39, 0 }
 0x12e   : > { %v568_v58 = vpop.f32.mrb[30].mxu0  ;;  %v699_v7 = vpop.f32.mrb[32].mxu1 }
 0x12f   : > { %v6452_v15 = vadd.f32 %v694_v47, %v568_v58  ;;  %v4911_v16 = vpop.f32.mrb[31].mxu0  ;;  %v4952_v17 = vpop.f32.mrb[33].mxu1  ;;  %v4580_v47 = vld [vmem:[%s7521_s3 + $0x2] sm:$0x3]  ;;  %v5644_v58 = vld [vmem:[%s5985_s17 + $0x8] sm:$0xff]  }
 0x130   : > { %v702_v9 = vpop.f32.mrb[34].mxu1  ;;  %v2615_v38 = vsel %vm2315_vm8, %v4580_v47, 0 }
 0x131   : > { %5137 = vmatmul.mubr.msk.bf16.gmra.mrb[136].mxu0 %vm443_vm2, %v1639_v6  ;;  %v4953_v8 = vpop.f32.mrb[35].mxu1 }
 0x132   : > { %5140 = vmatprep.mubr.msk.bf16.mxu0 %vm5728_vm1, %v5727_v2 }
 0x133   : > { %5179 = vmatmul.mubr.msk.bf16.gmra.mrb[140].mxu1 %vm443_vm2, %v1890_v63 }
 0x134   : > { %v573_v25 = vpop.f32.mrb[32].mxu0  ;;  %5222 = vmatprep.mubr.msk.bf16.mxu1 %vm5728_vm1, %v5727_v2 }
 0x135   : > { %v4914_v27 = vpop.f32.mrb[33].mxu0  ;;  %v6462_v0 = vadd.f32 %v699_v7, %v573_v25 }
 0x136   : > { %v576_v3 = vpop.f32.mrb[34].mxu0  ;;  %v1037_v37 = vpop.f32.mrb[36].mxu1 }
 0x137   : > { %v4915_v52 = vpop.f32.mrb[35].mxu0  ;;  %v4996_v5 = vpop.f32.mrb[37].mxu1  ;;  %v6470_v60 = vadd.f32 %v702_v9, %v576_v3 }
 0x138   : > { %v1040_v22 = vpop.f32.mrb[38].mxu1 }
 0x139   : > { %5141 = vmatmul.mubr.msk.bf16.gmra.mrb[140].mxu0 %vm443_vm2, %v1641_v26  ;;  %v4997_v45 = vpop.f32.mrb[39].mxu1 }
 0x13a   : > { %5184 = vmatprep.mubr.msk.bf16.mxu0 %vm5728_vm1, %v5727_v2 }
 0x13b   : > { %5223 = vmatmul.mubr.msk.bf16.vlgmr.msra.gmra.mrb[144].mxu1 %vm2287_vm9, %v5642_v53 }
 0x13c   : > { %v796_v13 = vpop.f32.mrb[36].mxu0  ;;  %5297 = vmatpush3.bf16.msra.mxu1 %v2793_v4  ;;  %5226 = vmatprep.mubr.msk.bf16.mxu1 %vm5728_vm1, %v5727_v2 }
 0x13d   : > { %v867_v32 = vadd.f32 %v796_v13, %v6324_v36  ;;  %v4958_v18 = vpop.f32.mrb[37].mxu0  ;;  %5372 = vmatprep.subr.bf16.mxu1 %v5727_v2 }
 0x13e   : > { %v799_v28 = vpop.f32.mrb[38].mxu0  ;;  %v1045_v35 = vpop.f32.mrb[40].mxu1 }
 0x13f   : > { %v868_v54 = vadd.f32 %v799_v28, %v6328_v48  ;;  %v4959_v11 = vpop.f32.mrb[39].mxu0  ;;  %v5000_v49 = vpop.f32.mrb[41].mxu1  ;;  %v6489_v6 = vadd.f32 %v1037_v37, %v867_v32  ;;  %v2054_v48 = vrot.slane %v6291_v62, 3  ;;  %v5645_v62 = vld [vmem:[%s5985_s17 + $0x10] sm:$0xff]  }
 0x140   : > { %v1048_v7 = vpop.f32.mrb[42].mxu1 }
 0x141   : > { %5185 = vmatmul.mubr.msk.bf16.vlgmr.msra.gmra.mrb[144].mxu0 %vm443_vm2, %v2053_v55  ;;  %v5001_v36 = vpop.f32.mrb[43].mxu1  ;;  %v6492_v31 = vadd.f32 %v1040_v22, %v868_v54  ;;  %v2055_v8 = vsel %vm2050_vm10, %v2052_v12, %v2054_v48  ;;  %v5646_v12 = vld [vmem:[%s5985_s17 + $0x18] sm:$0xff]  }
 0x142   : > { %5259 = vmatpush3.bf16.msra.mxu0 %v2615_v38  ;;  %5188 = vmatprep.mubr.msk.bf16.mxu0 %vm5728_vm1, %v5727_v2 }
 0x143   : > { %5227 = vmatmul.mubr.msk.bf16.gmra.mrb[148].mxu1 %vm2287_vm9, %v5644_v58  ;;  %5334 = vmatprep.subr.bf16.mxu0 %v5727_v2  ;;  %v5647_v58 = vld [vmem:[%s5985_s17 + $0x20] sm:$0xff]  }
 0x144   : > { %v804_v16 = vpop.f32.mrb[40].mxu0  ;;  %5230 = vmatprep.mubr.msk.bf16.mxu1 %vm5728_vm1, %v5727_v2 }
 0x145   : > { %v869_v17 = vadd.f32 %v804_v16, %v6345_v33  ;;  %v4962_v9 = vpop.f32.mrb[41].mxu0  ;;  %v2056_v33 = vrot.slane %v6309_v34, 3 }
 0x146   : > { %v807_v63 = vpop.f32.mrb[42].mxu0  ;;  %v1053_v50 = vpop.f32.mrb[44].mxu1 }
 0x147   : > { %v870_v24 = vadd.f32 %v807_v63, %v6348_v21  ;;  %v4963_v25 = vpop.f32.mrb[43].mxu0  ;;  %v5004_v27 = vpop.f32.mrb[45].mxu1  ;;  %v6505_v3 = vadd.f32 %v1045_v35, %v869_v17  ;;  %v2057_v53 = vsel %vm2050_vm10, %v2054_v48, %v2056_v33 }
 0x148   : > { %v1056_v26 = vpop.f32.mrb[46].mxu1  ;;  %v5648_v27 = vld [vmem:[%s5985_s17 + $0x28] sm:$0xff]  }
 0x149   : > { %5189 = vmatmul.mubr.msk.bf16.gmra.mrb[148].mxu0 %vm443_vm2, %v2055_v8  ;;  %v5005_v37 = vpop.f32.mrb[47].mxu1  ;;  %v6508_v30 = vadd.f32 %v1048_v7, %v870_v24 }
 0x14a   : > { %5192 = vmatprep.mubr.msk.bf16.mxu0 %vm5728_vm1, %v5727_v2 }
 0x14b   : > { %5231 = vmatmul.mubr.msk.bf16.gmra.mrb[152].mxu1 %vm2287_vm9, %v5645_v62 }
 0x14c   : > { %v812_v21 = vpop.f32.mrb[44].mxu0  ;;  %5234 = vmatprep.mubr.msk.bf16.mxu1 %vm5728_vm1, %v5727_v2 }
 0x14d   : > { %v871_v39 = vadd.f32 %v812_v21, %v6363_v10  ;;  %v4966_v52 = vpop.f32.mrb[45].mxu0  ;;  %v2058_v10 = vrot.slane %v6333_v42, 3 }
 0x14e   : > { %v815_v5 = vpop.f32.mrb[46].mxu0  ;;  %v1061_v22 = vpop.f32.mrb[48].mxu1 }
 0x14f   : > { %v872_v45 = vadd.f32 %v815_v5, %v6366_v46  ;;  %v4967_v4 = vpop.f32.mrb[47].mxu0  ;;  %v5008_v41 = vpop.f32.mrb[49].mxu1  ;;  %v6520_v13 = vadd.f32 %v1053_v50, %v871_v39  ;;  %v2059_v35 = vsel %vm2050_vm10, %v2056_v33, %v2058_v10 }
 0x150   : > { %v1064_v34 = vpop.f32.mrb[50].mxu1  ;;  %v5649_v4 = vld [vmem:[%s5985_s17 + $0x30] sm:$0xff]  }
 0x151   : > { %5193 = vmatmul.mubr.msk.bf16.gmra.mrb[152].mxu0 %vm443_vm2, %v2057_v53  ;;  %v5009_v47 = vpop.f32.mrb[51].mxu1  ;;  %v6523_v32 = vadd.f32 %v1056_v26, %v872_v45 }
 0x152   : > { %5196 = vmatprep.mubr.msk.bf16.mxu0 %vm5728_vm1, %v5727_v2 }
 0x153   : > { %5235 = vmatmul.mubr.msk.bf16.gmra.mrb[156].mxu1 %vm2287_vm9, %v5646_v12 }
 0x154   : > { %v820_v46 = vpop.f32.mrb[48].mxu0  ;;  %5238 = vmatprep.mubr.msk.bf16.mxu1 %vm5728_vm1, %v5727_v2 }
 0x155   : > { %v873_v18 = vadd.f32 %v820_v46, %v6381_v29  ;;  %v4970_v28 = vpop.f32.mrb[49].mxu0  ;;  %v2060_v29 = vrot.slane %v6352_v56, 3 }
 0x156   : > { %v823_v55 = vpop.f32.mrb[50].mxu0  ;;  %v1069_v54 = vpop.f32.mrb[52].mxu1 }
 0x157   : > { %v874_v11 = vadd.f32 %v823_v55, %v6384_v43  ;;  %v4971_v38 = vpop.f32.mrb[51].mxu0  ;;  %v5012_v49 = vpop.f32.mrb[53].mxu1  ;;  %v6535_v7 = vadd.f32 %v1061_v22, %v873_v18  ;;  %v2061_v63 = vsel %vm2050_vm10, %v2058_v10, %v2060_v29 }
 0x158   : > { %v1072_v42 = vpop.f32.mrb[54].mxu1 }
 0x159   : > { %5197 = vmatmul.mubr.msk.bf16.gmra.mrb[156].mxu0 %vm443_vm2, %v2059_v35  ;;  %v5013_v36 = vpop.f32.mrb[55].mxu1  ;;  %v6538_v48 = vadd.f32 %v1064_v34, %v874_v11 }
 0x15a   : > { %5200 = vmatprep.mubr.msk.bf16.mxu0 %vm5728_vm1, %v5727_v2 }
 0x15b   : > { %5239 = vmatmul.mubr.msk.bf16.gmra.mrb[160].mxu1 %vm2287_vm9, %v5647_v58  ;;  %v2066_v58 = vrot.slane %v6406_v61, 3 }
 0x15c   : > { %v828_v43 = vpop.f32.mrb[52].mxu0  ;;  %5242 = vmatprep.mubr.msk.bf16.mxu1 %vm5728_vm1, %v5727_v2 }
 0x15d   : > { %v875_v16 = vadd.f32 %v828_v43, %v6399_v40  ;;  %v4974_v17 = vpop.f32.mrb[53].mxu0  ;;  %v2062_v40 = vrot.slane %v6370_v23, 3 }
 0x15e   : > { %v831_v9 = vpop.f32.mrb[54].mxu0  ;;  %v1077_v8 = vpop.f32.mrb[56].mxu1 }
 0x15f   : > { %v876_v50 = vadd.f32 %v831_v9, %v6402_v44  ;;  %v4975_v24 = vpop.f32.mrb[55].mxu0  ;;  %v5016_v25 = vpop.f32.mrb[57].mxu1  ;;  %v6550_v62 = vadd.f32 %v1069_v54, %v875_v16  ;;  %v2063_v52 = vsel %vm2050_vm10, %v2060_v29, %v2062_v40  ;;  %v2740_v16 = vld [vmem:[%s5985_s17] sm:$0xe] }
 0x160   : > { %v1080_v56 = vpop.f32.mrb[58].mxu1  ;;  %v5651_v25 = vld [vmem:[%s5985_s17 + $0x40] sm:$0xff]  }
 0x161   : > { %5201 = vmatmul.mubr.msk.bf16.gmra.mrb[160].mxu0 %vm443_vm2, %v2061_v63  ;;  %v5017_v26 = vpop.f32.mrb[59].mxu1  ;;  %v6553_v37 = vadd.f32 %v1072_v42, %v876_v50  ;;  %v2443_v42 = vld [vmem:[%s5985_s17 + $0x4] sm:$0xf] }
 0x162   : > { %5204 = vmatprep.mubr.msk.bf16.mxu0 %vm5728_vm1, %v5727_v2  ;;  %v6601_v26 = vld [vmem:[%s5985_s17 + $0x8] sm:$0xff]  }
 0x163   : > { %5243 = vmatmul.mubr.msk.bf16.gmra.mrb[164].mxu1 %vm2287_vm9, %v5648_v27 }
 0x164   : > { %v836_v44 = vpop.f32.mrb[56].mxu0  ;;  %5246 = vmatprep.mubr.msk.bf16.mxu1 %vm5728_vm1, %v5727_v2 }
 0x165   : > { %v877_v33 = vadd.f32 %v836_v44, %v6417_v59  ;;  %v4978_v21 = vpop.f32.mrb[57].mxu0  ;;  %v2064_v59 = vrot.slane %v6388_v1, 3  ;;  %v5650_v1 = vld [vmem:[%s5985_s17 + $0x38] sm:$0xff]  }
 0x166   : > { %v839_v39 = vpop.f32.mrb[58].mxu0  ;;  %v1085_v5 = vpop.f32.mrb[60].mxu1 }
 0x167   : > { %v878_v53 = vadd.f32 %v839_v39, %v6420_v20  ;;  %v4979_v22 = vpop.f32.mrb[59].mxu0  ;;  %v5020_v45 = vpop.f32.mrb[61].mxu1  ;;  %v6565_v41 = vadd.f32 %v1077_v8, %v877_v33  ;;  %v2065_v18 = vsel %vm2050_vm10, %v2062_v40, %v2064_v59  ;;  %v2067_v9 = vsel %vm2050_vm10, %v2064_v59, %v2066_v58  ;;  %v4631_v59 = vld [vmem:[%s7521_s3 + $0x8] sm:$0x3] }
 0x168   : > { %v1088_v23 = vpop.f32.mrb[62].mxu1  ;;  %v4601_v40 = vcombine.low %v2740_v16, %v2443_v42  ;;  %v2068_v33 = vrot.slane %v6424_v14, 3  ;;  %v2523_v16 = vshrl.u32 %v6601_v26, 16 }
 0x169   : > { %5205 = vmatmul.mubr.msk.bf16.gmra.mrb[164].mxu0 %vm443_vm2, %v2063_v52  ;;  %v5021_v12 = vpop.f32.mrb[63].mxu1  ;;  %v6568_v34 = vadd.f32 %v1080_v56, %v878_v53  ;;  %v2747_v52 = vrot.slane %v6601_v26, 1 }
 0x16a   : > { %5208 = vmatprep.mubr.msk.bf16.mxu0 %vm5728_vm1, %v5727_v2  ;;  %v2746_v39 = vrot.slane %v4601_v40, 1  ;;  %v2519_v12 = vshll.u32 %v6601_v26, 16 }
 0x16b   : > { %5247 = vmatmul.mubr.msk.bf16.gmra.mrb[168].mxu1 %vm2287_vm9, %v5649_v4  ;;  %v2069_v4 = vsel %vm2050_vm10, %v2066_v58, %v2068_v33 }
 0x16c   : > { %v844_v20 = vpop.f32.mrb[60].mxu0  ;;  %5250 = vmatprep.mubr.msk.bf16.mxu1 %vm5728_vm1, %v5727_v2 }
 0x16d   : > { %v879_v47 = vadd.f32 %v844_v20, %v6435_v19  ;;  %v4982_v10 = vpop.f32.mrb[61].mxu0 }
 0x16e   : > { %v847_v46 = vpop.f32.mrb[62].mxu0  ;;  %v1093_v28 = vpop.f32.mrb[64].mxu1 }
 0x16f   : > { %v880_v55 = vadd.f32 %v847_v46, %v6438_v51  ;;  %v4983_v35 = vpop.f32.mrb[63].mxu0  ;;  %v5024_v54 = vpop.f32.mrb[65].mxu1  ;;  %v6580_v11 = vadd.f32 %v1085_v5, %v879_v47  ;;  %v2442_v51 = vld [vmem:[%s5985_s17] sm:$0xf] }
 0x170   : > { %v1096_v38 = vpop.f32.mrb[66].mxu1  ;;  %v4581_v8 = vcombine.low %v2442_v51, %v2443_v42  ;;  %v3282_v35 = vsel %vm2315_vm8, %v4631_v59, 0 }
 0x171   : > { %5209 = vmatmul.mubr.msk.bf16.gmra.mrb[168].mxu0 %vm443_vm2, %v2065_v18  ;;  %v5025_v49 = vpop.f32.mrb[67].mxu1  ;;  %v6583_v19 = vadd.f32 %v1088_v23, %v880_v55  ;;  %v2748_v18 = vsel %vm712_vm4, %v2746_v39, %v2747_v52 }
 0x172   : > { %5212 = vmatprep.mubr.msk.bf16.mxu0 %vm5728_vm1, %v5727_v2  ;;  %v2512_v22 = vshrl.u32 %v4581_v8, 16  ;;  %v4611_v49 = vld [vmem:[%s7521_s3 + $0x6] sm:$0x3] }
 0x173   : > { %5251 = vmatmul.mubr.msk.bf16.gmra.mrb[172].mxu1 %vm2287_vm9, %v5650_v1 }
 0x174   : > { %v852_v36 = vpop.f32.mrb[64].mxu0  ;;  %5254 = vmatprep.mubr.msk.bf16.mxu1 %vm5728_vm1, %v5727_v2 }
 0x175   : > { %v881_v29 = vadd.f32 %v852_v36, %v6448_v57  ;;  %v4986_v43 = vpop.f32.mrb[65].mxu0 }
 0x176   : > { %v855_v17 = vpop.f32.mrb[66].mxu0  ;;  %v1101_v63 = vpop.f32.mrb[68].mxu1 }
 0x177   : > { %v882_v61 = vadd.f32 %v855_v17, %v6452_v15  ;;  %v4987_v50 = vpop.f32.mrb[67].mxu0  ;;  %v5028_v24 = vpop.f32.mrb[69].mxu1  ;;  %v6598_v27 = vadd.f32 %v1093_v28, %v881_v29  ;;  %v2514_v15 = vshll.u32 %v4581_v8, 16  ;;  %v5655_v28 = vld [vmem:[%s5985_s17 + $0x10] sm:$0xff]   ;;  %v3034_v8 = vsel %vm2315_vm8, %v4611_v49, 0 }
 0x178   : > { %v1104_v56 = vpop.f32.mrb[70].mxu1  ;;  %v2749_v58 = vrot.slane %v5655_v28, 1  ;;  %v2527_v17 = vshll.u32 %v5655_v28, 16 }
 0x179   : > { %5213 = vmatmul.mubr.msk.bf16.gmra.mrb[172].mxu0 %vm443_vm2, %v2067_v9  ;;  %v5029_v57 = vpop.f32.mrb[71].mxu1  ;;  %v6604_v44 = vadd.f32 %v1096_v38, %v882_v61  ;;  %v2516_v14 = vrot.slane %v2514_v15, 1 }
 0x17a   : > { %5216 = vmatprep.mubr.msk.bf16.mxu0 %vm5728_vm1, %v5727_v2  ;;  %v2529_v26 = vrot.slane %v2527_v17, 1 }
 0x17b   : > { %5255 = vmatmul.mubr.msk.bf16.gmra.mrb[176].mxu1 %vm2287_vm9, %v5651_v25  ;;  %v2517_v1 = vor.u32 %v2516_v14, %v2512_v22  ;;  %v5656_v25 = vld [vmem:[%s5985_s17 + $0x18] sm:$0xff]  }
 0x17c   : > { %v860_v21 = vpop.f32.mrb[68].mxu0  ;;  %5298 = vmatprep.mubr.msk.bf16.mxu1 %vm5728_vm1, %v5727_v2  ;;  %v2751_v33 = vrot.slane %v5656_v25, 1  ;;  %v2535_v22 = vshll.u32 %v5656_v25, 16 }
 0x17d   : > { %v883_v5 = vadd.f32 %v860_v21, %v6462_v0  ;;  %v4990_v53 = vpop.f32.mrb[69].mxu0 }
 0x17e   : > { %v863_v45 = vpop.f32.mrb[70].mxu0  ;;  %v1465_v23 = vpop.f32.mrb[72].mxu1  ;;  %v2531_v53 = vshrl.u32 %v5655_v28, 16  ;;  %v2752_v59 = vsel %vm712_vm4, %v2749_v58, %v2751_v33 }
 0x17f   : > { %v884_v20 = vadd.f32 %v863_v45, %v6470_v60  ;;  %v4991_v47 = vpop.f32.mrb[71].mxu0  ;;  %v5072_v10 = vpop.f32.mrb[73].mxu1  ;;  %v6620_v46 = vadd.f32 %v1101_v63, %v883_v5  ;;  %v2521_v60 = vrot.slane %v2519_v12, 1 }
 0x180   : > { %v1468_v0 = vpop.f32.mrb[74].mxu1  ;;  %v2533_v10 = vor.u32 %v2531_v53, %v2529_v26 }
 0x181   : > { %5217 = vmatmul.mubr.msk.bf16.gmra.mrb[176].mxu0 %vm443_vm2, %v2069_v4  ;;  %v5073_v55 = vpop.f32.mrb[75].mxu1  ;;  %v6626_v54 = vadd.f32 %v1104_v56, %v884_v20  ;;  %v2522_v29 = vsel %vm366_vm3, %v2517_v1, %v2521_v60  ;;  %v5657_v20 = vld [vmem:[%s5985_s17 + $0x20] sm:$0xff]  }
 0x182   : > { %5260 = vmatprep.mubr.msk.bf16.mxu0 %vm5728_vm1, %v5727_v2  ;;  %v2543_v49 = vshll.u32 %v5657_v20, 16 }
 0x183   : > { %5299 = vmatmul.mubr.msk.bf16.vlgmr.msra.gmra.mrb[180].mxu1 %vm2287_vm9, %v2748_v18  ;;  %v2753_v18 = vrot.slane %v5657_v20, 1 }
 0x184   : > { %v1286_v38 = vpop.f32.mrb[72].mxu0  ;;  %5373 = vmatpush3.bf16.msra.mxu1 %v3282_v35  ;;  %5302 = vmatprep.mubr.msk.bf16.mxu1 %vm5728_vm1, %v5727_v2 }
 0x185   : > { %v1357_v51 = vadd.f32 %v1286_v38, %v6489_v6  ;;  %v5034_v42 = vpop.f32.mrb[73].mxu0  ;;  %5448 = vmatprep.subr.bf16.mxu1 %v5727_v2  ;;  %v2750_v6 = vsel %vm712_vm4, %v2747_v52, %v2749_v58  ;;  %v2539_v38 = vshrl.u32 %v5656_v25, 16 }
 0x186   : > { %v1289_v36 = vpop.f32.mrb[74].mxu0  ;;  %v1473_v43 = vpop.f32.mrb[76].mxu1 }
 0x187   : > { %v1358_v9 = vadd.f32 %v1289_v36, %v6492_v31  ;;  %v5035_v63 = vpop.f32.mrb[75].mxu0  ;;  %v5076_v61 = vpop.f32.mrb[77].mxu1  ;;  %v6642_v50 = vadd.f32 %v1465_v23, %v1357_v51  ;;  %v2525_v31 = vor.u32 %v2523_v16, %v2521_v60  ;;  %v5658_v16 = vld [vmem:[%s5985_s17 + $0x28] sm:$0xff]  }
 0x188   : > { %v1476_v24 = vpop.f32.mrb[78].mxu1  ;;  %v2545_v63 = vrot.slane %v2543_v49, 1 }
 0x189   : > { %5261 = vmatmul.mubr.msk.bf16.vlgmr.msra.gmra.mrb[180].mxu0 %vm2287_vm9, %v2522_v29  ;;  %v5077_v56 = vpop.f32.mrb[79].mxu1  ;;  %v6647_v40 = vadd.f32 %v1468_v0, %v1358_v9  ;;  %v2530_v52 = vsel %vm366_vm3, %v2525_v31, %v2529_v26  ;;  %v2537_v0 = vrot.slane %v2535_v22, 1  ;;  %v2547_v31 = vshrl.u32 %v5657_v20, 16 }
 0x18a   : > { %5335 = vmatpush3.bf16.msra.mxu0 %v3034_v8  ;;  %5264 = vmatprep.mubr.msk.bf16.mxu0 %vm5728_vm1, %v5727_v2  ;;  %v2755_v8 = vrot.slane %v5658_v16, 1  ;;  %v2551_v26 = vshll.u32 %v5658_v16, 16 }
 0x18b   : > { %5303 = vmatmul.mubr.msk.bf16.gmra.mrb[184].mxu1 %vm2287_vm9, %v2750_v6  ;;  %5410 = vmatprep.subr.bf16.mxu0 %v5727_v2  ;;  %v2538_v1 = vsel %vm366_vm3, %v2533_v10, %v2537_v0  ;;  %v2541_v9 = vor.u32 %v2539_v38, %v2537_v0  ;;  %v2549_v22 = vor.u32 %v2547_v31, %v2545_v63  ;;  %v2555_v10 = vshrl.u32 %v5658_v16, 16 }
 0x18c   : > { %v1294_v57 = vpop.f32.mrb[76].mxu0  ;;  %5306 = vmatprep.mubr.msk.bf16.mxu1 %vm5728_vm1, %v5727_v2 }
 0x18d   : > { %v1359_v15 = vadd.f32 %v1294_v57, %v6505_v3  ;;  %v5038_v21 = vpop.f32.mrb[77].mxu0  ;;  %v2546_v25 = vsel %vm366_vm3, %v2541_v9, %v2545_v63 }
 0x18e   : > { %v1297_v39 = vpop.f32.mrb[78].mxu0  ;;  %v1481_v5 = vpop.f32.mrb[80].mxu1 }
 0x18f   : > { %v1360_v45 = vadd.f32 %v1297_v39, %v6508_v30  ;;  %v5039_v4 = vpop.f32.mrb[79].mxu0  ;;  %v5080_v23 = vpop.f32.mrb[81].mxu1  ;;  %v6658_v14 = vadd.f32 %v1473_v43, %v1359_v15  ;;  %v2754_v43 = vsel %vm712_vm4, %v2751_v33, %v2753_v18 }
 0x190   : > { %v1484_v12 = vpop.f32.mrb[82].mxu1 }
 0x191   : > { %5265 = vmatmul.mubr.msk.bf16.gmra.mrb[184].mxu0 %vm2287_vm9, %v2530_v52  ;;  %v5081_v3 = vpop.f32.mrb[83].mxu1  ;;  %v6663_v47 = vadd.f32 %v1476_v24, %v1360_v45  ;;  %v2756_v52 = vsel %vm712_vm4, %v2753_v18, %v2755_v8  ;;  %v2553_v45 = vrot.slane %v2551_v26, 1 }
 0x192   : > { %5268 = vmatprep.mubr.msk.bf16.mxu0 %vm5728_vm1, %v5727_v2 }
 0x193   : > { %5307 = vmatmul.mubr.msk.bf16.gmra.mrb[188].mxu1 %vm2287_vm9, %v2752_v59  ;;  %v2554_v20 = vsel %vm366_vm3, %v2549_v22, %v2553_v45  ;;  %v2557_v49 = vor.u32 %v2555_v10, %v2553_v45 }
 0x194   : > { %v1302_v30 = vpop.f32.mrb[80].mxu0  ;;  %5310 = vmatprep.mubr.msk.bf16.mxu1 %vm5728_vm1, %v5727_v2 }
 0x195   : > { %v1361_v28 = vadd.f32 %v1302_v30, %v6520_v13  ;;  %v5042_v55 = vpop.f32.mrb[81].mxu0 }
 0x196   : > { %v1305_v35 = vpop.f32.mrb[82].mxu0  ;;  %v1489_v60 = vpop.f32.mrb[84].mxu1 }
 0x197   : > { %v1362_v58 = vadd.f32 %v1305_v35, %v6523_v32  ;;  %v5043_v51 = vpop.f32.mrb[83].mxu0  ;;  %v5084_v42 = vpop.f32.mrb[85].mxu1  ;;  %v6673_v36 = vadd.f32 %v1481_v5, %v1361_v28  ;;  %v5659_v5 = vld [vmem:[%s5985_s17 + $0x30] sm:$0xff]  }
 0x198   : > { %v1492_v29 = vpop.f32.mrb[86].mxu1  ;;  %v2757_v4 = vrot.slane %v5659_v5, 1  ;;  %v2559_v0 = vshll.u32 %v5659_v5, 16  ;;  %v2563_v9 = vshrl.u32 %v5659_v5, 16  ;;  %v6736_v5 = vld [vmem:[%s5985_s17 + $0xc] sm:$0xf] }
 0x199   : > { %5269 = vmatmul.mubr.msk.bf16.gmra.mrb[188].mxu0 %vm2287_vm9, %v2538_v1  ;;  %v5085_v13 = vpop.f32.mrb[87].mxu1  ;;  %v6678_v17 = vadd.f32 %v1484_v12, %v1362_v58 }
 0x19a   : > { %5272 = vmatprep.mubr.msk.bf16.mxu0 %vm5728_vm1, %v5727_v2  ;;  %v2758_v1 = vsel %vm712_vm4, %v2755_v8, %v2757_v4  ;;  %v2561_v58 = vrot.slane %v2559_v0, 1 }
 0x19b   : > { %5311 = vmatmul.mubr.msk.bf16.gmra.mrb[192].mxu1 %vm2287_vm9, %v2754_v43 }
 0x19c   : > { %v1310_v32 = vpop.f32.mrb[84].mxu0  ;;  %5314 = vmatprep.mubr.msk.bf16.mxu1 %vm5728_vm1, %v5727_v2  ;;  %v2562_v16 = vsel %vm366_vm3, %v2557_v49, %v2561_v58 }
 0x19d   : > { %v1363_v61 = vadd.f32 %v1310_v32, %v6535_v7  ;;  %v5046_v24 = vpop.f32.mrb[85].mxu0 }
 0x19e   : > { %v1313_v6 = vpop.f32.mrb[86].mxu0  ;;  %v1497_v56 = vpop.f32.mrb[88].mxu1 }
 0x19f   : > { %v1364_v57 = vadd.f32 %v1313_v6, %v6538_v48  ;;  %v5047_v33 = vpop.f32.mrb[87].mxu0  ;;  %v5088_v15 = vpop.f32.mrb[89].mxu1  ;;  %v6688_v21 = vadd.f32 %v1489_v60, %v1363_v61  ;;  %v5660_v60 = vld [vmem:[%s5985_s17 + $0x38] sm:$0xff]  }
 0x1a0   : > { %v1500_v39 = vpop.f32.mrb[90].mxu1  ;;  %v2759_v51 = vrot.slane %v5660_v60, 1  ;;  %v2567_v63 = vshll.u32 %v5660_v60, 16 }
 0x1a1   : > { %5273 = vmatmul.mubr.msk.bf16.gmra.mrb[192].mxu0 %vm2287_vm9, %v2546_v25  ;;  %v5089_v7 = vpop.f32.mrb[91].mxu1  ;;  %v6693_v53 = vadd.f32 %v1492_v29, %v1364_v57 }
 0x1a2   : > { %5276 = vmatprep.mubr.msk.bf16.mxu0 %vm5728_vm1, %v5727_v2  ;;  %v2760_v25 = vsel %vm712_vm4, %v2757_v4, %v2759_v51  ;;  %v2569_v26 = vrot.slane %v2567_v63, 1 }
 0x1a3   : > { %5315 = vmatmul.mubr.msk.bf16.gmra.mrb[196].mxu1 %vm2287_vm9, %v2756_v52  ;;  %v2918_v52 = vld [vmem:[%s5985_s17 + $0x8] sm:$0xe] }
 0x1a4   : > { %v1318_v48 = vpop.f32.mrb[88].mxu0  ;;  %5318 = vmatprep.mubr.msk.bf16.mxu1 %vm5728_vm1, %v5727_v2  ;;  %v6746_v0 = vcombine.low %v2918_v52, %v6736_v5 }
 0x1a5   : > { %v1365_v23 = vadd.f32 %v1318_v48, %v6550_v62  ;;  %v5050_v12 = vpop.f32.mrb[89].mxu0  ;;  %v2571_v48 = vshrl.u32 %v5660_v60, 16 }
 0x1a6   : > { %v1321_v59 = vpop.f32.mrb[90].mxu0  ;;  %v1505_v3 = vpop.f32.mrb[92].mxu1  ;;  %v3169_v49 = vshll.u32 %v6746_v0, 16 }
 0x1a7   : > { %v1366_v30 = vadd.f32 %v1321_v59, %v6553_v37  ;;  %v5051_v18 = vpop.f32.mrb[91].mxu0  ;;  %v5092_v28 = vpop.f32.mrb[93].mxu1  ;;  %v6703_v55 = vadd.f32 %v1497_v56, %v1365_v23  ;;  %v6722_v56 = vld [vmem:[%s5985_s17 + $0x40] sm:$0xff]  }
 0x1a8   : > { %v1508_v35 = vpop.f32.mrb[94].mxu1  ;;  %v2761_v33 = vrot.slane %v6722_v56, 1  ;;  %v2575_v4 = vshll.u32 %v6722_v56, 16 }
 0x1a9   : > { %5277 = vmatmul.mubr.msk.bf16.gmra.mrb[196].mxu0 %vm2287_vm9, %v2554_v20  ;;  %v5093_v62 = vpop.f32.mrb[95].mxu1  ;;  %v6708_v38 = vadd.f32 %v1500_v39, %v1366_v30  ;;  %v5662_v20 = vld [vmem:[%s5985_s17 + $0x48] ss:$0 sps:$4 sm:$0x11]   ;;  %v6749_v30 = vld [vmem:[%s5985_s17 + $0x10] sm:$0xff]  }
 0x1aa   : > { %5280 = vmatprep.mubr.msk.bf16.mxu0 %vm5728_vm1, %v5727_v2  ;;  %v2762_v10 = vsel %vm712_vm4, %v2759_v51, %v2761_v33  ;;  %v3166_v62 = vshrl.u32 %v6746_v0, 16 }
 0x1ab   : > { %5319 = vmatmul.mubr.msk.bf16.gmra.mrb[200].mxu1 %vm2287_vm9, %v2758_v1  ;;  %v2763_v1 = vrot.slane %v5662_v20, 1 }
 0x1ac   : > { %v1326_v37 = vpop.f32.mrb[92].mxu0  ;;  %5322 = vmatprep.mubr.msk.bf16.mxu1 %vm5728_vm1, %v5727_v2 }
 0x1ad   : > { %v1367_v42 = vadd.f32 %v1326_v37, %v6565_v41  ;;  %v5054_v29 = vpop.f32.mrb[93].mxu0  ;;  %v3177_v37 = vshll.u32 %v6749_v30, 16 }
 0x1ae   : > { %v1329_v43 = vpop.f32.mrb[94].mxu0  ;;  %v1513_v13 = vpop.f32.mrb[96].mxu1 }
 0x1af   : > { %v1368_v32 = vadd.f32 %v1329_v43, %v6568_v34  ;;  %v5055_v8 = vpop.f32.mrb[95].mxu0  ;;  %v5096_v61 = vpop.f32.mrb[97].mxu1  ;;  %v6718_v24 = vadd.f32 %v1505_v3, %v1367_v42  ;;  %v2565_v34 = vor.u32 %v2563_v9, %v2561_v58  ;;  %v3174_v58 = vshrl.u32 %v6749_v30, 16 }
 0x1b0   : > { %v1516_v6 = vpop.f32.mrb[98].mxu1  ;;  %v2583_v9 = vshll.u32 %v5662_v20, 16  ;;  %v2764_v61 = vsel %vm712_vm4, %v2761_v33, %v2763_v1  ;;  %v4653_v20 = vld [vmem:[%s7521_s3 + $0xc] sm:$0x3] }
 0x1b1   : > { %5281 = vmatmul.mubr.msk.bf16.gmra.mrb[200].mxu0 %vm2287_vm9, %v2562_v16  ;;  %v5097_v41 = vpop.f32.mrb[99].mxu1  ;;  %v6725_v31 = vadd.f32 %v1508_v35, %v1368_v32  ;;  %v2570_v22 = vsel %vm366_vm3, %v2565_v34, %v2569_v26  ;;  %v2577_v35 = vrot.slane %v2575_v4, 1  ;;  %v3176_v34 = vrot.slane %v3174_v58, 1 }
 0x1b2   : > { %5284 = vmatprep.mubr.msk.bf16.mxu0 %vm5728_vm1, %v5727_v2  ;;  %v3168_v41 = vrot.slane %v3166_v62, 1  ;;  %v6793_v62 = vld [vmem:[%s5985_s17 + $0x20] sm:$0xff]   ;;  %v3701_v58 = vsel %vm2315_vm8, %v4653_v20, 0 }
 0x1b3   : > { %5323 = vmatmul.mubr.msk.bf16.gmra.mrb[204].mxu1 %vm2287_vm9, %v2760_v25 }
 0x1b4   : > { %v1334_v57 = vpop.f32.mrb[96].mxu0  ;;  %5326 = vmatprep.mubr.msk.bf16.mxu1 %vm5728_vm1, %v5727_v2 }
 0x1b5   : > { %v1369_v15 = vadd.f32 %v1334_v57, %v6580_v11  ;;  %v5058_v39 = vpop.f32.mrb[97].mxu0  ;;  %v6771_v57 = vld [vmem:[%s5985_s17 + $0x18] sm:$0xff]  }
 0x1b6   : > { %v1337_v7 = vpop.f32.mrb[98].mxu0  ;;  %v1521_v45 = vpop.f32.mrb[100].mxu1  ;;  %v2585_v39 = vrot.slane %v2583_v9, 1 }
 0x1b7   : > { %v1370_v23 = vadd.f32 %v1337_v7, %v6583_v19  ;;  %v5059_v12 = vpop.f32.mrb[99].mxu0  ;;  %v5100_v59 = vpop.f32.mrb[101].mxu1  ;;  %v6742_v3 = vadd.f32 %v1513_v13, %v1369_v15  ;;  %v2573_v19 = vor.u32 %v2571_v48, %v2569_v26  ;;  %v2579_v13 = vshrl.u32 %v6722_v56, 16 }
 0x1b8   : > { %v1524_v11 = vpop.f32.mrb[102].mxu1  ;;  %v3179_v26 = vrot.slane %v3177_v37, 2 }
 0x1b9   : > { %5285 = vmatmul.mubr.msk.bf16.gmra.mrb[204].mxu0 %vm2287_vm9, %v2570_v22  ;;  %v5101_v18 = vpop.f32.mrb[103].mxu1  ;;  %v6752_v28 = vadd.f32 %v1516_v6, %v1370_v23  ;;  %v2578_v43 = vsel %vm366_vm3, %v2573_v19, %v2577_v35  ;;  %v3183_v22 = vshrl.u32 %v6771_v57, 16 }
 0x1ba   : > { %5288 = vmatprep.mubr.msk.bf16.mxu0 %vm5728_vm1, %v5727_v2  ;;  %v3180_v7 = vor.u32 %v3179_v26, %v3176_v34 }
 0x1bb   : > { %5327 = vmatmul.mubr.msk.bf16.gmra.mrb[208].mxu1 %vm2287_vm9, %v2762_v10 }
 0x1bc   : > { %v1342_v60 = vpop.f32.mrb[100].mxu0  ;;  %5330 = vmatprep.mubr.msk.bf16.mxu1 %vm5728_vm1, %v5727_v2 }
 0x1bd   : > { %v1371_v51 = vadd.f32 %v1342_v60, %v6598_v27  ;;  %v5062_v42 = vpop.f32.mrb[101].mxu0  ;;  %v3171_v27 = vrot.slane %v3169_v49, 2  ;;  %v3185_v60 = vrot.slane %v3183_v22, 1 }
 0x1be   : > { %v1345_v29 = vpop.f32.mrb[102].mxu0  ;;  %v1529_v16 = vpop.f32.mrb[104].mxu1 }
 0x1bf   : > { %v1372_v63 = vadd.f32 %v1345_v29, %v6604_v44  ;;  %v5063_v32 = vpop.f32.mrb[103].mxu0  ;;  %v5104_v8 = vpop.f32.mrb[105].mxu1  ;;  %v6768_v6 = vadd.f32 %v1521_v45, %v1371_v51  ;;  %v2581_v44 = vor.u32 %v2579_v13, %v2577_v35  ;;  %v3172_v52 = vor.u32 %v3171_v27, %v3168_v41  ;;  %v4642_v29 = vld [vmem:[%s7521_s3 + $0xa] sm:$0x3] }
 0x1c0   : > { %v1532_v25 = vpop.f32.mrb[106].mxu1  ;;  %v3186_v45 = vshll.u32 %v6771_v57, 16  ;;  %v2988_v51 = vrot.slane %v6749_v30, 1  ;;  %v3195_v13 = vshll.u32 %v6793_v62, 16  ;;  %v3460_v41 = vsel %vm2315_vm8, %v4642_v29, 0 }
 0x1c1   : > { %5289 = vmatmul.mubr.msk.bf16.gmra.mrb[208].mxu0 %vm2287_vm9, %v2578_v43  ;;  %v5105_v15 = vpop.f32.mrb[107].mxu1  ;;  %v6774_v56 = vadd.f32 %v1524_v11, %v1372_v63  ;;  %v2586_v12 = vsel %vm366_vm3, %v2581_v44, %v2585_v39  ;;  %v3181_v1 = vsel %vm1132_vm6, %v3172_v52, %v3180_v7  ;;  %v6820_v39 = vld [vmem:[%s5985_s17 + $0x28] sm:$0xff]  }
 0x1c2   : > { %5292 = vmatprep.mubr.msk.bf16.mxu0 %vm5728_vm1, %v5727_v2 }
 0x1c3   : > { %5331 = vmatmul.mubr.msk.bf16.gmra.mrb[212].mxu1 %vm2287_vm9, %v2764_v61 }
 0x1c4   : > { %v1350_v33 = vpop.f32.mrb[104].mxu0  ;;  %5374 = vmatprep.mubr.msk.bf16.mxu1 %vm5728_vm1, %v5727_v2 }
 0x1c5   : > { %v1373_v48 = vadd.f32 %v1350_v33, %v6620_v46  ;;  %v5066_v4 = vpop.f32.mrb[105].mxu0  ;;  %v3188_v46 = vrot.slane %v3186_v45, 2  ;;  %v3201_v45 = vshrl.u32 %v6820_v39, 16 }
 0x1c6   : > { %v1353_v23 = vpop.f32.mrb[106].mxu0  ;;  %v1955_v59 = vpop.f32.mrb[108].mxu1 }
 0x1c7   : > { %v1374_v11 = vadd.f32 %v1353_v23, %v6626_v54  ;;  %v5067_v10 = vpop.f32.mrb[107].mxu0  ;;  %v5148_v18 = vpop.f32.mrb[109].mxu1  ;;  %v6789_v19 = vadd.f32 %v1529_v16, %v1373_v48  ;;  %v2987_v54 = vrot.slane %v6746_v0, 1  ;;  %v3189_v43 = vor.u32 %v3188_v46, %v3185_v60 }
 0x1c8   : > { %v1958_v35 = vpop.f32.mrb[110].mxu1  ;;  %v3192_v16 = vshrl.u32 %v6793_v62, 16  ;;  %v3204_v48 = vshll.u32 %v6820_v39, 16  ;;  %v3203_v46 = vrot.slane %v3201_v45, 1 }
 0x1c9   : > { %5293 = vmatmul.mubr.msk.bf16.gmra.mrb[212].mxu0 %vm2287_vm9, %v2586_v12  ;;  %v5149_v49 = vpop.f32.mrb[111].mxu1  ;;  %v6797_v37 = vadd.f32 %v1532_v25, %v1374_v11  ;;  %v2989_v32 = vsel %vm712_vm4, %v2987_v54, %v2988_v51  ;;  %v3190_v15 = vsel %vm1132_vm6, %v3180_v7, %v3189_v43 }
 0x1ca   : > { %5336 = vmatprep.mubr.msk.bf16.mxu0 %vm5728_vm1, %v5727_v2  ;;  %v3194_v44 = vrot.slane %v3192_v16, 1  ;;  %v3206_v49 = vrot.slane %v3204_v48, 2 }
 0x1cb   : > { %5375 = vmatmul.mubr.msk.bf16.vlgmr.msra.gmra.mrb[216].mxu1 %vm2287_vm9, %v3181_v1 }
 0x1cc   : > { %v1706_v42 = vpop.f32.mrb[108].mxu0  ;;  %5449 = vmatpush3.bf16.msra.mxu1 %v3701_v58  ;;  %5378 = vmatprep.mubr.msk.bf16.mxu1 %vm5728_vm1, %v5727_v2  ;;  %v6841_v58 = vld [vmem:[%s5985_s17 + $0x30] sm:$0xff]  }
 0x1cd   : > { %v1777_v0 = vadd.f32 %v1706_v42, %v6642_v50  ;;  %v5110_v9 = vpop.f32.mrb[109].mxu0  ;;  %5524 = vmatprep.subr.bf16.mxu1 %v5727_v2  ;;  %v3197_v50 = vrot.slane %v3195_v13, 2  ;;  %v3207_v42 = vor.u32 %v3206_v49, %v3203_v46  ;;  %v3210_v29 = vshrl.u32 %v6841_v58, 16  ;;  %v6881_v49 = vld [vmem:[%s5985_s17 + $0x40] sm:$0xff]  }
 0x1ce   : > { %v1709_v63 = vpop.f32.mrb[110].mxu0  ;;  %v1963_v8 = vpop.f32.mrb[112].mxu1 }
 0x1cf   : > { %v1778_v61 = vadd.f32 %v1709_v63, %v6647_v40  ;;  %v5111_v25 = vpop.f32.mrb[111].mxu0  ;;  %v5152_v27 = vpop.f32.mrb[113].mxu1  ;;  %v6816_v34 = vadd.f32 %v1955_v59, %v1777_v0  ;;  %v2990_v40 = vrot.slane %v6771_v57, 1  ;;  %v3198_v22 = vor.u32 %v3197_v50, %v3194_v44  ;;  %v6861_v44 = vld [vmem:[%s5985_s17 + $0x38] sm:$0xff]  }
 0x1d0   : > { %v1966_v26 = vpop.f32.mrb[114].mxu1 }
 0x1d1   : > { %5337 = vmatmul.mubr.msk.bf16.vlgmr.msra.gmra.mrb[216].mxu0 %vm2287_vm9, %v2989_v32  ;;  %v5153_v33 = vpop.f32.mrb[115].mxu1  ;;  %v6823_v52 = vadd.f32 %v1958_v35, %v1778_v61  ;;  %v2991_v59 = vsel %vm712_vm4, %v2988_v51, %v2990_v40  ;;  %v3199_v60 = vsel %vm1132_vm6, %v3189_v43, %v3198_v22  ;;  %v3213_v43 = vshll.u32 %v6841_v58, 16 }
 0x1d2   : > { %5411 = vmatpush3.bf16.msra.mxu0 %v3460_v41  ;;  %5340 = vmatprep.mubr.msk.bf16.mxu0 %vm5728_vm1, %v5727_v2  ;;  %v3208_v27 = vsel %vm1132_vm6, %v3198_v22, %v3207_v42  ;;  %v3222_v22 = vshll.u32 %v6861_v44, 16 }
 0x1d3   : > { %5379 = vmatmul.mubr.msk.bf16.gmra.mrb[220].mxu1 %vm2287_vm9, %v3190_v15  ;;  %5486 = vmatprep.subr.bf16.mxu0 %v5727_v2  ;;  %v3215_v15 = vrot.slane %v3213_v43, 2 }
 0x1d4   : > { %v1714_v7 = vpop.f32.mrb[112].mxu0  ;;  %5382 = vmatprep.mubr.msk.bf16.mxu1 %vm5728_vm1, %v5727_v2  ;;  %v3224_v46 = vrot.slane %v3222_v22, 2 }
 0x1d5   : > { %v1779_v4 = vadd.f32 %v1714_v7, %v6658_v14  ;;  %v5114_v23 = vpop.f32.mrb[113].mxu0  ;;  %v3219_v7 = vshrl.u32 %v6861_v44, 16 }
 0x1d6   : > { %v1717_v12 = vpop.f32.mrb[114].mxu0  ;;  %v1971_v20 = vpop.f32.mrb[116].mxu1 }
 0x1d7   : > { %v1780_v11 = vadd.f32 %v1717_v12, %v6663_v47  ;;  %v5115_v10 = vpop.f32.mrb[115].mxu0  ;;  %v5156_v18 = vpop.f32.mrb[117].mxu1  ;;  %v6837_v35 = vadd.f32 %v1963_v8, %v1779_v4  ;;  %v2992_v47 = vrot.slane %v6793_v62, 1 }
 0x1d8   : > { %v1974_v1 = vpop.f32.mrb[118].mxu1 }
 0x1d9   : > { %5341 = vmatmul.mubr.msk.bf16.gmra.mrb[220].mxu0 %vm2287_vm9, %v2991_v59  ;;  %v5157_v14 = vpop.f32.mrb[119].mxu1  ;;  %v6844_v54 = vadd.f32 %v1966_v26, %v1780_v11  ;;  %v2993_v9 = vsel %vm712_vm4, %v2990_v40, %v2992_v47  ;;  %v3212_v26 = vrot.slane %v3210_v29, 1  ;;  %v3231_v29 = vshll.u32 %v6881_v49, 16 }
 0x1da   : > { %5344 = vmatprep.mubr.msk.bf16.mxu0 %vm5728_vm1, %v5727_v2 }
 0x1db   : > { %5383 = vmatmul.mubr.msk.bf16.gmra.mrb[224].mxu1 %vm2287_vm9, %v3199_v60  ;;  %v3216_v40 = vor.u32 %v3215_v15, %v3212_v26  ;;  %v3221_v60 = vrot.slane %v3219_v7, 1  ;;  %v3233_v15 = vrot.slane %v3231_v29, 2 }
 0x1dc   : > { %v1722_v51 = vpop.f32.mrb[116].mxu0  ;;  %5386 = vmatprep.mubr.msk.bf16.mxu1 %vm5728_vm1, %v5727_v2 }
 0x1dd   : > { %v1781_v16 = vadd.f32 %v1722_v51, %v6673_v36  ;;  %v5118_v13 = vpop.f32.mrb[117].mxu0  ;;  %v3225_v51 = vor.u32 %v3224_v46, %v3221_v60 }
 0x1de   : > { %v1725_v0 = vpop.f32.mrb[118].mxu0  ;;  %v1979_v63 = vpop.f32.mrb[120].mxu1 }
 0x1df   : > { %v1782_v32 = vadd.f32 %v1725_v0, %v6678_v17  ;;  %v5119_v8 = vpop.f32.mrb[119].mxu0  ;;  %v5160_v61 = vpop.f32.mrb[121].mxu1  ;;  %v6857_v25 = vadd.f32 %v1971_v20, %v1781_v16  ;;  %v2994_v17 = vrot.slane %v6820_v39, 1 }
 0x1e0   : > { %v1982_v41 = vpop.f32.mrb[122].mxu1 }
 0x1e1   : > { %5345 = vmatmul.mubr.msk.bf16.gmra.mrb[224].mxu0 %vm2287_vm9, %v2993_v9  ;;  %v5161_v36 = vpop.f32.mrb[123].mxu1  ;;  %v6864_v50 = vadd.f32 %v1974_v1, %v1782_v32  ;;  %v2995_v23 = vsel %vm712_vm4, %v2992_v47, %v2994_v17  ;;  %v3217_v1 = vsel %vm1132_vm6, %v3207_v42, %v3216_v40  ;;  %v3228_v42 = vshrl.u32 %v6881_v49, 16 }
 0x1e2   : > { %5348 = vmatprep.mubr.msk.bf16.mxu0 %vm5728_vm1, %v5727_v2  ;;  %v6901_v36 = vld [vmem:[%s5985_s17 + $0x48] sm:$0xff]  }
 0x1e3   : > { %5387 = vmatmul.mubr.msk.bf16.gmra.mrb[228].mxu1 %vm2287_vm9, %v3208_v27  ;;  %v3226_v27 = vsel %vm1132_vm6, %v3216_v40, %v3225_v51  ;;  %v3230_v26 = vrot.slane %v3228_v42, 1  ;;  %v3237_v7 = vshrl.u32 %v6901_v36, 16  ;;  %v3240_v22 = vshll.u32 %v6901_v36, 16 }
 0x1e4   : > { %v1730_v33 = vpop.f32.mrb[120].mxu0  ;;  %5390 = vmatprep.mubr.msk.bf16.mxu1 %vm5728_vm1, %v5727_v2 }
 0x1e5   : > { %v1783_v45 = vadd.f32 %v1730_v33, %v6688_v21  ;;  %v5122_v48 = vpop.f32.mrb[121].mxu0  ;;  %v3234_v40 = vor.u32 %v3233_v15, %v3230_v26  ;;  %v3239_v46 = vrot.slane %v3237_v7, 1 }
 0x1e6   : > { %v1733_v4 = vpop.f32.mrb[122].mxu0  ;;  %v1987_v12 = vpop.f32.mrb[124].mxu1 }
 0x1e7   : > { %v1784_v59 = vadd.f32 %v1733_v4, %v6693_v53  ;;  %v5123_v20 = vpop.f32.mrb[123].mxu0  ;;  %v5164_v11 = vpop.f32.mrb[125].mxu1  ;;  %v6877_v10 = vadd.f32 %v1979_v63, %v1783_v45  ;;  %v2996_v53 = vrot.slane %v6841_v58, 1  ;;  %v3235_v60 = vsel %vm1132_vm6, %v3225_v51, %v3234_v40 }
 0x1e8   : > { %v1990_v18 = vpop.f32.mrb[126].mxu1 }
 0x1e9   : > { %5349 = vmatmul.mubr.msk.bf16.gmra.mrb[228].mxu0 %vm2287_vm9, %v2995_v23  ;;  %v5165_v21 = vpop.f32.mrb[127].mxu1  ;;  %v6884_v14 = vadd.f32 %v1982_v41, %v1784_v59  ;;  %v2997_v0 = vsel %vm712_vm4, %v2994_v17, %v2996_v53 }
 0x1ea   : > { %5352 = vmatprep.mubr.msk.bf16.mxu0 %vm5728_vm1, %v5727_v2  ;;  %v3242_v21 = vrot.slane %v3240_v22, 2 }
 0x1eb   : > { %5391 = vmatmul.mubr.msk.bf16.gmra.mrb[232].mxu1 %vm2287_vm9, %v3217_v1 }
 0x1ec   : > { %v1738_v47 = vpop.f32.mrb[124].mxu0  ;;  %5394 = vmatprep.mubr.msk.bf16.mxu1 %vm5728_vm1, %v5727_v2  ;;  %v3243_v51 = vor.u32 %v3242_v21, %v3239_v46 }
 0x1ed   : > { %v1785_v43 = vadd.f32 %v1738_v47, %v6703_v55  ;;  %v5126_v16 = vpop.f32.mrb[125].mxu0  ;;  %v6921_v47 = vld [vmem:[%s5985_s17 + $0x50] ss:$0 sps:$4 sm:$0x33]  }
 0x1ee   : > { %v1741_v13 = vpop.f32.mrb[126].mxu0  ;;  %v1995_v9 = vpop.f32.mrb[128].mxu1  ;;  %v3246_v29 = vshrl.u32 %v6921_v47, 16  ;;  %v3244_v15 = vsel %vm1132_vm6, %v3234_v40, %v3243_v51 }
 0x1ef   : > { %v1786_v63 = vadd.f32 %v1741_v13, %v6708_v38  ;;  %v5127_v32 = vpop.f32.mrb[127].mxu0  ;;  %v5168_v8 = vpop.f32.mrb[129].mxu1  ;;  %v6897_v61 = vadd.f32 %v1987_v12, %v1785_v43  ;;  %v2998_v38 = vrot.slane %v6861_v44, 1  ;;  %v3249_v43 = vshll.u32 %v6921_v47, 16 }
 0x1f0   : > { %v1998_v41 = vpop.f32.mrb[130].mxu1 }
 0x1f1   : > { %5353 = vmatmul.mubr.msk.bf16.gmra.mrb[232].mxu0 %vm2287_vm9, %v2997_v0  ;;  %v5169_v55 = vpop.f32.mrb[131].mxu1  ;;  %v6904_v33 = vadd.f32 %v1990_v18, %v1786_v63  ;;  %v2999_v23 = vsel %vm712_vm4, %v2996_v53, %v2998_v38 }
 0x1f2   : > { %5356 = vmatprep.mubr.msk.bf16.mxu0 %vm5728_vm1, %v5727_v2  ;;  %v3248_v55 = vrot.slane %v3246_v29, 1 }
 0x1f3   : > { %5395 = vmatmul.mubr.msk.bf16.gmra.mrb[236].mxu1 %vm2287_vm9, %v3226_v27 }
 0x1f4   : > { %v1746_v17 = vpop.f32.mrb[128].mxu0  ;;  %5398 = vmatprep.mubr.msk.bf16.mxu1 %vm5728_vm1, %v5727_v2 }
 0x1f5   : > { %v1787_v45 = vadd.f32 %v1746_v17, %v6718_v24  ;;  %v5130_v48 = vpop.f32.mrb[129].mxu0  ;;  %v3251_v17 = vrot.slane %v3249_v43, 2  ;;  %v3407_v43 = vld [vmem:[%s5985_s17 + $0x8] sm:$0xc] }
 0x1f6   : > { %v1749_v4 = vpop.f32.mrb[130].mxu0  ;;  %v2003_v12 = vpop.f32.mrb[132].mxu1  ;;  %v3585_v48 = vld [vmem:[%s5985_s17 + $0x10] sm:$0xc] }
 0x1f7   : > { %v1788_v59 = vadd.f32 %v1749_v4, %v6725_v31  ;;  %v5131_v20 = vpop.f32.mrb[131].mxu0  ;;  %v5172_v11 = vpop.f32.mrb[133].mxu1  ;;  %v6917_v18 = vadd.f32 %v1995_v9, %v1787_v45  ;;  %v3000_v31 = vrot.slane %v6881_v49, 1  ;;  %v3252_v40 = vor.u32 %v3251_v17, %v3248_v55  ;;  %v6952_v4 = vld [vmem:[%s5985_s17 + $0x14] sm:$0xf] }
 0x1f8   : > { %v2006_v1 = vpop.f32.mrb[134].mxu1  ;;  %v5673_v20 = vld [vmem:[%s5985_s17 + $0x50] ss:$0 sps:$4 sm:$0x11]  }
 0x1f9   : > { %5357 = vmatmul.mubr.msk.bf16.gmra.mrb[236].mxu0 %vm2287_vm9, %v2999_v23  ;;  %v5173_v24 = vpop.f32.mrb[135].mxu1  ;;  %v6924_v42 = vadd.f32 %v1998_v41, %v1788_v59  ;;  %v3001_v9 = vsel %vm712_vm4, %v2998_v38, %v3000_v31 }
 0x1fa   : > { %5360 = vmatprep.mubr.msk.bf16.mxu0 %vm5728_vm1, %v5727_v2  ;;  %v3253_v24 = vsel %vm1132_vm6, %v3243_v51, %v3252_v40  ;;  %v6988_v40 = vld [vmem:[%s5985_s17 + $0x20] sm:$0xff]  }
 0x1fb   : > { %5399 = vmatmul.mubr.msk.bf16.gmra.mrb[240].mxu1 %vm2287_vm9, %v3235_v60 }
 0x1fc   : > { %v1754_v53 = vpop.f32.mrb[132].mxu0  ;;  %5402 = vmatprep.mubr.msk.bf16.mxu1 %vm5728_vm1, %v5727_v2 }
 0x1fd   : > { %v1789_v16 = vadd.f32 %v1754_v53, %v6742_v3  ;;  %v5134_v13 = vpop.f32.mrb[133].mxu0  ;;  %v6964_v53 = vld [vmem:[%s5985_s17 + $0x18] sm:$0xff]  }
 0x1fe   : > { %v1757_v0 = vpop.f32.mrb[134].mxu0  ;;  %v2011_v63 = vpop.f32.mrb[136].mxu1  ;;  %v3655_v13 = vrot.slane %v6964_v53, 2 }
 0x1ff   : > { %v1790_v32 = vadd.f32 %v1757_v0, %v6752_v28  ;;  %v5135_v8 = vpop.f32.mrb[135].mxu0  ;;  %v5176_v41 = vpop.f32.mrb[137].mxu1  ;;  %v6937_v27 = vadd.f32 %v2003_v12, %v1789_v16  ;;  %v3002_v28 = vrot.slane %v6901_v36, 1 }
 0x200   : > { %v2014_v26 = vpop.f32.mrb[138].mxu1  ;;  %v4643_v41 = vcombine.low %v3407_v43, %v6736_v5 }
 0x201   : > { %5361 = vmatmul.mubr.msk.bf16.gmra.mrb[240].mxu0 %vm2287_vm9, %v3001_v9  ;;  %v5177_v3 = vpop.f32.mrb[139].mxu1  ;;  %v6941_v7 = vadd.f32 %v2006_v1, %v1790_v32  ;;  %v3003_v12 = vsel %vm712_vm4, %v3000_v31, %v3002_v28 }
 0x202   : > { %5364 = vmatprep.mubr.msk.bf16.mxu0 %vm5728_vm1, %v5727_v2 }
 0x203   : > { %5403 = vmatmul.mubr.msk.bf16.gmra.mrb[244].mxu1 %vm2287_vm9, %v3244_v15 }
 0x204   : > { %v1762_v38 = vpop.f32.mrb[136].mxu0  ;;  %5406 = vmatprep.mubr.msk.bf16.mxu1 %vm5728_vm1, %v5727_v2 }
 0x205   : > { %v1791_v22 = vadd.f32 %v1762_v38, %v6768_v6  ;;  %v5138_v45 = vpop.f32.mrb[137].mxu0  ;;  %v6961_v6 = vcombine.low %v3585_v48, %v6952_v4 }
 0x206   : > { %v1765_v23 = vpop.f32.mrb[138].mxu0  ;;  %v2019_v59 = vpop.f32.mrb[140].mxu1  ;;  %v3414_v45 = vrot.slane %v6749_v30, 2 }
 0x207   : > { %v1792_v11 = vadd.f32 %v1765_v23, %v6774_v56  ;;  %v5139_v1 = vpop.f32.mrb[139].mxu0  ;;  %v5180_v60 = vpop.f32.mrb[141].mxu1  ;;  %v6957_v46 = vadd.f32 %v2011_v63, %v1791_v22  ;;  %v3004_v56 = vrot.slane %v5673_v20, 1  ;;  %v3654_v51 = vrot.slane %v6961_v6, 2  ;;  %v4673_v23 = vld [vmem:[%s7521_s3 + $0xe] sm:$0x3] }
 0x208   : > { %v2022_v21 = vpop.f32.mrb[142].mxu1 }
 0x209   : > { %5365 = vmatmul.mubr.msk.bf16.gmra.mrb[244].mxu0 %vm2287_vm9, %v3003_v12  ;;  %v5181_v31 = vpop.f32.mrb[143].mxu1  ;;  %v6967_v29 = vadd.f32 %v2014_v26, %v1792_v11  ;;  %v3005_v32 = vsel %vm712_vm4, %v3002_v28, %v3004_v56  ;;  %v4684_v26 = vld [vmem:[%s7521_s3 + $0x10] sm:$0x3]  ;;  %v3657_v12 = vrot.slane %v6988_v40, 2 }
 0x20a   : > { %5368 = vmatprep.mubr.msk.bf16.mxu0 %vm5728_vm1, %v5727_v2  ;;  %v4127_v5 = vsel %vm2315_vm8, %v4684_v26, 0 }
 0x20b   : > { %5407 = vmatmul.mubr.msk.bf16.gmra.mrb[248].mxu1 %vm2287_vm9, %v3253_v24  ;;  %v3949_v24 = vsel %vm2315_vm8, %v4673_v23, 0 }
 0x20c   : > { %v1770_v16 = vpop.f32.mrb[140].mxu0  ;;  %5450 = vmatprep.mubr.msk.bf16.mxu1 %vm5728_vm1, %v5727_v2 }
 0x20d   : > { %v1793_v0 = vadd.f32 %v1770_v16, %v6789_v19  ;;  %v5142_v9 = vpop.f32.mrb[141].mxu0  ;;  %v3656_v19 = vsel %vm1381_vm5, %v3654_v51, %v3655_v13  ;;  %v3658_v16 = vsel %vm1381_vm5, %v3655_v13, %v3657_v12  ;;  %v7012_v51 = vld [vmem:[%s5985_s17 + $0x28] sm:$0xff]  }
 0x20e   : > { %v1773_v63 = vpop.f32.mrb[142].mxu0  ;;  %v2353_v8 = vpop.f32.mrb[144].mxu1  ;;  %v3659_v13 = vrot.slane %v7012_v51, 2 }
 0x20f   : > { %v1794_v15 = vadd.f32 %v1773_v63, %v6797_v37  ;;  %v5143_v55 = vpop.f32.mrb[143].mxu0  ;;  %v5224_v17 = vpop.f32.mrb[145].mxu1  ;;  %v6984_v3 = vadd.f32 %v2019_v59, %v1793_v0  ;;  %v3413_v37 = vrot.slane %v4643_v41, 2 }
 0x210   : > { %v2356_v38 = vpop.f32.mrb[146].mxu1 }
 0x211   : > { %5369 = vmatmul.mubr.msk.bf16.gmra.mrb[248].mxu0 %vm2287_vm9, %v3005_v32  ;;  %v5225_v28 = vpop.f32.mrb[147].mxu1  ;;  %v6992_v22 = vadd.f32 %v2022_v21, %v1794_v15  ;;  %v3415_v30 = vsel %vm1381_vm5, %v3413_v37, %v3414_v45  ;;  %v3418_v37 = vrot.slane %v6793_v62, 2 }
 0x212   : > { %5412 = vmatprep.mubr.msk.bf16.mxu0 %vm5728_vm1, %v5727_v2  ;;  %v7031_v28 = vld [vmem:[%s5985_s17 + $0x30] sm:$0xff]  }
 0x213   : > { %5451 = vmatmul.mubr.msk.bf16.vlgmr.msra.gmra.mrb[252].mxu1 %vm2287_vm9, %v3656_v19  ;;  %v3660_v19 = vsel %vm1381_vm5, %v3657_v12, %v3659_v13 }
 0x214   : > { %v2134_v48 = vpop.f32.mrb[144].mxu0  ;;  %5525 = vmatpush3.bf16.msra.mxu1 %v4127_v5  ;;  %5454 = vmatprep.mubr.msk.bf16.mxu1 %vm5728_vm1, %v5727_v2 }
 0x215   : > { %v2205_v59 = vadd.f32 %v2134_v48, %v6816_v34  ;;  %v5186_v20 = vpop.f32.mrb[145].mxu0 }
 0x216   : > { %v2137_v11 = vpop.f32.mrb[146].mxu0  ;;  %v2361_v1 = vpop.f32.mrb[148].mxu1 }
 0x217   : > { %v2206_v60 = vadd.f32 %v2137_v11, %v6823_v52  ;;  %v5187_v21 = vpop.f32.mrb[147].mxu0  ;;  %v5228_v31 = vpop.f32.mrb[149].mxu1  ;;  %v7008_v56 = vadd.f32 %v2353_v8, %v2205_v59  ;;  %v3416_v52 = vrot.slane %v6771_v57, 2 }
 0x218   : > { %v2364_v43 = vpop.f32.mrb[150].mxu1 }
 0x219   : > { %5413 = vmatmul.mubr.msk.bf16.vlgmr.msra.gmra.mrb[252].mxu0 %vm2287_vm9, %v3415_v30  ;;  %v5229_v34 = vpop.f32.mrb[151].mxu1  ;;  %v7015_v0 = vadd.f32 %v2356_v38, %v2206_v60  ;;  %v3417_v41 = vsel %vm1381_vm5, %v3414_v45, %v3416_v52  ;;  %v3661_v45 = vrot.slane %v7031_v28, 2  ;;  %v3419_v59 = vsel %vm1381_vm5, %v3416_v52, %v3418_v37 }
 0x21a   : > { %5487 = vmatpush3.bf16.msra.mxu0 %v3949_v24  ;;  %5416 = vmatprep.mubr.msk.bf16.mxu0 %vm5728_vm1, %v5727_v2  ;;  %v7050_v24 = vld [vmem:[%s5985_s17 + $0x38] sm:$0xff]  }
 0x21b   : > { %5455 = vmatmul.mubr.msk.bf16.gmra.mrb[0].mxu1 %vm2287_vm9, %v3658_v16  ;;  %v3662_v21 = vsel %vm1381_vm5, %v3659_v13, %v3661_v45  ;;  %v3663_v16 = vrot.slane %v7050_v24, 2 }
 0x21c   : > { %v2142_v9 = vpop.f32.mrb[148].mxu0  ;;  %5458 = vmatprep.mubr.msk.bf16.mxu1 %vm5728_vm1, %v5727_v2 }
 0x21d   : > { %v2207_v63 = vadd.f32 %v2142_v9, %v6837_v35  ;;  %v5190_v32 = vpop.f32.mrb[149].mxu0 }
 0x21e   : > { %v2145_v8 = vpop.f32.mrb[150].mxu0  ;;  %v2369_v26 = vpop.f32.mrb[152].mxu1 }
 0x21f   : > { %v2208_v15 = vadd.f32 %v2145_v8, %v6844_v54  ;;  %v5191_v55 = vpop.f32.mrb[151].mxu0  ;;  %v5232_v57 = vpop.f32.mrb[153].mxu1  ;;  %v7027_v17 = vadd.f32 %v2361_v1, %v2207_v63 }
 0x220   : > { %v2372_v38 = vpop.f32.mrb[154].mxu1  ;;  %v7069_v55 = vld [vmem:[%s5985_s17 + $0x40] sm:$0xff]  }
 0x221   : > { %5417 = vmatmul.mubr.msk.bf16.gmra.mrb[0].mxu0 %vm2287_vm9, %v3417_v41  ;;  %v5233_v5 = vpop.f32.mrb[155].mxu1  ;;  %v7034_v35 = vadd.f32 %v2364_v43, %v2208_v15  ;;  %v3420_v43 = vrot.slane %v6820_v39, 2  ;;  %v3664_v15 = vsel %vm1381_vm5, %v3661_v45, %v3663_v16 }
 0x222   : > { %5420 = vmatprep.mubr.msk.bf16.mxu0 %vm5728_vm1, %v5727_v2 }
 0x223   : > { %5459 = vmatmul.mubr.msk.bf16.gmra.mrb[4].mxu1 %vm2287_vm9, %v3660_v19  ;;  %v3421_v13 = vsel %vm1381_vm5, %v3418_v37, %v3420_v43  ;;  %v3665_v19 = vrot.slane %v7069_v55, 2 }
 0x224   : > { %v2150_v54 = vpop.f32.mrb[152].mxu0  ;;  %5462 = vmatprep.mubr.msk.bf16.mxu1 %vm5728_vm1, %v5727_v2 }
 0x225   : > { %v2209_v48 = vadd.f32 %v2150_v54, %v6857_v25  ;;  %v5194_v23 = vpop.f32.mrb[153].mxu0 }
 0x226   : > { %v2153_v12 = vpop.f32.mrb[154].mxu0  ;;  %v2377_v20 = vpop.f32.mrb[156].mxu1 }
 0x227   : > { %v2210_v11 = vadd.f32 %v2153_v12, %v6864_v50  ;;  %v5195_v30 = vpop.f32.mrb[155].mxu0  ;;  %v5236_v62 = vpop.f32.mrb[157].mxu1  ;;  %v7046_v1 = vadd.f32 %v2369_v26, %v2209_v48 }
 0x228   : > { %v2380_v60 = vpop.f32.mrb[158].mxu1  ;;  %v7088_v30 = vld [vmem:[%s5985_s17 + $0x48] sm:$0xff]  }
 0x229   : > { %5421 = vmatmul.mubr.msk.bf16.gmra.mrb[4].mxu0 %vm2287_vm9, %v3419_v59  ;;  %v5237_v31 = vpop.f32.mrb[159].mxu1  ;;  %v7053_v25 = vadd.f32 %v2372_v38, %v2210_v11  ;;  %v3422_v38 = vrot.slane %v6841_v58, 2  ;;  %v3666_v11 = vsel %vm1381_vm5, %v3663_v16, %v3665_v19 }
 0x22a   : > { %5424 = vmatprep.mubr.msk.bf16.mxu0 %vm5728_vm1, %v5727_v2 }
 0x22b   : > { %5463 = vmatmul.mubr.msk.bf16.gmra.mrb[8].mxu1 %vm2287_vm9, %v3662_v21  ;;  %v3423_v45 = vsel %vm1381_vm5, %v3420_v43, %v3422_v38  ;;  %v3667_v21 = vrot.slane %v7088_v30, 2 }
 0x22c   : > { %v2158_v50 = vpop.f32.mrb[156].mxu0  ;;  %5466 = vmatprep.mubr.msk.bf16.mxu1 %vm5728_vm1, %v5727_v2 }
 0x22d   : > { %v2211_v34 = vadd.f32 %v2158_v50, %v6877_v10  ;;  %v5198_v52 = vpop.f32.mrb[157].mxu0 }
 0x22e   : > { %v2161_v9 = vpop.f32.mrb[158].mxu0  ;;  %v2385_v63 = vpop.f32.mrb[160].mxu1 }
 0x22f   : > { %v2212_v32 = vadd.f32 %v2161_v9, %v6884_v14  ;;  %v5199_v8 = vpop.f32.mrb[159].mxu0  ;;  %v5240_v39 = vpop.f32.mrb[161].mxu1  ;;  %v7065_v41 = vadd.f32 %v2377_v20, %v2211_v34 }
 0x230   : > { %v2388_v26 = vpop.f32.mrb[162].mxu1  ;;  %v7107_v8 = vld [vmem:[%s5985_s17 + $0x50] sm:$0xff]  }
 0x231   : > { %5425 = vmatmul.mubr.msk.bf16.gmra.mrb[8].mxu0 %vm2287_vm9, %v3421_v13  ;;  %v5241_v57 = vpop.f32.mrb[163].mxu1  ;;  %v7072_v10 = vadd.f32 %v2380_v60, %v2212_v32  ;;  %v3424_v60 = vrot.slane %v6861_v44, 2  ;;  %v3668_v32 = vsel %vm1381_vm5, %v3665_v19, %v3667_v21 }
 0x232   : > { %5428 = vmatprep.mubr.msk.bf16.mxu0 %vm5728_vm1, %v5727_v2 }
 0x233   : > { %5467 = vmatmul.mubr.msk.bf16.gmra.mrb[12].mxu1 %vm2287_vm9, %v3664_v15  ;;  %v3425_v16 = vsel %vm1381_vm5, %v3422_v38, %v3424_v60  ;;  %v3669_v15 = vrot.slane %v7107_v8, 2 }
 0x234   : > { %v2166_v14 = vpop.f32.mrb[160].mxu0  ;;  %5470 = vmatprep.mubr.msk.bf16.mxu1 %vm5728_vm1, %v5727_v2 }
 0x235   : > { %v2213_v5 = vadd.f32 %v2166_v14, %v6897_v61  ;;  %v5202_v37 = vpop.f32.mrb[161].mxu0 }
 0x236   : > { %v2169_v54 = vpop.f32.mrb[162].mxu0  ;;  %v2393_v48 = vpop.f32.mrb[164].mxu1 }
 0x237   : > { %v2214_v23 = vadd.f32 %v2169_v54, %v6904_v33  ;;  %v5203_v12 = vpop.f32.mrb[163].mxu0  ;;  %v5244_v58 = vpop.f32.mrb[165].mxu1  ;;  %v7084_v59 = vadd.f32 %v2385_v63, %v2213_v5 }
 0x238   : > { %v2396_v20 = vpop.f32.mrb[166].mxu1  ;;  %v5685_v12 = vld [vmem:[%s5985_s17 + $0x58] ss:$0 sps:$4 sm:$0x33]  }
 0x239   : > { %5429 = vmatmul.mubr.msk.bf16.gmra.mrb[12].mxu0 %vm2287_vm9, %v3423_v45  ;;  %v5245_v62 = vpop.f32.mrb[167].mxu1  ;;  %v7091_v61 = vadd.f32 %v2388_v26, %v2214_v23  ;;  %v3426_v26 = vrot.slane %v6881_v49, 2  ;;  %v3670_v23 = vsel %vm1381_vm5, %v3667_v21, %v3669_v15 }
 0x23a   : > { %5432 = vmatprep.mubr.msk.bf16.mxu0 %vm5728_vm1, %v5727_v2  ;;  %v4074_v62 = vld [vmem:[%s5985_s17 + $0x10] sm:$0x8] }
 0x23b   : > { %5471 = vmatmul.mubr.msk.bf16.gmra.mrb[16].mxu1 %vm2287_vm9, %v3666_v11  ;;  %v3427_v19 = vsel %vm1381_vm5, %v3424_v60, %v3426_v26  ;;  %v3671_v11 = vrot.slane %v5685_v12, 2 }
 0x23c   : > { %v2174_v33 = vpop.f32.mrb[164].mxu0  ;;  %5474 = vmatprep.mubr.msk.bf16.mxu1 %vm5728_vm1, %v5727_v2 }
 0x23d   : > { %v2215_v31 = vadd.f32 %v2174_v33, %v6917_v18  ;;  %v5206_v43 = vpop.f32.mrb[165].mxu0 }
 0x23e   : > { %v2177_v50 = vpop.f32.mrb[166].mxu0  ;;  %v2401_v34 = vpop.f32.mrb[168].mxu1 }
 0x23f   : > { %v2216_v52 = vadd.f32 %v2177_v50, %v6924_v42  ;;  %v5207_v9 = vpop.f32.mrb[167].mxu0  ;;  %v5248_v44 = vpop.f32.mrb[169].mxu1  ;;  %v7103_v13 = vadd.f32 %v2393_v48, %v2215_v31 }
 0x240   : > { %v2404_v63 = vpop.f32.mrb[170].mxu1  ;;  %v3672_v44 = vsel %vm1381_vm5, %v3669_v15, %v3671_v11 }
 0x241   : > { %5433 = vmatmul.mubr.msk.bf16.gmra.mrb[16].mxu0 %vm2287_vm9, %v3425_v16  ;;  %v5249_v39 = vpop.f32.mrb[171].mxu1  ;;  %v7110_v18 = vadd.f32 %v2396_v20, %v2216_v52  ;;  %v3428_v20 = vrot.slane %v6901_v36, 2  ;;  %v4685_v52 = vcombine.low %v4074_v62, %v6952_v4 }
 0x242   : > { %5436 = vmatprep.mubr.msk.bf16.mxu0 %vm5728_vm1, %v5727_v2  ;;  %v3430_v39 = vrot.slane %v6921_v47, 2 }
 0x243   : > { %5475 = vmatmul.mubr.msk.bf16.gmra.mrb[20].mxu1 %vm2287_vm9, %v3668_v32  ;;  %v3429_v31 = vsel %vm1381_vm5, %v3426_v26, %v3428_v20  ;;  %v3841_v26 = vshrl.u32 %v6964_v53, 16  ;;  %v4080_v4 = vrot.slane %v4685_v52, 3 }
 0x244   : > { %v2182_v42 = vpop.f32.mrb[168].mxu0  ;;  %5478 = vmatprep.mubr.msk.bf16.mxu1 %vm5728_vm1, %v5727_v2 }
 0x245   : > { %v2217_v57 = vadd.f32 %v2182_v42, %v6937_v27  ;;  %v5210_v38 = vpop.f32.mrb[169].mxu0  ;;  %v3844_v42 = vshll.u32 %v6964_v53, 16 }
 0x246   : > { %v2185_v14 = vpop.f32.mrb[170].mxu0  ;;  %v2409_v5 = vpop.f32.mrb[172].mxu1 }
 0x247   : > { %v2218_v37 = vadd.f32 %v2185_v14, %v6941_v7  ;;  %v5211_v49 = vpop.f32.mrb[171].mxu0  ;;  %v5252_v54 = vpop.f32.mrb[173].mxu1  ;;  %v7122_v45 = vadd.f32 %v2401_v34, %v2217_v57  ;;  %v4081_v57 = vrot.slane %v6964_v53, 3 }
 0x248   : > { %v2412_v48 = vpop.f32.mrb[174].mxu1  ;;  %v3431_v49 = vsel %vm1381_vm5, %v3428_v20, %v3430_v39 }
 0x249   : > { %5437 = vmatmul.mubr.msk.bf16.gmra.mrb[20].mxu0 %vm2287_vm9, %v3427_v19  ;;  %v5253_v58 = vpop.f32.mrb[175].mxu1  ;;  %v7127_v27 = vadd.f32 %v2404_v63, %v2218_v37  ;;  %v3833_v63 = vshrl.u32 %v6961_v6, 16  ;;  %v3843_v19 = vrot.slane %v3841_v26, 2  ;;  %v4082_v53 = vsel %vm2050_vm10, %v4080_v4, %v4081_v57 }
 0x24a   : > { %5440 = vmatprep.mubr.msk.bf16.mxu0 %vm5728_vm1, %v5727_v2  ;;  %v3859_v4 = vshrl.u32 %v7012_v51, 16 }
 0x24b   : > { %5479 = vmatmul.mubr.msk.bf16.gmra.mrb[24].mxu1 %vm2287_vm9, %v3670_v23  ;;  %v3835_v38 = vrot.slane %v3833_v63, 2 }
 0x24c   : > { %v2190_v7 = vpop.f32.mrb[172].mxu0  ;;  %5482 = vmatprep.mubr.msk.bf16.mxu1 %vm5728_vm1, %v5727_v2 }
 0x24d   : > { %v2219_v60 = vadd.f32 %v2190_v7, %v6957_v46  ;;  %v5214_v33 = vpop.f32.mrb[173].mxu0 }
 0x24e   : > { %v2193_v21 = vpop.f32.mrb[174].mxu0  ;;  %v2417_v43 = vpop.f32.mrb[176].mxu1 }
 0x24f   : > { %v2220_v50 = vadd.f32 %v2193_v21, %v6967_v29  ;;  %v5215_v16 = vpop.f32.mrb[175].mxu0  ;;  %v5256_v34 = vpop.f32.mrb[177].mxu1  ;;  %v7139_v36 = vadd.f32 %v2409_v5, %v2219_v60  ;;  %v3836_v29 = vshll.u32 %v6961_v6, 16  ;;  %v3846_v5 = vrot.slane %v3844_v42, 3 }
 0x250   : > { %v2420_v9 = vpop.f32.mrb[178].mxu1  ;;  %v3850_v60 = vshrl.u32 %v6988_v40, 16  ;;  %v4083_v21 = vrot.slane %v6988_v40, 3 }
 0x251   : > { %5441 = vmatmul.mubr.msk.bf16.gmra.mrb[24].mxu0 %vm2287_vm9, %v3429_v31  ;;  %v5257_v46 = vpop.f32.mrb[179].mxu1  ;;  %v7145_v32 = vadd.f32 %v2412_v48, %v2220_v50  ;;  %v3838_v14 = vrot.slane %v3836_v29, 3  ;;  %v3847_v20 = vor.u32 %v3846_v5, %v3843_v19  ;;  %v3861_v5 = vrot.slane %v3859_v4, 2 }
 0x252   : > { %5444 = vmatprep.mubr.msk.bf16.mxu0 %vm5728_vm1, %v5727_v2  ;;  %v3852_v52 = vrot.slane %v3850_v60, 2  ;;  %v4084_v26 = vsel %vm2050_vm10, %v4081_v57, %v4083_v21  ;;  %v4085_v57 = vrot.slane %v7012_v51, 3 }
 0x253   : > { %5483 = vmatmul.mubr.msk.bf16.gmra.mrb[28].mxu1 %vm2287_vm9, %v3672_v44  ;;  %v3839_v62 = vor.u32 %v3838_v14, %v3835_v38 }
 0x254   : > { %v2198_v15 = vpop.f32.mrb[176].mxu0  ;;  %5526 = vmatprep.mubr.msk.bf16.mxu1 %vm5728_vm1, %v5727_v2 }
 0x255   : > { %v2221_v47 = vadd.f32 %v2198_v15, %v6984_v3  ;;  %v5218_v6 = vpop.f32.mrb[177].mxu0  ;;  %v3848_v16 = vsel %vm1801_vm7, %v3839_v62, %v3847_v20 }
 0x256   : > { %v2201_v37 = vpop.f32.mrb[178].mxu0  ;;  %v2829_v54 = vpop.f32.mrb[180].mxu1 }
 0x257   : > { %v2222_v48 = vadd.f32 %v2201_v37, %v6992_v22  ;;  %v5219_v23 = vpop.f32.mrb[179].mxu0  ;;  %v5300_v12 = vpop.f32.mrb[181].mxu1  ;;  %v7160_v58 = vadd.f32 %v2417_v43, %v2221_v47  ;;  %v3853_v22 = vshll.u32 %v6988_v40, 16 }
 0x258   : > { %v2832_v7 = vpop.f32.mrb[182].mxu1 }
 0x259   : > { %5445 = vmatmul.mubr.msk.bf16.gmra.mrb[28].mxu0 %vm2287_vm9, %v3431_v49  ;;  %v5301_v3 = vpop.f32.mrb[183].mxu1  ;;  %v7164_v11 = vadd.f32 %v2420_v9, %v2222_v48  ;;  %v3855_v9 = vrot.slane %v3853_v22, 3 }
 0x25a   : > { %5488 = vmatprep.mubr.msk.bf16.mxu0 %vm5728_vm1, %v5727_v2  ;;  %v3868_v3 = vshrl.u32 %v7031_v28, 16 }
 0x25b   : > { %5527 = vmatmul.mubr.msk.bf16.vlgmr.msra.gmra.mrb[32].mxu1 %vm2287_vm9, %v4082_v53  ;;  %v3856_v42 = vor.u32 %v3855_v9, %v3852_v52 }
 0x25c   : > { %v2651_v33 = vpop.f32.mrb[180].mxu0  ;;  %5530 = vmatprep.mubr.msk.bf16.mxu1 %vm5728_vm1, %v5727_v2 }
 0x25d   : > { %v2722_v31 = vadd.f32 %v2651_v33, %v7008_v56  ;;  %v5262_v43 = vpop.f32.mrb[181].mxu0  ;;  %v3857_v14 = vsel %vm1801_vm7, %v3847_v20, %v3856_v42  ;;  %v4087_v20 = vrot.slane %v7031_v28, 3 }
 0x25e   : > { %v2654_v50 = vpop.f32.mrb[182].mxu0  ;;  %v2837_v34 = vpop.f32.mrb[184].mxu1  ;;  %v3870_v43 = vrot.slane %v3868_v3, 2 }
 0x25f   : > { %v2723_v44 = vadd.f32 %v2654_v50, %v7015_v0  ;;  %v5263_v63 = vpop.f32.mrb[183].mxu0  ;;  %v5304_v46 = vpop.f32.mrb[185].mxu1  ;;  %v7177_v39 = vadd.f32 %v2829_v54, %v2722_v31  ;;  %v3862_v0 = vshll.u32 %v7012_v51, 16 }
 0x260   : > { %v2840_v29 = vpop.f32.mrb[186].mxu1  ;;  %v4088_v63 = vsel %vm2050_vm10, %v4085_v57, %v4087_v20 }
 0x261   : > { %5489 = vmatmul.mubr.msk.bf16.vlgmr.msra.gmra.mrb[32].mxu0 %vm2287_vm9, %v3848_v16  ;;  %v5305_v40 = vpop.f32.mrb[187].mxu1  ;;  %v7181_v56 = vadd.f32 %v2832_v7, %v2723_v44  ;;  %v3864_v37 = vrot.slane %v3862_v0, 3  ;;  %v4086_v7 = vsel %vm2050_vm10, %v4083_v21, %v4085_v57 }
 0x262   : > { %5492 = vmatprep.mubr.msk.bf16.mxu0 %vm5728_vm1, %v5727_v2  ;;  %v4089_v40 = vrot.slane %v7050_v24, 3 }
 0x263   : > { %5531 = vmatmul.mubr.msk.bf16.gmra.mrb[36].mxu1 %vm2287_vm9, %v4084_v26  ;;  %v3865_v53 = vor.u32 %v3864_v37, %v3861_v5 }
 0x264   : > { %v2659_v15 = vpop.f32.mrb[184].mxu0  ;;  %5534 = vmatprep.mubr.msk.bf16.mxu1 %vm5728_vm1, %v5727_v2 }
 0x265   : > { %v2724_v38 = vadd.f32 %v2659_v15, %v7027_v17  ;;  %v5266_v47 = vpop.f32.mrb[185].mxu0  ;;  %v3866_v21 = vsel %vm1801_vm7, %v3856_v42, %v3865_v53 }
 0x266   : > { %v2662_v6 = vpop.f32.mrb[186].mxu0  ;;  %v2845_v19 = vpop.f32.mrb[188].mxu1 }
 0x267   : > { %v2725_v49 = vadd.f32 %v2662_v6, %v7034_v35  ;;  %v5267_v54 = vpop.f32.mrb[187].mxu0  ;;  %v5308_v48 = vpop.f32.mrb[189].mxu1  ;;  %v7194_v23 = vadd.f32 %v2837_v34, %v2724_v38  ;;  %v3871_v35 = vshll.u32 %v7031_v28, 16 }
 0x268   : > { %v2848_v12 = vpop.f32.mrb[190].mxu1  ;;  %v3886_v48 = vshrl.u32 %v7069_v55, 16 }
 0x269   : > { %5493 = vmatmul.mubr.msk.bf16.gmra.mrb[36].mxu0 %vm2287_vm9, %v3857_v14  ;;  %v5309_v51 = vpop.f32.mrb[191].mxu1  ;;  %v7198_v17 = vadd.f32 %v2840_v29, %v2725_v49  ;;  %v3873_v50 = vrot.slane %v3871_v35, 3  ;;  %v3877_v29 = vshrl.u32 %v7050_v24, 16  ;;  %v4090_v49 = vsel %vm2050_vm10, %v4087_v20, %v4089_v40 }
 0x26a   : > { %5496 = vmatprep.mubr.msk.bf16.mxu0 %vm5728_vm1, %v5727_v2  ;;  %v3888_v20 = vrot.slane %v3886_v48, 2 }
 0x26b   : > { %5535 = vmatmul.mubr.msk.bf16.gmra.mrb[40].mxu1 %vm2287_vm9, %v4086_v7  ;;  %v3874_v46 = vor.u32 %v3873_v50, %v3870_v43  ;;  %v3879_v38 = vrot.slane %v3877_v29, 2  ;;  %v4091_v7 = vrot.slane %v7069_v55, 3 }
 0x26c   : > { %v2667_v62 = vpop.f32.mrb[188].mxu0  ;;  %5538 = vmatprep.mubr.msk.bf16.mxu1 %vm5728_vm1, %v5727_v2 }
 0x26d   : > { %v2726_v60 = vadd.f32 %v2667_v62, %v7046_v1  ;;  %v5270_v22 = vpop.f32.mrb[189].mxu0  ;;  %v3875_v15 = vsel %vm1801_vm7, %v3865_v53, %v3874_v46  ;;  %v4092_v50 = vsel %vm2050_vm10, %v4089_v40, %v4091_v7 }
 0x26e   : > { %v2670_v33 = vpop.f32.mrb[190].mxu0  ;;  %v2853_v31 = vpop.f32.mrb[192].mxu1 }
 0x26f   : > { %v2727_v16 = vadd.f32 %v2670_v33, %v7053_v25  ;;  %v5271_v34 = vpop.f32.mrb[191].mxu0  ;;  %v5312_v52 = vpop.f32.mrb[193].mxu1  ;;  %v7211_v9 = vadd.f32 %v2845_v19, %v2726_v60  ;;  %v3880_v25 = vshll.u32 %v7050_v24, 16 }
 0x270   : > { %v2856_v44 = vpop.f32.mrb[194].mxu1  ;;  %v3895_v34 = vshrl.u32 %v7088_v30, 16 }
 0x271   : > { %5497 = vmatmul.mubr.msk.bf16.gmra.mrb[40].mxu0 %vm2287_vm9, %v3866_v21  ;;  %v5313_v28 = vpop.f32.mrb[195].mxu1  ;;  %v7215_v1 = vadd.f32 %v2848_v12, %v2727_v16  ;;  %v3882_v47 = vrot.slane %v3880_v25, 3 }
 0x272   : > { %5500 = vmatprep.mubr.msk.bf16.mxu0 %vm5728_vm1, %v5727_v2 }
 0x273   : > { %5539 = vmatmul.mubr.msk.bf16.gmra.mrb[44].mxu1 %vm2287_vm9, %v4088_v63  ;;  %v3883_v54 = vor.u32 %v3882_v47, %v3879_v38 }
 0x274   : > { %v2675_v26 = vpop.f32.mrb[192].mxu0  ;;  %5542 = vmatprep.mubr.msk.bf16.mxu1 %vm5728_vm1, %v5727_v2 }
 0x275   : > { %v2728_v42 = vadd.f32 %v2675_v26, %v7065_v41  ;;  %v5274_v4 = vpop.f32.mrb[193].mxu0  ;;  %v3884_v35 = vsel %vm1801_vm7, %v3874_v46, %v3883_v54  ;;  %v3897_v26 = vrot.slane %v3895_v34, 2 }
 0x276   : > { %v2678_v0 = vpop.f32.mrb[194].mxu0  ;;  %v2861_v57 = vpop.f32.mrb[196].mxu1 }
 0x277   : > { %v2729_v6 = vadd.f32 %v2678_v0, %v7072_v10  ;;  %v5275_v14 = vpop.f32.mrb[195].mxu0  ;;  %v5316_v19 = vpop.f32.mrb[197].mxu1  ;;  %v7228_v5 = vadd.f32 %v2853_v31, %v2728_v42  ;;  %v3889_v10 = vshll.u32 %v7069_v55, 16 }
 0x278   : > { %v2864_v37 = vpop.f32.mrb[198].mxu1  ;;  %v4095_v19 = vrot.slane %v7107_v8, 3 }
 0x279   : > { %5501 = vmatmul.mubr.msk.bf16.gmra.mrb[44].mxu0 %vm2287_vm9, %v3875_v15  ;;  %v5317_v24 = vpop.f32.mrb[199].mxu1  ;;  %v7232_v41 = vadd.f32 %v2856_v44, %v2729_v6  ;;  %v3891_v60 = vrot.slane %v3889_v10, 3  ;;  %v4093_v44 = vrot.slane %v7088_v30, 3 }
 0x27a   : > { %5504 = vmatprep.mubr.msk.bf16.mxu0 %vm5728_vm1, %v5727_v2 }
 0x27b   : > { %5543 = vmatmul.mubr.msk.bf16.gmra.mrb[48].mxu1 %vm2287_vm9, %v4090_v49  ;;  %v3892_v16 = vor.u32 %v3891_v60, %v3888_v20  ;;  %v4094_v38 = vsel %vm2050_vm10, %v4091_v7, %v4093_v44  ;;  %v5686_v7 = vld [vmem:[%s5985_s17 + $0x58] ss:$0 sps:$4 sm:$0x77]   ;;  %v4096_v20 = vsel %vm2050_vm10, %v4093_v44, %v4095_v19  ;;  %s5564_s17 = smul.u32 18, %s7537_s18 }
 0x27c   : > { %v2683_v12 = vpop.f32.mrb[196].mxu0  ;;  %5546 = vmatprep.mubr.msk.bf16.mxu1 %vm5728_vm1, %v5727_v2 }
 0x27d   : > { %v2730_v51 = vadd.f32 %v2683_v12, %v7084_v59  ;;  %v5278_v53 = vpop.f32.mrb[197].mxu0  ;;  %v3893_v29 = vsel %vm1801_vm7, %v3883_v54, %v3892_v16  ;;  %s292_s13 = sadd.s32 %s5565_s11, %s5564_s17 }
 0x27e   : > { %v2686_v3 = vpop.f32.mrb[198].mxu0  ;;  %v2869_v62 = vpop.f32.mrb[200].mxu1  ;;  %s4437_s18 = sshll.u32 %s292_s13, 3 }
 0x27f   : > { %v2731_v22 = vadd.f32 %v2686_v3, %v7091_v61  ;;  %v5279_v33 = vpop.f32.mrb[199].mxu0  ;;  %v5320_v21 = vpop.f32.mrb[201].mxu1  ;;  %v7245_v31 = vadd.f32 %v2861_v57, %v2730_v51  ;;  %v3898_v61 = vshll.u32 %v7088_v30, 16  ;;  %s7432_s16 = scalar_lea.vmem %s7523_s5, %s4437_s18 }
 0x280   : > { %v2872_v43 = vpop.f32.mrb[202].mxu1  ;;  %v3916_v33 = vshll.u32 %v5686_v7, 16  ;;  %v4097_v21 = vrot.slane %v5686_v7, 3 }
 0x281   : > { %5505 = vmatmul.mubr.msk.bf16.gmra.mrb[48].mxu0 %vm2287_vm9, %v3884_v35  ;;  %v5321_v55 = vpop.f32.mrb[203].mxu1  ;;  %v7249_v59 = vadd.f32 %v2864_v37, %v2731_v22  ;;  %v3900_v40 = vrot.slane %v3898_v61, 3  ;;  %v3913_v22 = vshrl.u32 %v5686_v7, 16 }
 0x282   : > { %5508 = vmatprep.mubr.msk.bf16.mxu0 %vm5728_vm1, %v5727_v2 }
 0x283   : > { %5547 = vmatmul.mubr.msk.bf16.gmra.mrb[52].mxu1 %vm2287_vm9, %v4092_v50  ;;  %v3901_v6 = vor.u32 %v3900_v40, %v3897_v26  ;;  %v3915_v61 = vrot.slane %v3913_v22, 2 }
 0x284   : > { %v2691_v52 = vpop.f32.mrb[200].mxu0  ;;  %5550 = vmatprep.mubr.msk.bf16.mxu1 %vm5728_vm1, %v5727_v2 }
 0x285   : > { %v2732_v63 = vadd.f32 %v2691_v52, %v7103_v13  ;;  %v5282_v28 = vpop.f32.mrb[201].mxu0  ;;  %v3904_v13 = vshrl.u32 %v7107_v8, 16  ;;  %v3902_v48 = vsel %vm1801_vm7, %v3892_v16, %v3901_v6  ;;  %v3918_v52 = vrot.slane %v3916_v33, 3 }
 0x286   : > { %v2694_v46 = vpop.f32.mrb[202].mxu0  ;;  %v2877_v25 = vpop.f32.mrb[204].mxu1 }
 0x287   : > { %v2733_v42 = vadd.f32 %v2694_v46, %v7110_v18  ;;  %v5283_v4 = vpop.f32.mrb[203].mxu0  ;;  %v5324_v0 = vpop.f32.mrb[205].mxu1  ;;  %v7262_v15 = vadd.f32 %v2869_v62, %v2732_v63  ;;  %v3907_v18 = vshll.u32 %v7107_v8, 16  ;;  %v3906_v24 = vrot.slane %v3904_v13, 2 }
 0x288   : > { %v2880_v57 = vpop.f32.mrb[206].mxu1  ;;  %v3919_v40 = vor.u32 %v3918_v52, %v3915_v61 }
 0x289   : > { %5509 = vmatmul.mubr.msk.bf16.gmra.mrb[52].mxu0 %vm2287_vm9, %v3893_v29  ;;  %v5325_v30 = vpop.f32.mrb[207].mxu1  ;;  %v7267_v47 = vadd.f32 %v2872_v43, %v2733_v42  ;;  %v3909_v12 = vrot.slane %v3907_v18, 3 }
 0x28a   : > { %5512 = vmatprep.mubr.msk.bf16.mxu0 %vm5728_vm1, %v5727_v2 }
 0x28b   : > { %5551 = vmatmul.mubr.msk.bf16.gmra.mrb[56].mxu1 %vm2287_vm9, %v4094_v38  ;;  %v3910_v60 = vor.u32 %v3909_v12, %v3906_v24 }
 0x28c   : > { %v2699_v14 = vpop.f32.mrb[204].mxu0  ;;  %5554 = vmatprep.mubr.msk.bf16.mxu1 %vm5728_vm1, %v5727_v2 }
 0x28d   : > { %v2734_v37 = vadd.f32 %v2699_v14, %v7122_v45  ;;  %v5286_v49 = vpop.f32.mrb[205].mxu0  ;;  %v3911_v16 = vsel %vm1801_vm7, %v3901_v6, %v3910_v60 }
 0x28e   : > { %v2702_v54 = vpop.f32.mrb[206].mxu0  ;;  %v2885_v10 = vpop.f32.mrb[208].mxu1 }
 0x28f   : > { %v2735_v51 = vadd.f32 %v2702_v54, %v7127_v27  ;;  %v5287_v53 = vpop.f32.mrb[207].mxu0  ;;  %v5328_v3 = vpop.f32.mrb[209].mxu1  ;;  %v7280_v35 = vadd.f32 %v2877_v25, %v2734_v37  ;;  %v4098_v25 = vsel %vm2050_vm10, %v4095_v19, %v4097_v21 }
 0x290   : > { %v2888_v62 = vpop.f32.mrb[210].mxu1 }
 0x291   : > { %5513 = vmatmul.mubr.msk.bf16.gmra.mrb[56].mxu0 %vm2287_vm9, %v3902_v48  ;;  %v5329_v8 = vpop.f32.mrb[211].mxu1  ;;  %v7284_v45 = vadd.f32 %v2880_v57, %v2735_v51  ;;  %v3920_v57 = vsel %vm1801_vm7, %v3910_v60, %v3919_v40 }
 0x292   : > { %5516 = vmatprep.mubr.msk.bf16.mxu0 %vm5728_vm1, %v5727_v2 }
 0x293   : > { %5555 = vmatmul.mubr.msk.bf16.gmra.mrb[60].mxu1 %vm2287_vm9, %v4096_v20 }
 0x294   : > { %v2707_v27 = vpop.f32.mrb[208].mxu0  ;;  %5558 = vmatprep.mubr.msk.bf16.mxu1 %vm5728_vm1, %v5727_v2 }
 0x295   : > { %v2736_v43 = vadd.f32 %v2707_v27, %v7139_v36  ;;  %v5290_v50 = vpop.f32.mrb[209].mxu0 }
 0x296   : > { %v2710_v55 = vpop.f32.mrb[210].mxu0  ;;  %v2893_v34 = vpop.f32.mrb[212].mxu1 }
 0x297   : > { %v2737_v44 = vadd.f32 %v2710_v55, %v7145_v32  ;;  %v5291_v63 = vpop.f32.mrb[211].mxu0  ;;  %v5332_v28 = vpop.f32.mrb[213].mxu1  ;;  %v7294_v46 = vadd.f32 %v2885_v10, %v2736_v43 }
 0x298   : > { %v2896_v29 = vpop.f32.mrb[214].mxu1 }
 0x299   : > { %5517 = vmatmul.mubr.msk.bf16.gmra.mrb[60].mxu0 %vm2287_vm9, %v3911_v16  ;;  %v5333_v26 = vpop.f32.mrb[215].mxu1  ;;  %v7298_v36 = vadd.f32 %v2888_v62, %v2737_v44 }
 0x29a   : > { %5520 = vmatprep.mubr.msk.bf16.mxu0 %vm5728_vm1, %v5727_v2 }
 0x29b   : > { %5559 = vmatmul.mubr.msk.bf16.gmra.mrb[64].mxu1 %vm2287_vm9, %v4098_v25 }
 0x29c   : > { %v2715_v42 = vpop.f32.mrb[212].mxu0 }
 0x29d   : > { %v2738_v32 = vadd.f32 %v2715_v42, %v7160_v58  ;;  %v5294_v4 = vpop.f32.mrb[213].mxu0 }
 0x29e   : > { %v2718_v0 = vpop.f32.mrb[214].mxu0  ;;  %v3318_v38 = vpop.f32.mrb[216].mxu1 }
 0x29f   : > { %v2739_v30 = vadd.f32 %v2718_v0, %v7164_v11  ;;  %v5295_v13 = vpop.f32.mrb[215].mxu0  ;;  %v5376_v6 = vpop.f32.mrb[217].mxu1  ;;  %v7306_v18 = vadd.f32 %v2893_v34, %v2738_v32 }
 0x2a0   : > { %v3321_v14 = vpop.f32.mrb[218].mxu1 }
 0x2a1   : > { %5521 = vmatmul.mubr.msk.bf16.gmra.mrb[64].mxu0 %vm2287_vm9, %v3920_v57  ;;  %v5377_v2 = vpop.f32.mrb[219].mxu1  ;;  %v7309_v19 = vadd.f32 %v2896_v29, %v2739_v30 }
 0x2a4   : > { %v3070_v37 = vpop.f32.mrb[216].mxu0 }
 0x2a5   : > { %v3141_v58 = vadd.f32 %v3070_v37, %v7177_v39  ;;  %v5338_v49 = vpop.f32.mrb[217].mxu0 }
 0x2a6   : > { %v3073_v24 = vpop.f32.mrb[218].mxu0  ;;  %v3326_v54 = vpop.f32.mrb[220].mxu1 }
 0x2a7   : > { %v3142_v48 = vadd.f32 %v3073_v24, %v7181_v56  ;;  %v5339_v10 = vpop.f32.mrb[219].mxu0  ;;  %v5380_v11 = vpop.f32.mrb[221].mxu1  ;;  %v7313_v12 = vadd.f32 %v3318_v38, %v3141_v58 }
 0x2a8   : > { %v3329_v7 = vpop.f32.mrb[222].mxu1 }
 0x2a9   : > { %v5381_v51 = vpop.f32.mrb[223].mxu1  ;;  %v7315_v53 = vadd.f32 %v3321_v14, %v3142_v48 }
 0x2ac   : > { %v3078_v3 = vpop.f32.mrb[220].mxu0 }
 0x2ad   : > { %v3143_v62 = vadd.f32 %v3078_v3, %v7194_v23  ;;  %v5342_v20 = vpop.f32.mrb[221].mxu0 }
 0x2ae   : > { %v3081_v8 = vpop.f32.mrb[222].mxu0  ;;  %v3334_v60 = vpop.f32.mrb[224].mxu1 }
 0x2af   : > { %v3144_v39 = vadd.f32 %v3081_v8, %v7198_v17  ;;  %v5343_v22 = vpop.f32.mrb[223].mxu0  ;;  %v5384_v33 = vpop.f32.mrb[225].mxu1  ;;  %v7319_v27 = vadd.f32 %v3326_v54, %v3143_v62 }
 0x2b0   : > { %v3337_v56 = vpop.f32.mrb[226].mxu1 }
 0x2b1   : > { %v5385_v21 = vpop.f32.mrb[227].mxu1  ;;  %v7321_v43 = vadd.f32 %v3329_v7, %v3144_v39 }
 0x2b4   : > { %v3086_v50 = vpop.f32.mrb[224].mxu0 }
 0x2b5   : > { %v3145_v55 = vadd.f32 %v3086_v50, %v7211_v9  ;;  %v5346_v16 = vpop.f32.mrb[225].mxu0 }
 0x2b6   : > { %v3089_v34 = vpop.f32.mrb[226].mxu0  ;;  %v3342_v61 = vpop.f32.mrb[228].mxu1 }
 0x2b7   : > { %v3146_v23 = vadd.f32 %v3089_v34, %v7215_v1  ;;  %v5347_v52 = vpop.f32.mrb[227].mxu0  ;;  %v5388_v44 = vpop.f32.mrb[229].mxu1  ;;  %v7325_v63 = vadd.f32 %v3334_v60, %v3145_v55 }
 0x2b8   : > { %v3345_v17 = vpop.f32.mrb[230].mxu1 }
 0x2b9   : > { %v5389_v28 = vpop.f32.mrb[231].mxu1  ;;  %v7327_v29 = vadd.f32 %v3337_v56, %v3146_v23 }
 0x2bc   : > { %v3094_v25 = vpop.f32.mrb[228].mxu0 }
 0x2bd   : > { %v3147_v26 = vadd.f32 %v3094_v25, %v7228_v5  ;;  %v5350_v40 = vpop.f32.mrb[229].mxu0 }
 0x2be   : > { %v3097_v42 = vpop.f32.mrb[230].mxu0  ;;  %v3350_v32 = vpop.f32.mrb[232].mxu1 }
 0x2bf   : > { %v3148_v9 = vadd.f32 %v3097_v42, %v7232_v41  ;;  %v5351_v4 = vpop.f32.mrb[231].mxu0  ;;  %v5392_v0 = vpop.f32.mrb[233].mxu1  ;;  %v7331_v57 = vadd.f32 %v3342_v61, %v3147_v26 }
 0x2c0   : > { %v3353_v1 = vpop.f32.mrb[234].mxu1 }
 0x2c1   : > { %v5393_v38 = vpop.f32.mrb[235].mxu1  ;;  %v7333_v30 = vadd.f32 %v3345_v17, %v3148_v9 }
 0x2c4   : > { %v3102_v13 = vpop.f32.mrb[232].mxu0 }
 0x2c5   : > { %v3149_v6 = vadd.f32 %v3102_v13, %v7245_v31  ;;  %v5354_v14 = vpop.f32.mrb[233].mxu0 }
 0x2c6   : > { %v3105_v2 = vpop.f32.mrb[234].mxu0  ;;  %v3358_v37 = vpop.f32.mrb[236].mxu1 }
 0x2c7   : > { %v3150_v5 = vadd.f32 %v3105_v2, %v7249_v59  ;;  %v5355_v58 = vpop.f32.mrb[235].mxu0  ;;  %v5396_v49 = vpop.f32.mrb[237].mxu1  ;;  %v7337_v24 = vadd.f32 %v3350_v32, %v3149_v6 }
 0x2c8   : > { %v3361_v41 = vpop.f32.mrb[238].mxu1 }
 0x2c9   : > { %v5397_v54 = vpop.f32.mrb[239].mxu1  ;;  %v7339_v48 = vadd.f32 %v3353_v1, %v3150_v5 }
 0x2cc   : > { %v3110_v10 = vpop.f32.mrb[236].mxu0 }
 0x2cd   : > { %v3151_v11 = vadd.f32 %v3110_v10, %v7262_v15  ;;  %v5358_v7 = vpop.f32.mrb[237].mxu0 }
 0x2ce   : > { %v3113_v51 = vpop.f32.mrb[238].mxu0  ;;  %v3366_v3 = vpop.f32.mrb[240].mxu1 }
 0x2cf   : > { %v3152_v31 = vadd.f32 %v3113_v51, %v7267_v47  ;;  %v5359_v62 = vpop.f32.mrb[239].mxu0  ;;  %v5400_v20 = vpop.f32.mrb[241].mxu1  ;;  %v7343_v8 = vadd.f32 %v3358_v37, %v3151_v11 }
 0x2d0   : > { %v3369_v59 = vpop.f32.mrb[242].mxu1 }
 0x2d1   : > { %v5401_v60 = vpop.f32.mrb[243].mxu1  ;;  %v7345_v39 = vadd.f32 %v3361_v41, %v3152_v31 }
 0x2d4   : > { %v3118_v22 = vpop.f32.mrb[240].mxu0 }
 0x2d5   : > { %v3153_v33 = vadd.f32 %v3118_v22, %v7280_v35  ;;  %v5362_v56 = vpop.f32.mrb[241].mxu0 }
 0x2d6   : > { %v3121_v21 = vpop.f32.mrb[242].mxu0  ;;  %v3374_v50 = vpop.f32.mrb[244].mxu1 }
 0x2d7   : > { %v3154_v15 = vadd.f32 %v3121_v21, %v7284_v45  ;;  %v5363_v55 = vpop.f32.mrb[243].mxu0  ;;  %v5404_v16 = vpop.f32.mrb[245].mxu1  ;;  %v7349_v34 = vadd.f32 %v3366_v3, %v3153_v33 }
 0x2d8   : > { %v3377_v47 = vpop.f32.mrb[246].mxu1 }
 0x2d9   : > { %v5405_v61 = vpop.f32.mrb[247].mxu1  ;;  %v7351_v23 = vadd.f32 %v3369_v59, %v3154_v15 }
 0x2dc   : > { %v3126_v52 = vpop.f32.mrb[244].mxu0 }
 0x2dd   : > { %v3155_v44 = vadd.f32 %v3126_v52, %v7294_v46  ;;  %v5366_v17 = vpop.f32.mrb[245].mxu0 }
 0x2de   : > { %v3129_v28 = vpop.f32.mrb[246].mxu0  ;;  %v3382_v25 = vpop.f32.mrb[248].mxu1 }
 0x2df   : > { %v3156_v35 = vadd.f32 %v3129_v28, %v7298_v36  ;;  %v5367_v26 = vpop.f32.mrb[247].mxu0  ;;  %v5408_v40 = vpop.f32.mrb[249].mxu1  ;;  %v7355_v42 = vadd.f32 %v3374_v50, %v3155_v44 }
 0x2e0   : > { %v3385_v45 = vpop.f32.mrb[250].mxu1 }
 0x2e1   : > { %v5409_v32 = vpop.f32.mrb[251].mxu1  ;;  %v7357_v9 = vadd.f32 %v3377_v47, %v3156_v35 }
 0x2e4   : > { %v3134_v4 = vpop.f32.mrb[248].mxu0 }
 0x2e5   : > { %v3157_v0 = vadd.f32 %v3134_v4, %v7306_v18  ;;  %v5370_v1 = vpop.f32.mrb[249].mxu0 }
 0x2e6   : > { %v3137_v38 = vpop.f32.mrb[250].mxu0  ;;  %v3737_v13 = vpop.f32.mrb[252].mxu1 }
 0x2e7   : > { %v3158_v46 = vadd.f32 %v3137_v38, %v7309_v19  ;;  %v5371_v6 = vpop.f32.mrb[251].mxu0  ;;  %v5452_v14 = vpop.f32.mrb[253].mxu1  ;;  %v7361_v2 = vadd.f32 %v3382_v25, %v3157_v0 }
 0x2e8   : > { %v3740_v36 = vpop.f32.mrb[254].mxu1 }
 0x2e9   : > { %v5453_v37 = vpop.f32.mrb[255].mxu1  ;;  %v7363_v5 = vadd.f32 %v3385_v45, %v3158_v46 }
 0x2ec   : > { %v3496_v58 = vpop.f32.mrb[252].mxu0 }
 0x2ed   : > { %v3567_v49 = vadd.f32 %v3496_v58, %v7313_v12  ;;  %v5414_v41 = vpop.f32.mrb[253].mxu0 }
 0x2ee   : > { %v3499_v54 = vpop.f32.mrb[254].mxu0  ;;  %v3745_v10 = vpop.f32.mrb[0].mxu1 }
 0x2ef   : > { %v3568_v18 = vadd.f32 %v3499_v54, %v7315_v53  ;;  %v5415_v11 = vpop.f32.mrb[255].mxu0  ;;  %v5456_v7 = vpop.f32.mrb[1].mxu1  ;;  %v7367_v51 = vadd.f32 %v3737_v13, %v3567_v49 }
 0x2f0   : > { %v3748_v19 = vpop.f32.mrb[2].mxu1 }
 0x2f1   : > { %v5457_v3 = vpop.f32.mrb[3].mxu1  ;;  %v7369_v31 = vadd.f32 %v3740_v36, %v3568_v18 }
 0x2f4   : > { %v3504_v62 = vpop.f32.mrb[0].mxu0 }
 0x2f5   : > { %v3569_v20 = vadd.f32 %v3504_v62, %v7319_v27  ;;  %v5418_v59 = vpop.f32.mrb[1].mxu0 }
 0x2f6   : > { %v3507_v60 = vpop.f32.mrb[2].mxu0  ;;  %v3753_v22 = vpop.f32.mrb[4].mxu1 }
 0x2f7   : > { %v3570_v12 = vadd.f32 %v3507_v60, %v7321_v43  ;;  %v5419_v33 = vpop.f32.mrb[3].mxu0  ;;  %v5460_v56 = vpop.f32.mrb[5].mxu1  ;;  %v7373_v21 = vadd.f32 %v3745_v10, %v3569_v20 }
 0x2f8   : > { %v3756_v53 = vpop.f32.mrb[6].mxu1 }
 0x2f9   : > { %v5461_v50 = vpop.f32.mrb[7].mxu1  ;;  %v7375_v15 = vadd.f32 %v3748_v19, %v3570_v12 }
 0x2fc   : > { %v3512_v55 = vpop.f32.mrb[4].mxu0 }
 0x2fd   : > { %v3571_v16 = vadd.f32 %v3512_v55, %v7325_v63  ;;  %v5422_v47 = vpop.f32.mrb[5].mxu0 }
 0x2fe   : > { %v3515_v61 = vpop.f32.mrb[6].mxu0  ;;  %v3761_v52 = vpop.f32.mrb[8].mxu1 }
 0x2ff   : > { %v3572_v27 = vadd.f32 %v3515_v61, %v7327_v29  ;;  %v5423_v44 = vpop.f32.mrb[7].mxu0  ;;  %v5464_v17 = vpop.f32.mrb[9].mxu1  ;;  %v7379_v28 = vadd.f32 %v3753_v22, %v3571_v16 }
 0x300   : > { %v3764_v43 = vpop.f32.mrb[10].mxu1 }
 0x301   : > { %v5465_v25 = vpop.f32.mrb[11].mxu1  ;;  %v7381_v35 = vadd.f32 %v3756_v53, %v3572_v27 }
 0x304   : > { %v3520_v26 = vpop.f32.mrb[8].mxu0 }
 0x305   : > { %v3573_v40 = vadd.f32 %v3520_v26, %v7331_v57  ;;  %v5426_v45 = vpop.f32.mrb[9].mxu0 }
 0x306   : > { %v3523_v32 = vpop.f32.mrb[10].mxu0  ;;  %v3769_v4 = vpop.f32.mrb[12].mxu1 }
 0x307   : > { %v3574_v63 = vadd.f32 %v3523_v32, %v7333_v30  ;;  %v5427_v0 = vpop.f32.mrb[11].mxu0  ;;  %v5468_v1 = vpop.f32.mrb[13].mxu1  ;;  %v7385_v38 = vadd.f32 %v3761_v52, %v3573_v40 }
 0x308   : > { %v3772_v29 = vpop.f32.mrb[14].mxu1 }
 0x309   : > { %v5469_v13 = vpop.f32.mrb[15].mxu1  ;;  %v7387_v46 = vadd.f32 %v3764_v43, %v3574_v63 }
 0x30c   : > { %v3528_v6 = vpop.f32.mrb[12].mxu0 }
 0x30d   : > { %v3575_v14 = vadd.f32 %v3528_v6, %v7337_v24  ;;  %v5430_v36 = vpop.f32.mrb[13].mxu0 }
 0x30e   : > { %v3531_v37 = vpop.f32.mrb[14].mxu0  ;;  %v3777_v58 = vpop.f32.mrb[16].mxu1 }
 0x30f   : > { %v3576_v57 = vadd.f32 %v3531_v37, %v7339_v48  ;;  %v5431_v49 = vpop.f32.mrb[15].mxu0  ;;  %v5472_v41 = vpop.f32.mrb[17].mxu1  ;;  %v7391_v54 = vadd.f32 %v3769_v4, %v3575_v14 }
 0x310   : > { %v3780_v30 = vpop.f32.mrb[18].mxu1 }
 0x311   : > { %v5473_v10 = vpop.f32.mrb[19].mxu1  ;;  %v7393_v18 = vadd.f32 %v3772_v29, %v3576_v57 }
 0x314   : > { %v3536_v11 = vpop.f32.mrb[16].mxu0 }
 0x315   : > { %v3577_v7 = vadd.f32 %v3536_v11, %v7343_v8  ;;  %v5434_v19 = vpop.f32.mrb[17].mxu0 }
 0x316   : > { %v3539_v3 = vpop.f32.mrb[18].mxu0  ;;  %v3785_v62 = vpop.f32.mrb[20].mxu1 }
 0x317   : > { %v3578_v24 = vadd.f32 %v3539_v3, %v7345_v39  ;;  %v5435_v20 = vpop.f32.mrb[19].mxu0  ;;  %v5476_v59 = vpop.f32.mrb[21].mxu1  ;;  %v7397_v60 = vadd.f32 %v3777_v58, %v3577_v7 }
 0x318   : > { %v3788_v48 = vpop.f32.mrb[22].mxu1 }
 0x319   : > { %v5477_v22 = vpop.f32.mrb[23].mxu1  ;;  %v7399_v12 = vadd.f32 %v3780_v30, %v3578_v24  ;;  %v7425_v30 = vld [vmem:[%s7522_s4] ss:$0 sm:$0xff] }
 0x31c   : > { %v3544_v33 = vpop.f32.mrb[20].mxu0 }
 0x31d   : > { %v3579_v56 = vadd.f32 %v3544_v33, %v7349_v34  ;;  %v5438_v53 = vpop.f32.mrb[21].mxu0 }
 0x31e   : > { %v3547_v50 = vpop.f32.mrb[22].mxu0  ;;  %v3793_v55 = vpop.f32.mrb[24].mxu1 }
 0x31f   : > { %v3580_v8 = vadd.f32 %v3547_v50, %v7351_v23  ;;  %v5439_v16 = vpop.f32.mrb[23].mxu0  ;;  %v5480_v47 = vpop.f32.mrb[25].mxu1  ;;  %v7403_v61 = vadd.f32 %v3785_v62, %v3579_v56 }
 0x320   : > { %v3796_v39 = vpop.f32.mrb[26].mxu1 }
 0x321   : > { %v5481_v52 = vpop.f32.mrb[27].mxu1  ;;  %v7405_v27 = vadd.f32 %v3788_v48, %v3580_v8 }
 0x324   : > { %v3552_v44 = vpop.f32.mrb[24].mxu0 }
 0x325   : > { %v3581_v17 = vadd.f32 %v3552_v44, %v7355_v42  ;;  %v5442_v43 = vpop.f32.mrb[25].mxu0 }
 0x326   : > { %v3555_v25 = vpop.f32.mrb[26].mxu0  ;;  %v3801_v34 = vpop.f32.mrb[28].mxu1 }
 0x327   : > { %v3582_v26 = vadd.f32 %v3555_v25, %v7357_v9  ;;  %v5443_v40 = vpop.f32.mrb[27].mxu0  ;;  %v5484_v23 = vpop.f32.mrb[29].mxu1  ;;  %v7409_v45 = vadd.f32 %v3793_v55, %v3581_v17 }
 0x328   : > { %v3804_v32 = vpop.f32.mrb[30].mxu1 }
 0x329   : > { %v5485_v4 = vpop.f32.mrb[31].mxu1  ;;  %v7411_v63 = vadd.f32 %v3796_v39, %v3582_v26 }
 0x32c   : > { %v3560_v0 = vpop.f32.mrb[28].mxu0 }
 0x32d   : > { %v3583_v1 = vadd.f32 %v3560_v0, %v7361_v2  ;;  %v5446_v29 = vpop.f32.mrb[29].mxu0 }
 0x32e   : > { %v3563_v42 = vpop.f32.mrb[30].mxu0  ;;  %v4163_v13 = vpop.f32.mrb[32].mxu1 }
 0x32f   : > { %v3584_v6 = vadd.f32 %v3563_v42, %v7363_v5  ;;  %v5447_v14 = vpop.f32.mrb[31].mxu0  ;;  %v5528_v9 = vpop.f32.mrb[33].mxu1  ;;  %v7416_v36 = vadd.f32 %v3801_v34, %v3583_v1 }
 0x330   : > { %v4166_v37 = vpop.f32.mrb[34].mxu1 }
 0x331   : > { %v5529_v58 = vpop.f32.mrb[35].mxu1  ;;  %v7419_v57 = vadd.f32 %v3804_v32, %v3584_v6 }
 0x334   : > { %v3985_v49 = vpop.f32.mrb[32].mxu0 }
 0x335   : > { %v4056_v41 = vadd.f32 %v3985_v49, %v7367_v51  ;;  %v5490_v2 = vpop.f32.mrb[33].mxu0 }
 0x336   : > { %v3988_v5 = vpop.f32.mrb[34].mxu0  ;;  %v4171_v10 = vpop.f32.mrb[36].mxu1 }
 0x337   : > { %v4234_v11 = vadd.f32 %v4163_v13, %v4056_v41  ;;  %v4057_v7 = vadd.f32 %v3988_v5, %v7369_v31  ;;  %v5491_v19 = vpop.f32.mrb[35].mxu0  ;;  %v5532_v3 = vpop.f32.mrb[37].mxu1 }
 0x338   : > { %v4174_v62 = vpop.f32.mrb[38].mxu1 }
 0x339   : > { %v4259_v24 = vadd.f32 %v7425_v30, %v4234_v11  ;;  %v4235_v20 = vadd.f32 %v4166_v37, %v4057_v7  ;;  %v5533_v59 = vpop.f32.mrb[39].mxu1 }
 0x33b   : > { %v4277_v51 = vmax.f32 %v4259_v24, 0.0  ;;  %v4260_v48 = vadd.f32 %v7425_v30, %v4235_v20 }
 0x33c   : > { %v3993_v22 = vpop.f32.mrb[36].mxu0 }
 0x33d   : > { %4296 = vst.msk [vmem:[%s7432_s16] sm:$0xff] %vm4295_vm11, %v4277_v51  ;;  %v4278_v31 = vmax.f32 %v4260_v48, 0.0  ;;  %v4058_v33 = vadd.f32 %v3993_v22, %v7373_v21  ;;  %v5494_v56 = vpop.f32.mrb[37].mxu0 }
 0x33e   : > { %v3996_v53 = vpop.f32.mrb[38].mxu0  ;;  %v4179_v50 = vpop.f32.mrb[40].mxu1 }
 0x33f   : > { %4297 = vst.msk [vmem:[%s7432_s16 + $0x8] sm:$0xff] %vm4295_vm11, %v4278_v31  ;;  %v4236_v55 = vadd.f32 %v4171_v10, %v4058_v33  ;;  %v4059_v8 = vadd.f32 %v3996_v53, %v7375_v15  ;;  %v5495_v16 = vpop.f32.mrb[39].mxu0  ;;  %v5536_v47 = vpop.f32.mrb[41].mxu1 }
 0x340   : > { %v4182_v39 = vpop.f32.mrb[42].mxu1 }
 0x341   : > { %v4261_v52 = vadd.f32 %v7425_v30, %v4236_v55  ;;  %v4237_v44 = vadd.f32 %v4174_v62, %v4059_v8  ;;  %v5537_v17 = vpop.f32.mrb[43].mxu1 }
 0x343   : > { %v4279_v43 = vmax.f32 %v4261_v52, 0.0  ;;  %v4262_v21 = vadd.f32 %v7425_v30, %v4237_v44 }
 0x344   : > { %v4001_v25 = vpop.f32.mrb[40].mxu0 }
 0x345   : > { %4298 = vst.msk [vmem:[%s7432_s16 + $0x10] sm:$0xff] %vm4295_vm11, %v4279_v43  ;;  %v4280_v34 = vmax.f32 %v4262_v21, 0.0  ;;  %v4060_v26 = vadd.f32 %v4001_v25, %v7379_v28  ;;  %v5498_v40 = vpop.f32.mrb[41].mxu0 }
 0x346   : > { %v4004_v15 = vpop.f32.mrb[42].mxu0  ;;  %v4187_v23 = vpop.f32.mrb[44].mxu1 }
 0x347   : > { %4299 = vst.msk [vmem:[%s7432_s16 + $0x18] sm:$0xff] %vm4295_vm11, %v4280_v34  ;;  %v4238_v32 = vadd.f32 %v4179_v50, %v4060_v26  ;;  %v4061_v4 = vadd.f32 %v4004_v15, %v7381_v35  ;;  %v5499_v0 = vpop.f32.mrb[43].mxu0  ;;  %v5540_v1 = vpop.f32.mrb[45].mxu1 }
 0x348   : > { %v4190_v29 = vpop.f32.mrb[46].mxu1 }
 0x349   : > { %v4263_v42 = vadd.f32 %v7425_v30, %v4238_v32  ;;  %v4239_v13 = vadd.f32 %v4182_v39, %v4061_v4  ;;  %v5541_v6 = vpop.f32.mrb[47].mxu1 }
 0x34b   : > { %v4281_v14 = vmax.f32 %v4263_v42, 0.0  ;;  %v4264_v28 = vadd.f32 %v7425_v30, %v4239_v13 }
 0x34c   : > { %v4009_v9 = vpop.f32.mrb[44].mxu0 }
 0x34d   : > { %4300 = vst.msk [vmem:[%s7432_s16 + $0x20] sm:$0xff] %vm4295_vm11, %v4281_v14  ;;  %v4282_v37 = vmax.f32 %v4264_v28, 0.0  ;;  %v4062_v58 = vadd.f32 %v4009_v9, %v7385_v38  ;;  %v5502_v49 = vpop.f32.mrb[45].mxu0 }
 0x34e   : > { %v4012_v35 = vpop.f32.mrb[46].mxu0  ;;  %v4195_v41 = vpop.f32.mrb[48].mxu1 }
 0x34f   : > { %4301 = vst.msk [vmem:[%s7432_s16 + $0x28] sm:$0xff] %vm4295_vm11, %v4282_v37  ;;  %v4240_v2 = vadd.f32 %v4187_v23, %v4062_v58  ;;  %v4063_v5 = vadd.f32 %v4012_v35, %v7387_v46  ;;  %v5503_v10 = vpop.f32.mrb[47].mxu0  ;;  %v5544_v11 = vpop.f32.mrb[49].mxu1 }
 0x350   : > { %v4198_v7 = vpop.f32.mrb[50].mxu1 }
 0x351   : > { %v4265_v19 = vadd.f32 %v7425_v30, %v4240_v2  ;;  %v4241_v3 = vadd.f32 %v4190_v29, %v4063_v5  ;;  %v5545_v62 = vpop.f32.mrb[51].mxu1 }
 0x353   : > { %v4283_v24 = vmax.f32 %v4265_v19, 0.0  ;;  %v4266_v38 = vadd.f32 %v7425_v30, %v4241_v3 }
 0x354   : > { %v4017_v20 = vpop.f32.mrb[48].mxu0 }
 0x355   : > { %4302 = vst.msk [vmem:[%s7432_s16 + $0x30] sm:$0xff] %vm4295_vm11, %v4283_v24  ;;  %v4284_v59 = vmax.f32 %v4266_v38, 0.0  ;;  %v4064_v51 = vadd.f32 %v4017_v20, %v7391_v54  ;;  %v5506_v48 = vpop.f32.mrb[49].mxu0 }
 0x356   : > { %v4020_v46 = vpop.f32.mrb[50].mxu0  ;;  %v4203_v22 = vpop.f32.mrb[52].mxu1 }
 0x357   : > { %4303 = vst.msk [vmem:[%s7432_s16 + $0x38] sm:$0xff] %vm4295_vm11, %v4284_v59  ;;  %v4242_v31 = vadd.f32 %v4195_v41, %v4064_v51  ;;  %v4065_v33 = vadd.f32 %v4020_v46, %v7393_v18  ;;  %v5507_v56 = vpop.f32.mrb[51].mxu0  ;;  %v5548_v53 = vpop.f32.mrb[53].mxu1 }
 0x358   : > { %v4206_v50 = vpop.f32.mrb[54].mxu1 }
 0x359   : > { %v4267_v55 = vadd.f32 %v7425_v30, %v4242_v31  ;;  %v4243_v8 = vadd.f32 %v4198_v7, %v4065_v33  ;;  %v5549_v16 = vpop.f32.mrb[55].mxu1 }
 0x35b   : > { %v4285_v47 = vmax.f32 %v4267_v55, 0.0  ;;  %v4268_v54 = vadd.f32 %v7425_v30, %v4243_v8 }
 0x35c   : > { %v4025_v39 = vpop.f32.mrb[52].mxu0 }
 0x35d   : > { %4304 = vst.msk [vmem:[%s7432_s16 + $0x40] sm:$0xff] %vm4295_vm11, %v4285_v47  ;;  %v4286_v52 = vmax.f32 %v4268_v54, 0.0  ;;  %v4066_v44 = vadd.f32 %v4025_v39, %v7397_v60  ;;  %v5510_v17 = vpop.f32.mrb[53].mxu0 }
 0x35e   : > { %v4028_v18 = vpop.f32.mrb[54].mxu0  ;;  %v4211_v43 = vpop.f32.mrb[56].mxu1 }
 0x35f   : > { %4305 = vst.msk [vmem:[%s7432_s16 + $0x48] sm:$0xff] %vm4295_vm11, %v4286_v52  ;;  %v4244_v21 = vadd.f32 %v4203_v22, %v4066_v44  ;;  %v4067_v25 = vadd.f32 %v4028_v18, %v7399_v12  ;;  %v5511_v34 = vpop.f32.mrb[55].mxu0  ;;  %v5552_v26 = vpop.f32.mrb[57].mxu1 }
 0x360   : > { %v4214_v40 = vpop.f32.mrb[58].mxu1 }
 0x361   : > { %v4269_v15 = vadd.f32 %v7425_v30, %v4244_v21  ;;  %v4245_v23 = vadd.f32 %v4206_v50, %v4067_v25  ;;  %v5553_v32 = vpop.f32.mrb[59].mxu1 }
 0x363   : > { %v4287_v4 = vmax.f32 %v4269_v15, 0.0  ;;  %v4270_v60 = vadd.f32 %v7425_v30, %v4245_v23 }
 0x364   : > { %v4033_v0 = vpop.f32.mrb[56].mxu0 }
 0x365   : > { %4306 = vst.msk [vmem:[%s7432_s16 + $0x50] sm:$0xff] %vm4295_vm11, %v4287_v4  ;;  %v4288_v1 = vmax.f32 %v4270_v60, 0.0  ;;  %v4068_v29 = vadd.f32 %v4033_v0, %v7403_v61  ;;  %v5514_v42 = vpop.f32.mrb[57].mxu0 }
 0x366   : > { %v4036_v12 = vpop.f32.mrb[58].mxu0  ;;  %v4219_v13 = vpop.f32.mrb[60].mxu1 }
 0x367   : > { %4307 = vst.msk [vmem:[%s7432_s16 + $0x58] sm:$0xff] %vm4295_vm11, %v4288_v1  ;;  %v4246_v6 = vadd.f32 %v4211_v43, %v4068_v29  ;;  %v4069_v14 = vadd.f32 %v4036_v12, %v7405_v27  ;;  %v5515_v28 = vpop.f32.mrb[59].mxu0  ;;  %v5556_v9 = vpop.f32.mrb[61].mxu1 }
 0x368   : > { %v4222_v37 = vpop.f32.mrb[62].mxu1 }
 0x369   : > { %v4271_v58 = vadd.f32 %v7425_v30, %v4246_v6  ;;  %v4247_v49 = vadd.f32 %v4214_v40, %v4069_v14  ;;  %v5557_v35 = vpop.f32.mrb[63].mxu1 }
 0x36b   : > { %v4289_v41 = vmax.f32 %v4271_v58, 0.0  ;;  %v4272_v61 = vadd.f32 %v7425_v30, %v4247_v49 }
 0x36c   : > { %v4041_v2 = vpop.f32.mrb[60].mxu0 }
 0x36d   : > { %4308 = vst.msk [vmem:[%s7432_s16 + $0x60] sm:$0xff] %vm4295_vm11, %v4289_v41  ;;  %v4290_v5 = vmax.f32 %v4272_v61, 0.0  ;;  %v4070_v10 = vadd.f32 %v4041_v2, %v7409_v45  ;;  %v5518_v11 = vpop.f32.mrb[61].mxu0 }
 0x36e   : > { %v4044_v27 = vpop.f32.mrb[62].mxu0  ;;  %v4227_v7 = vpop.f32.mrb[64].mxu1 }
 0x36f   : > { %4309 = vst.msk [vmem:[%s7432_s16 + $0x68] sm:$0xff] %vm4295_vm11, %v4290_v5  ;;  %v4248_v19 = vadd.f32 %v4219_v13, %v4070_v10  ;;  %v4071_v3 = vadd.f32 %v4044_v27, %v7411_v63  ;;  %v5519_v62 = vpop.f32.mrb[63].mxu0  ;;  %v5560_v24 = vpop.f32.mrb[65].mxu1 }
 0x370   : > { %v4230_v38 = vpop.f32.mrb[66].mxu1 }
 0x371   : > { %v4273_v20 = vadd.f32 %v7425_v30, %v4248_v19  ;;  %v4249_v59 = vadd.f32 %v4222_v37, %v4071_v3  ;;  %v5561_v51 = vpop.f32.mrb[67].mxu1 }
 0x373   : > { %v4291_v48 = vmax.f32 %v4273_v20, 0.0  ;;  %v4274_v45 = vadd.f32 %v7425_v30, %v4249_v59 }
 0x374   : > { %v4049_v46 = vpop.f32.mrb[64].mxu0 }
 0x375   : > { %4310 = vst.msk [vmem:[%s7432_s16 + $0x70] sm:$0xff] %vm4295_vm11, %v4291_v48  ;;  %v4292_v22 = vmax.f32 %v4274_v45, 0.0  ;;  %v4072_v31 = vadd.f32 %v4049_v46, %v7416_v36  ;;  %v5522_v33 = vpop.f32.mrb[65].mxu0 }
 0x376   : > { %v4052_v63 = vpop.f32.mrb[66].mxu0 }
 0x377   : > { %4311 = vst.msk [vmem:[%s7432_s16 + $0x78] sm:$0xff] %vm4295_vm11, %v4292_v22  ;;  %v4250_v56 = vadd.f32 %v4227_v7, %v4072_v31  ;;  %v4073_v53 = vadd.f32 %v4052_v63, %v7419_v57  ;;  %v5523_v50 = vpop.f32.mrb[67].mxu0 }
 0x379   : > { %v4275_v55 = vadd.f32 %v7425_v30, %v4250_v56  ;;  %v4251_v8 = vadd.f32 %v4230_v38, %v4073_v53 }
 0x37b   : > { %v4293_v16 = vmax.f32 %v4275_v55, 0.0  ;;  %v4276_v47 = vadd.f32 %v7425_v30, %v4251_v8 }
 0x37d   : > { %4312 = vst.msk [vmem:[%s7432_s16 + $0x80] sm:$0xff] %vm4295_vm11, %v4293_v16  ;;  %v4294_v54 = vmax.f32 %v4276_v47, 0.0 }
 0x37f   : > { %4313 = vst.msk [vmem:[%s7432_s16 + $0x88] sm:$0xff] %vm4295_vm11, %v4294_v54 }
 0x380 PF: > { %s15_s22 = sadd.s32 1, %s5725_s22   ;;  %s7524_s18 = smov %s5717_s20 }
 0x381   : > { %p12_p7 = scmp.ge.s32.totalorder %s15_s22, 6   ;;  %s7525_s19 = smov %s5721_s21 }
 0x382   : > { %s7526_s20 = smov %s7529_s23  ;;  %s7527_s21 = smov %s7533_s24 }
 0x383   :  { %14 = sbr.rel (!%p12_p7) target bundleno = 3 (0x3), region = 89 }

</bundles_post_ra>
